<compile_context>
chip_gen: v6e
topology: v6e:2x2x1
jax: 0.10.0
libtpu: 0.0.40
codegen_flags: <defaults>
</compile_context>

<pallas_src>
import functools

import numpy as np

import jax
import jax.numpy as jnp
from jax.experimental import pallas as pl
from jax.experimental.pallas import tpu as pltpu

_EPS = 1e-5
_VMEM_LIMIT = 40 * 1024 * 1024   # headroom on v7x's 64 MiB physical VMEM


# ---------------------------------------------------------------------------
# Kernel 1: fused fc block  (Linear -> BN1d -> ReLU -> Linear -> BN1d -> ReLU)
# ---------------------------------------------------------------------------
def _fc_fused_kernel(z_ref, w1_ref, w2_ref, o_ref, h1_ref):
    # Grid axis tiles fc2's output columns. BN1d is per-column, so per-tile stats are exact.
    # Linear biases are dropped (cancelled exactly by the BN mean subtraction).
    @pl.when(pl.program_id(0) == 0)
    def _():
        y = jnp.dot(z_ref[...], w1_ref[...], preferred_element_type=jnp.float32)
        mean = jnp.mean(y, axis=0, keepdims=True)
        var = jnp.mean(jnp.square(y - mean), axis=0, keepdims=True)
        h1_ref[...] = jnp.maximum((y - mean) * jax.lax.rsqrt(var + _EPS),
                                  0.0).astype(h1_ref.dtype)

    y2 = jnp.dot(h1_ref[...], w2_ref[...], preferred_element_type=jnp.float32)
    mean2 = jnp.mean(y2, axis=0, keepdims=True)
    var2 = jnp.mean(jnp.square(y2 - mean2), axis=0, keepdims=True)
    o_ref[...] = jnp.maximum((y2 - mean2) * jax.lax.rsqrt(var2 + _EPS),
                             0.0).astype(o_ref.dtype)


def fc_block(z, w1, w2):
    M, K = z.shape
    N1 = w1.shape[1]
    N2 = w2.shape[1]
    tn = N2                                    # grid=1 when the whole fc2 weight fits
    for cand in (2048, 1024, 512, 256):
        if N2 > cand and N2 % cand == 0:
            tn = cand
            break
    return pl.pallas_call(
        _fc_fused_kernel,
        out_shape=jax.ShapeDtypeStruct((M, N2), jnp.bfloat16),
        grid=(N2 // tn,),
        in_specs=[
            pl.BlockSpec((M, K), lambda j: (0, 0)),      # latent batch, resident
            pl.BlockSpec((K, N1), lambda j: (0, 0)),     # w1, resident
            pl.BlockSpec((N1, tn), lambda j: (0, j)),    # w2, streamed per N-tile
        ],
        out_specs=pl.BlockSpec((M, tn), lambda j: (0, j)),
        scratch_shapes=[pltpu.VMEM((M, N1), jnp.bfloat16)],   # fc1 activation stays on-chip
        compiler_params=pltpu.CompilerParams(
            dimension_semantics=("arbitrary",),   # step 0 writes the scratch later steps read
            vmem_limit_bytes=_VMEM_LIMIT,
        ),
        cost_estimate=pl.CostEstimate(
            flops=2 * M * K * N1 + 2 * M * N1 * N2,
            transcendentals=N1 + N2,
            bytes_accessed=2 * (M * K + K * N1 + N1 * N2 + M * N2),
        ),
    )(z, w1, w2)


# ---------------------------------------------------------------------------
# Sub-pixel (phase) decomposition of ConvTranspose2d(k=4, stride=2, pad=1):
#   out[2h+r, 2w+s] = sum_{dy,dx in {0,1}} x[h+r+dy-1, w+s+dx-1] . W[:, :, 3-r-2dy, 3-s-2dx]
# Taps are built in-kernel from the compact flat activation by a static cyclic shift of
# d = oy*W + ox rows/lanes (oy=r+dy-1, ox=s+dx-1) plus a precomputed boundary mask; every
# out-of-image (incl. cross-batch / wrap-around) row is masked, so the cyclic shift is exact.
# ---------------------------------------------------------------------------
def _deconv1_kernel(x_ref, m_ref, w_ref, o_ref, *, spatial_w):
    # ConvTranspose2d(Cin->Cout) + exact BatchNorm2d + ReLU, single shot, row-major layout.
    #   x_ref: (M, Cin)         bf16 flat NHWC rows (m = b*H*W + h*W + w)
    #   m_ref: (9, M, 1)        f32 boundary masks for offsets (oy, ox) in {-1,0,1}^2
    #   w_ref: (4, 4*Cin, Cout) bf16 per-phase GEMM weights
    #   o_ref: (M, 4*Cout)      bf16, lane-dense, column order (r, s, c)
    x = x_ref[...].astype(jnp.float32)   # f32 rows -> well-supported sublane shifts
    M = x.shape[0]

    def tap(oy, ox):
        k = (oy * spatial_w + ox) % M
        xs = x if k == 0 else jnp.concatenate([x[k:], x[:k]], axis=0)   # row m -> row m + d
        return xs * m_ref[3 * (oy + 1) + (ox + 1)]

    taps = {(oy, ox): tap(oy, ox) for oy in (-1, 0, 1) for ox in (-1, 0, 1)}

    ys = []
    for r in (0, 1):
        for s in (0, 1):
            t = jnp.concatenate(
                [taps[(r + dy - 1, s + dx - 1)] for dy in (0, 1) for dx in (0, 1)], axis=-1)
            ys.append(jnp.dot(t.astype(jnp.bfloat16), w_ref[2 * r + s],
                              preferred_element_type=jnp.float32))       # (M, Cout)

    # Exact BatchNorm2d batch statistics over all 4*M (phase, row) samples per channel.
    inv_n = 1.0 / (4.0 * M)
    mean = (ys[0] + ys[1] + ys[2] + ys[3]).sum(axis=0, keepdims=True) * inv_n
    var = ((ys[0] - mean) ** 2 + (ys[1] - mean) ** 2
           + (ys[2] - mean) ** 2 + (ys[3] - mean) ** 2).sum(axis=0, keepdims=True) * inv_n
    inv_std = jax.lax.rsqrt(var + _EPS)
    o_ref[...] = jnp.concatenate(
        [jnp.maximum((y - mean) * inv_std, 0.0) for y in ys], axis=-1).astype(o_ref.dtype)


def deconv1_block(x, masks, w, *, spatial_w):
    M, Cin = x.shape
    Cout = w.shape[-1]
    return pl.pallas_call(
        functools.partial(_deconv1_kernel, spatial_w=spatial_w),
        out_shape=jax.ShapeDtypeStruct((M, 4 * Cout), jnp.bfloat16),
        grid=(1,),
        in_specs=[
            pl.BlockSpec((M, Cin), lambda i: (0, 0)),
            pl.BlockSpec((9, M, 1), lambda i: (0, 0, 0)),
            pl.BlockSpec((4, 4 * Cin, Cout), lambda i: (0, 0, 0)),
        ],
        out_specs=pl.BlockSpec((M, 4 * Cout), lambda i: (0, 0)),
        compiler_params=pltpu.CompilerParams(
            dimension_semantics=("arbitrary",),
            vmem_limit_bytes=_VMEM_LIMIT,
        ),
        cost_estimate=pl.CostEstimate(
            flops=4 * 2 * M * (4 * Cin) * Cout,
            transcendentals=Cout,
            bytes_accessed=2 * (M * Cin + 16 * Cin * Cout + 4 * M * Cout) + 4 * 9 * M,
        ),
    )(x, masks, w)


def _deconv2_kernel(x_ref, m_ref, w_ref, b_ref, o_ref, *, spatial_w):
    # ConvTranspose2d(Cin->Cout) + bias + tanh, single shot, channel-major layout so the
    # spatial dim M lands on the MXU/store lane axis (lane-dense output even for Cout=1).
    #   x_ref: (Cin, M) bf16;  m_ref: (9, 1, M) bf16;  w_ref: (4, Cout, 4*Cin) bf16
    #   b_ref: (Cout, 1) f32;  o_ref: (4, Cout, M) f32
    x = x_ref[...]
    M = x.shape[1]

    def tap(oy, ox):
        k = (oy * spatial_w + ox) % M
        xs = x if k == 0 else jnp.concatenate([x[:, k:], x[:, :k]], axis=1)  # col m -> m + d
        return xs * m_ref[3 * (oy + 1) + (ox + 1)]

    taps = {(oy, ox): tap(oy, ox) for oy in (-1, 0, 1) for ox in (-1, 0, 1)}

    b = b_ref[...]
    for r in (0, 1):
        for s in (0, 1):
            t = jnp.concatenate(
                [taps[(r + dy - 1, s + dx - 1)] for dy in (0, 1) for dx in (0, 1)], axis=0)
            z = jnp.dot(w_ref[2 * r + s], t, preferred_element_type=jnp.float32)  # (Cout, M)
            o_ref[2 * r + s] = jnp.tanh(z + b)


def deconv2_block(x, masks, wt, b, *, spatial_w):
    Cin, M = x.shape
    Cout = wt.shape[1]
    return pl.pallas_call(
        functools.partial(_deconv2_kernel, spatial_w=spatial_w),
        out_shape=jax.ShapeDtypeStruct((4, Cout, M), jnp.float32),
        grid=(1,),
        in_specs=[
            pl.BlockSpec((Cin, M), lambda i: (0, 0)),
            pl.BlockSpec((9, 1, M), lambda i: (0, 0, 0)),
            pl.BlockSpec((4, Cout, 4 * Cin), lambda i: (0, 0, 0)),
            pl.BlockSpec((Cout, 1), lambda i: (0, 0)),
        ],
        out_specs=pl.BlockSpec((4, Cout, M), lambda i: (0, 0, 0)),
        compiler_params=pltpu.CompilerParams(
            dimension_semantics=("arbitrary",),
            vmem_limit_bytes=_VMEM_LIMIT,
        ),
        cost_estimate=pl.CostEstimate(
            flops=4 * 2 * Cout * (4 * Cin) * M,
            transcendentals=4 * Cout * M,
            bytes_accessed=2 * (Cin * M + 16 * Cin * Cout + 9 * M) + 4 * 4 * Cout * M,
        ),
    )(x, masks, wt, b)


# ---------------------------------------------------------------------------
# Host-side helpers (static shapes only)
# ---------------------------------------------------------------------------
def _boundary_masks(batch, height, width):
    """(9, M) 0/1 masks: entry k=3*(oy+1)+(ox+1); row m valid iff (h+oy, w+ox) is in-image."""
    m = batch * height * width
    hh = (np.arange(m) // width) % height
    ww = np.arange(m) % width
    out = []
    for oy in (-1, 0, 1):
        for ox in (-1, 0, 1):
            out.append(((hh + oy >= 0) & (hh + oy < height)
                        & (ww + ox >= 0) & (ww + ox < width)).astype(np.float32))
    return np.stack(out, axis=0)


def _phase_weights(w_t):
    # PyTorch ConvTranspose2d weight layout (C_in, C_out, 4, 4) -> (4, 4*C_in, C_out),
    # phase p = 2*r + s, tap blocks ordered (dy, dx) to match the in-kernel tap concat order.
    phases = []
    for r in range(2):
        for s in range(2):
            taps = [w_t[:, :, 3 - r - 2 * dy, 3 - s - 2 * dx]
                    for dy in range(2) for dx in range(2)]
            phases.append(jnp.concatenate(taps, axis=0))
    return jnp.stack(phases, axis=0)


# ---------------------------------------------------------------------------
# Parameters
# ---------------------------------------------------------------------------
def init_params(key, input_dim, output_dim, input_size):
    # Matches initialize_weights(): normal(0, 0.02) weights, zero biases; BN at gamma=1/beta=0.
    s4 = input_size // 4
    k1, k2, k3, k4 = jax.random.split(key, 4)
    return {
        "w1": 0.02 * jax.random.normal(k1, (input_dim, 1024), jnp.float32),
        "b1": jnp.zeros((1024,), jnp.float32),
        "w2": 0.02 * jax.random.normal(k2, (1024, 128 * s4 * s4), jnp.float32),
        "b2": jnp.zeros((128 * s4 * s4,), jnp.float32),
        "wd1": 0.02 * jax.random.normal(k3, (128, 64, 4, 4), jnp.float32),
        "bd1": jnp.zeros((64,), jnp.float32),
        "wd2": 0.02 * jax.random.normal(k4, (64, output_dim, 4, 4), jnp.float32),
        "bd2": jnp.zeros((output_dim,), jnp.float32),
    }


def prepare_params(params, input_size):
    # One-time (outside jit) conversion to GEMM-ready layouts:
    #  * fc2 columns permuted so its output is directly (B, s4, s4, 128) NHWC
    #    (BatchNorm1d is per-column, so a column permutation is exact).
    #  * deconv weights split into the 4 sub-pixel phase slices; deconv2's are additionally
    #    transposed to (Cout, 4*Cin) for the channel-major GEMM.
    #  * bf16 MXU operands (f32 accumulation happens inside the kernels).
    #  * b1/b2/bd1 dropped: a per-feature bias right before BatchNorm is cancelled exactly.
    s4 = input_size // 4
    perm = np.arange(128 * s4 * s4).reshape(128, s4, s4).transpose(1, 2, 0).reshape(-1)
    wd2_ph = _phase_weights(params["wd2"])                                # (4, 4*64, Cout)
    return {
        "w1": params["w1"].astype(jnp.bfloat16),
        "w2": params["w2"][:, perm].astype(jnp.bfloat16),
        "wd1": _phase_weights(params["wd1"]).astype(jnp.bfloat16),        # (4, 512, 64)
        "wd2t": jnp.transpose(wd2_ph, (0, 2, 1)).astype(jnp.bfloat16),    # (4, Cout, 256)
        "bd2": params["bd2"].reshape(-1, 1).astype(jnp.float32),          # (Cout, 1)
    }


# ---------------------------------------------------------------------------
# Full forward pass
# ---------------------------------------------------------------------------
@functools.partial(jax.jit, static_argnames=("input_size",))
def generator_forward(z, gparams, *, input_size=16):
    s4 = input_size // 4
    B = z.shape[0]

    # fused fc block: (B, in) -> (B, s4*s4*128), columns already in NHWC (h, w, c) order
    h = fc_block(z.astype(jnp.bfloat16), gparams["w1"], gparams["w2"])

    # deconv1: ConvTranspose2d(128->64) + BN2d + ReLU (phase decomposition, row-major)
    H1 = W1 = s4
    x1 = h.reshape(B * H1 * W1, 128)                                     # flat NHWC rows
    m1 = jnp.asarray(_boundary_masks(B, H1, W1)[:, :, None], jnp.float32)
    y1 = deconv1_block(x1, m1, gparams["wd1"], spatial_w=W1)             # (B*H1*W1, 4*64)

    # phase interleave -> flat NHWC rows -> channel-major for deconv2 (tiny XLA reshuffle)
    H2, W2 = 2 * H1, 2 * W1
    x2 = (y1.reshape(B, H1, W1, 2, 2, 64)
             .transpose(0, 1, 3, 2, 4, 5)
             .reshape(B * H2 * W2, 64)
             .T)                                                         # (64, B*H2*W2)

    # deconv2: ConvTranspose2d(64->out) + bias + tanh (channel-major, M on lanes)
    m2 = jnp.asarray(_boundary_masks(B, H2, W2)[:, None, :], jnp.bfloat16)
    y2 = deconv2_block(x2, m2, gparams["wd2t"], gparams["bd2"], spatial_w=W2)  # (4, C, M2)

    C = y2.shape[1]
    return (y2.reshape(2, 2, C, B, H2, W2)
              .transpose(3, 2, 4, 0, 5, 1)
              .reshape(B, C, 2 * H2, 2 * W2))                            # NCHW


if __name__ == "__main__":
    B, INPUT_DIM, OUTPUT_DIM, INPUT_SIZE = 2, 64, 1, 16

    key = jax.random.PRNGKey(0)
    kz, kp = jax.random.split(key)
    params = init_params(kp, INPUT_DIM, OUTPUT_DIM, INPUT_SIZE)
    gparams = prepare_params(params, INPUT_SIZE)
    z = jax.random.normal(kz, (B, INPUT_DIM), jnp.float32)

    out = generator_forward(z, gparams, input_size=INPUT_SIZE)
    out = jax.block_until_ready(out)

    assert out.shape == (B, OUTPUT_DIM, INPUT_SIZE, INPUT_SIZE), out.shape
    assert bool(jnp.all(jnp.isfinite(out)))
    assert bool(jnp.all(jnp.abs(out) <= 1.0 + 1e-6))   # tanh output range
    print("KERNEL_OK")
</pallas_src>

<mosaic_0001>
module attributes {stable_mosaic.version = 11 : i64} {
  func.func @_fc_fused_kernel(%arg0: i32, %arg1: memref<2x64xbf16, #tpu.memory_space<vmem>>, %arg2: memref<64x1024xbf16, #tpu.memory_space<vmem>>, %arg3: memref<1024x1024xbf16, #tpu.memory_space<vmem>>, %arg4: memref<2x1024xbf16, #tpu.memory_space<vmem>>, %arg5: memref<2x1024xbf16, #tpu.memory_space<vmem>>) attributes {dimension_semantics = [#tpu.dimension_semantics<arbitrary>], iteration_bounds = array<i64: 2>, scalar_prefetch = 0 : i64, scratch_operands = 1 : i64, tpu.core_type = #tpu.core_type<tc>, window_params = [{pipeline_mode = #tpu.pipeline_mode<synchronous>, transform_indices = @transform_0, window_bounds = array<i64: 2, 64>}, {pipeline_mode = #tpu.pipeline_mode<synchronous>, transform_indices = @transform_1, window_bounds = array<i64: 64, 1024>}, {transform_indices = @transform_2, window_bounds = array<i64: 1024, 1024>}, {transform_indices = @transform_3, window_bounds = array<i64: 2, 1024>}]} {
    %c0_i32 = arith.constant 0 : i32
    %0 = arith.cmpi eq, %arg0, %c0_i32 : i32
    %1 = arith.extui %0 : i1 to i32
    %c0_i32_0 = arith.constant 0 : i32
    %2 = arith.cmpi ne, %1, %c0_i32_0 : i32
    scf.if %2 {
      %c0_12 = arith.constant 0 : index
      %c0_13 = arith.constant 0 : index
      %28 = vector.load %arg1[%c0_12, %c0_13] : memref<2x64xbf16, #tpu.memory_space<vmem>>, vector<2x64xbf16>
      %c0_14 = arith.constant 0 : index
      %c0_15 = arith.constant 0 : index
      %29 = vector.load %arg2[%c0_14, %c0_15] : memref<64x1024xbf16, #tpu.memory_space<vmem>>, vector<64x1024xbf16>
      %cst_16 = arith.constant dense<0.000000e+00> : vector<2x1024xf32>
      %30 = tpu.matmul %28, %29, %cst_16 {dimension_numbers = #tpu.dot_dimension_numbers<[1], [0], [0], [1], [0, 0, 1, 1], [], []>} : vector<2x64xbf16>, vector<64x1024xbf16>, vector<2x1024xf32> -> vector<2x1024xf32>
      %cst_17 = arith.constant dense<0.000000e+00> : vector<1024xf32>
      %31 = vector.multi_reduction <add>, %30, %cst_17 [0] : vector<2x1024xf32> to vector<1024xf32>
      %32 = vector.shape_cast %31 : vector<1024xf32> to vector<1x1024xf32>
      %cst_18 = arith.constant 2.000000e+00 : f32
      %33 = vector.broadcast %cst_18 : f32 to vector<1x1024xf32>
      %34 = arith.divf %32, %33 : vector<1x1024xf32>
      %35 = vector.broadcast %34 : vector<1x1024xf32> to vector<2x1024xf32>
      %36 = arith.subf %30, %35 : vector<2x1024xf32>
      %37 = arith.mulf %36, %36 : vector<2x1024xf32>
      %cst_19 = arith.constant dense<0.000000e+00> : vector<1024xf32>
      %38 = vector.multi_reduction <add>, %37, %cst_19 [0] : vector<2x1024xf32> to vector<1024xf32>
      %39 = vector.shape_cast %38 : vector<1024xf32> to vector<1x1024xf32>
      %cst_20 = arith.constant 2.000000e+00 : f32
      %40 = vector.broadcast %cst_20 : f32 to vector<1x1024xf32>
      %41 = arith.divf %39, %40 : vector<1x1024xf32>
      %42 = vector.broadcast %34 : vector<1x1024xf32> to vector<2x1024xf32>
      %43 = arith.subf %30, %42 : vector<2x1024xf32>
      %cst_21 = arith.constant 9.99999974E-6 : f32
      %44 = vector.broadcast %cst_21 : f32 to vector<1x1024xf32>
      %45 = arith.addf %41, %44 : vector<1x1024xf32>
      %46 = math.rsqrt %45 : vector<1x1024xf32>
      %47 = vector.broadcast %46 : vector<1x1024xf32> to vector<2x1024xf32>
      %48 = arith.mulf %43, %47 : vector<2x1024xf32>
      %cst_22 = arith.constant 0.000000e+00 : f32
      %49 = vector.broadcast %cst_22 : f32 to vector<2x1024xf32>
      %50 = arith.maximumf %48, %49 : vector<2x1024xf32>
      %51 = arith.truncf %50 : vector<2x1024xf32> to vector<2x1024xbf16>
      %c0_23 = arith.constant 0 : index
      %c0_24 = arith.constant 0 : index
      %52 = vector.load %arg5[%c0_23, %c0_24] : memref<2x1024xbf16, #tpu.memory_space<vmem>>, vector<2x1024xbf16>
      tpu.vector_store %arg5[%c0_23, %c0_24], %51 {strides = array<i32>} : memref<2x1024xbf16, #tpu.memory_space<vmem>>, vector<2x1024xbf16>,
    } else {
    }
    %c0 = arith.constant 0 : index
    %c0_1 = arith.constant 0 : index
    %3 = vector.load %arg5[%c0, %c0_1] : memref<2x1024xbf16, #tpu.memory_space<vmem>>, vector<2x1024xbf16>
    %c0_2 = arith.constant 0 : index
    %c0_3 = arith.constant 0 : index
    %4 = vector.load %arg3[%c0_2, %c0_3] : memref<1024x1024xbf16, #tpu.memory_space<vmem>>, vector<1024x1024xbf16>
    %cst = arith.constant dense<0.000000e+00> : vector<2x1024xf32>
    %5 = tpu.matmul %3, %4, %cst {dimension_numbers = #tpu.dot_dimension_numbers<[1], [0], [0], [1], [0, 0, 1, 1], [], []>} : vector<2x1024xbf16>, vector<1024x1024xbf16>, vector<2x1024xf32> -> vector<2x1024xf32>
    %cst_4 = arith.constant dense<0.000000e+00> : vector<1024xf32>
    %6 = vector.multi_reduction <add>, %5, %cst_4 [0] : vector<2x1024xf32> to vector<1024xf32>
    %7 = vector.shape_cast %6 : vector<1024xf32> to vector<1x1024xf32>
    %cst_5 = arith.constant 2.000000e+00 : f32
    %8 = vector.broadcast %cst_5 : f32 to vector<1x1024xf32>
    %9 = arith.divf %7, %8 : vector<1x1024xf32>
    %10 = vector.broadcast %9 : vector<1x1024xf32> to vector<2x1024xf32>
    %11 = arith.subf %5, %10 : vector<2x1024xf32>
    %12 = arith.mulf %11, %11 : vector<2x1024xf32>
    %cst_6 = arith.constant dense<0.000000e+00> : vector<1024xf32>
    %13 = vector.multi_reduction <add>, %12, %cst_6 [0] : vector<2x1024xf32> to vector<1024xf32>
    %14 = vector.shape_cast %13 : vector<1024xf32> to vector<1x1024xf32>
    %cst_7 = arith.constant 2.000000e+00 : f32
    %15 = vector.broadcast %cst_7 : f32 to vector<1x1024xf32>
    %16 = arith.divf %14, %15 : vector<1x1024xf32>
    %17 = vector.broadcast %9 : vector<1x1024xf32> to vector<2x1024xf32>
    %18 = arith.subf %5, %17 : vector<2x1024xf32>
    %cst_8 = arith.constant 9.99999974E-6 : f32
    %19 = vector.broadcast %cst_8 : f32 to vector<1x1024xf32>
    %20 = arith.addf %16, %19 : vector<1x1024xf32>
    %21 = math.rsqrt %20 : vector<1x1024xf32>
    %22 = vector.broadcast %21 : vector<1x1024xf32> to vector<2x1024xf32>
    %23 = arith.mulf %18, %22 : vector<2x1024xf32>
    %cst_9 = arith.constant 0.000000e+00 : f32
    %24 = vector.broadcast %cst_9 : f32 to vector<2x1024xf32>
    %25 = arith.maximumf %23, %24 : vector<2x1024xf32>
    %26 = arith.truncf %25 : vector<2x1024xf32> to vector<2x1024xbf16>
    %c0_10 = arith.constant 0 : index
    %c0_11 = arith.constant 0 : index
    %27 = vector.load %arg4[%c0_10, %c0_11] : memref<2x1024xbf16, #tpu.memory_space<vmem>>, vector<2x1024xbf16>
    tpu.vector_store %arg4[%c0_10, %c0_11], %26 {strides = array<i32>} : memref<2x1024xbf16, #tpu.memory_space<vmem>>, vector<2x1024xbf16>,
    return
  }
  func.func @transform_0(%arg0: i32) -> (i32, i32) {
    %c0_i32 = arith.constant 0 : i32
    %c0_i32_0 = arith.constant 0 : i32
    %c0_i32_1 = arith.constant 0 : i32
    return %c0_i32, %c0_i32_0 : i32, i32
  }
  func.func @transform_1(%arg0: i32) -> (i32, i32) {
    %c0_i32 = arith.constant 0 : i32
    %c0_i32_0 = arith.constant 0 : i32
    %c0_i32_1 = arith.constant 0 : i32
    return %c0_i32, %c0_i32_0 : i32, i32
  }
  func.func @transform_2(%arg0: i32) -> (i32, i32) {
    %c0_i32 = arith.constant 0 : i32
    %c0_i32_0 = arith.constant 0 : i32
    return %c0_i32, %arg0 : i32, i32
  }
  func.func @transform_3(%arg0: i32) -> (i32, i32) {
    %c0_i32 = arith.constant 0 : i32
    %c0_i32_0 = arith.constant 0 : i32
    return %c0_i32, %arg0 : i32, i32
  }
}

module attributes {stable_mosaic.version = 11 : i64} {
  func.func @_deconv1_kernel(%arg0: i32, %arg1: memref<32x128xbf16, #tpu.memory_space<vmem>>, %arg2: memref<9x32x1xf32, #tpu.memory_space<vmem>>, %arg3: memref<4x512x64xbf16, #tpu.memory_space<vmem>>, %arg4: memref<32x256xbf16, #tpu.memory_space<vmem>>) attributes {dimension_semantics = [#tpu.dimension_semantics<arbitrary>], iteration_bounds = array<i64: 1>, scalar_prefetch = 0 : i64, scratch_operands = 0 : i64, tpu.core_type = #tpu.core_type<tc>, window_params = [{pipeline_mode = #tpu.pipeline_mode<synchronous>, transform_indices = @transform_0, window_bounds = array<i64: 32, 128>}, {pipeline_mode = #tpu.pipeline_mode<synchronous>, transform_indices = @transform_1, window_bounds = array<i64: 9, 32, 1>}, {pipeline_mode = #tpu.pipeline_mode<synchronous>, transform_indices = @transform_2, window_bounds = array<i64: 4, 512, 64>}, {pipeline_mode = #tpu.pipeline_mode<synchronous>, transform_indices = @transform_3, window_bounds = array<i64: 32, 256>}]} {
    %c0 = arith.constant 0 : index
    %c0_0 = arith.constant 0 : index
    %0 = vector.load %arg1[%c0, %c0_0] : memref<32x128xbf16, #tpu.memory_space<vmem>>, vector<32x128xbf16>
    %1 = arith.extf %0 : vector<32x128xbf16> to vector<32x128xf32>
    %2 = vector.extract_strided_slice %1 {offsets = [27, 0], sizes = [5, 128], strides = [1, 1]} : vector<32x128xf32> to vector<5x128xf32>
    %3 = vector.extract_strided_slice %1 {offsets = [0, 0], sizes = [27, 128], strides = [1, 1]} : vector<32x128xf32> to vector<27x128xf32>
    %4 = tpu.concatenate %2, %3 in 0 : vector<5x128xf32>, vector<27x128xf32> -> vector<32x128xf32>
    %c0_1 = arith.constant 0 : index
    %c0_2 = arith.constant 0 : index
    %c0_3 = arith.constant 0 : index
    %5 = vector.load %arg2[%c0_1, %c0_2, %c0_3] : memref<9x32x1xf32, #tpu.memory_space<vmem>>, vector<1x32x1xf32>
    %6 = vector.shape_cast %5 : vector<1x32x1xf32> to vector<32x1xf32>
    %7 = vector.broadcast %6 : vector<32x1xf32> to vector<32x128xf32>
    %8 = arith.mulf %4, %7 : vector<32x128xf32>
    %9 = vector.extract_strided_slice %1 {offsets = [28, 0], sizes = [4, 128], strides = [1, 1]} : vector<32x128xf32> to vector<4x128xf32>
    %10 = vector.extract_strided_slice %1 {offsets = [0, 0], sizes = [28, 128], strides = [1, 1]} : vector<32x128xf32> to vector<28x128xf32>
    %11 = tpu.concatenate %9, %10 in 0 : vector<4x128xf32>, vector<28x128xf32> -> vector<32x128xf32>
    %c1 = arith.constant 1 : index
    %c0_4 = arith.constant 0 : index
    %c0_5 = arith.constant 0 : index
    %12 = vector.load %arg2[%c1, %c0_4, %c0_5] : memref<9x32x1xf32, #tpu.memory_space<vmem>>, vector<1x32x1xf32>
    %13 = vector.shape_cast %12 : vector<1x32x1xf32> to vector<32x1xf32>
    %14 = vector.broadcast %13 : vector<32x1xf32> to vector<32x128xf32>
    %15 = arith.mulf %11, %14 : vector<32x128xf32>
    %16 = vector.extract_strided_slice %1 {offsets = [29, 0], sizes = [3, 128], strides = [1, 1]} : vector<32x128xf32> to vector<3x128xf32>
    %17 = vector.extract_strided_slice %1 {offsets = [0, 0], sizes = [29, 128], strides = [1, 1]} : vector<32x128xf32> to vector<29x128xf32>
    %18 = tpu.concatenate %16, %17 in 0 : vector<3x128xf32>, vector<29x128xf32> -> vector<32x128xf32>
    %c2 = arith.constant 2 : index
    %c0_6 = arith.constant 0 : index
    %c0_7 = arith.constant 0 : index
    %19 = vector.load %arg2[%c2, %c0_6, %c0_7] : memref<9x32x1xf32, #tpu.memory_space<vmem>>, vector<1x32x1xf32>
    %20 = vector.shape_cast %19 : vector<1x32x1xf32> to vector<32x1xf32>
    %21 = vector.broadcast %20 : vector<32x1xf32> to vector<32x128xf32>
    %22 = arith.mulf %18, %21 : vector<32x128xf32>
    %23 = vector.extract_strided_slice %1 {offsets = [31, 0], sizes = [1, 128], strides = [1, 1]} : vector<32x128xf32> to vector<1x128xf32>
    %24 = vector.extract_strided_slice %1 {offsets = [0, 0], sizes = [31, 128], strides = [1, 1]} : vector<32x128xf32> to vector<31x128xf32>
    %25 = tpu.concatenate %23, %24 in 0 : vector<1x128xf32>, vector<31x128xf32> -> vector<32x128xf32>
    %c3 = arith.constant 3 : index
    %c0_8 = arith.constant 0 : index
    %c0_9 = arith.constant 0 : index
    %26 = vector.load %arg2[%c3, %c0_8, %c0_9] : memref<9x32x1xf32, #tpu.memory_space<vmem>>, vector<1x32x1xf32>
    %27 = vector.shape_cast %26 : vector<1x32x1xf32> to vector<32x1xf32>
    %28 = vector.broadcast %27 : vector<32x1xf32> to vector<32x128xf32>
    %29 = arith.mulf %25, %28 : vector<32x128xf32>
    %c4 = arith.constant 4 : index
    %c0_10 = arith.constant 0 : index
    %c0_11 = arith.constant 0 : index
    %30 = vector.load %arg2[%c4, %c0_10, %c0_11] : memref<9x32x1xf32, #tpu.memory_space<vmem>>, vector<1x32x1xf32>
    %31 = vector.shape_cast %30 : vector<1x32x1xf32> to vector<32x1xf32>
    %32 = vector.broadcast %31 : vector<32x1xf32> to vector<32x128xf32>
    %33 = arith.mulf %1, %32 : vector<32x128xf32>
    %34 = vector.extract_strided_slice %1 {offsets = [1, 0], sizes = [31, 128], strides = [1, 1]} : vector<32x128xf32> to vector<31x128xf32>
    %35 = vector.extract_strided_slice %1 {offsets = [0, 0], sizes = [1, 128], strides = [1, 1]} : vector<32x128xf32> to vector<1x128xf32>
    %36 = tpu.concatenate %34, %35 in 0 : vector<31x128xf32>, vector<1x128xf32> -> vector<32x128xf32>
    %c5 = arith.constant 5 : index
    %c0_12 = arith.constant 0 : index
    %c0_13 = arith.constant 0 : index
    %37 = vector.load %arg2[%c5, %c0_12, %c0_13] : memref<9x32x1xf32, #tpu.memory_space<vmem>>, vector<1x32x1xf32>
    %38 = vector.shape_cast %37 : vector<1x32x1xf32> to vector<32x1xf32>
    %39 = vector.broadcast %38 : vector<32x1xf32> to vector<32x128xf32>
    %40 = arith.mulf %36, %39 : vector<32x128xf32>
    %41 = vector.extract_strided_slice %1 {offsets = [3, 0], sizes = [29, 128], strides = [1, 1]} : vector<32x128xf32> to vector<29x128xf32>
    %42 = vector.extract_strided_slice %1 {offsets = [0, 0], sizes = [3, 128], strides = [1, 1]} : vector<32x128xf32> to vector<3x128xf32>
    %43 = tpu.concatenate %41, %42 in 0 : vector<29x128xf32>, vector<3x128xf32> -> vector<32x128xf32>
    %c6 = arith.constant 6 : index
    %c0_14 = arith.constant 0 : index
    %c0_15 = arith.constant 0 : index
    %44 = vector.load %arg2[%c6, %c0_14, %c0_15] : memref<9x32x1xf32, #tpu.memory_space<vmem>>, vector<1x32x1xf32>
    %45 = vector.shape_cast %44 : vector<1x32x1xf32> to vector<32x1xf32>
    %46 = vector.broadcast %45 : vector<32x1xf32> to vector<32x128xf32>
    %47 = arith.mulf %43, %46 : vector<32x128xf32>
    %48 = vector.extract_strided_slice %1 {offsets = [4, 0], sizes = [28, 128], strides = [1, 1]} : vector<32x128xf32> to vector<28x128xf32>
    %49 = vector.extract_strided_slice %1 {offsets = [0, 0], sizes = [4, 128], strides = [1, 1]} : vector<32x128xf32> to vector<4x128xf32>
    %50 = tpu.concatenate %48, %49 in 0 : vector<28x128xf32>, vector<4x128xf32> -> vector<32x128xf32>
    %c7 = arith.constant 7 : index
    %c0_16 = arith.constant 0 : index
    %c0_17 = arith.constant 0 : index
    %51 = vector.load %arg2[%c7, %c0_16, %c0_17] : memref<9x32x1xf32, #tpu.memory_space<vmem>>, vector<1x32x1xf32>
    %52 = vector.shape_cast %51 : vector<1x32x1xf32> to vector<32x1xf32>
    %53 = vector.broadcast %52 : vector<32x1xf32> to vector<32x128xf32>
    %54 = arith.mulf %50, %53 : vector<32x128xf32>
    %55 = vector.extract_strided_slice %1 {offsets = [5, 0], sizes = [27, 128], strides = [1, 1]} : vector<32x128xf32> to vector<27x128xf32>
    %56 = vector.extract_strided_slice %1 {offsets = [0, 0], sizes = [5, 128], strides = [1, 1]} : vector<32x128xf32> to vector<5x128xf32>
    %57 = tpu.concatenate %55, %56 in 0 : vector<27x128xf32>, vector<5x128xf32> -> vector<32x128xf32>
    %c8 = arith.constant 8 : index
    %c0_18 = arith.constant 0 : index
    %c0_19 = arith.constant 0 : index
    %58 = vector.load %arg2[%c8, %c0_18, %c0_19] : memref<9x32x1xf32, #tpu.memory_space<vmem>>, vector<1x32x1xf32>
    %59 = vector.shape_cast %58 : vector<1x32x1xf32> to vector<32x1xf32>
    %60 = vector.broadcast %59 : vector<32x1xf32> to vector<32x128xf32>
    %61 = arith.mulf %57, %60 : vector<32x128xf32>
    %62 = tpu.concatenate %8, %15, %29, %33 in 1 : vector<32x128xf32>, vector<32x128xf32>, vector<32x128xf32>, vector<32x128xf32> -> vector<32x512xf32>
    %63 = arith.truncf %62 : vector<32x512xf32> to vector<32x512xbf16>
    %c0_20 = arith.constant 0 : index
    %c0_21 = arith.constant 0 : index
    %c0_22 = arith.constant 0 : index
    %64 = vector.load %arg3[%c0_20, %c0_21, %c0_22] : memref<4x512x64xbf16, #tpu.memory_space<vmem>>, vector<1x512x64xbf16>
    %65 = vector.shape_cast %64 : vector<1x512x64xbf16> to vector<512x64xbf16>
    %cst = arith.constant dense<0.000000e+00> : vector<32x64xf32>
    %66 = tpu.matmul %63, %65, %cst {dimension_numbers = #tpu.dot_dimension_numbers<[1], [0], [0], [1], [0, 0, 1, 1], [], []>} : vector<32x512xbf16>, vector<512x64xbf16>, vector<32x64xf32> -> vector<32x64xf32>
    %67 = tpu.concatenate %15, %22, %33, %40 in 1 : vector<32x128xf32>, vector<32x128xf32>, vector<32x128xf32>, vector<32x128xf32> -> vector<32x512xf32>
    %68 = arith.truncf %67 : vector<32x512xf32> to vector<32x512xbf16>
    %c1_23 = arith.constant 1 : index
    %c0_24 = arith.constant 0 : index
    %c0_25 = arith.constant 0 : index
    %69 = vector.load %arg3[%c1_23, %c0_24, %c0_25] : memref<4x512x64xbf16, #tpu.memory_space<vmem>>, vector<1x512x64xbf16>
    %70 = vector.shape_cast %69 : vector<1x512x64xbf16> to vector<512x64xbf16>
    %cst_26 = arith.constant dense<0.000000e+00> : vector<32x64xf32>
    %71 = tpu.matmul %68, %70, %cst_26 {dimension_numbers = #tpu.dot_dimension_numbers<[1], [0], [0], [1], [0, 0, 1, 1], [], []>} : vector<32x512xbf16>, vector<512x64xbf16>, vector<32x64xf32> -> vector<32x64xf32>
    %72 = tpu.concatenate %29, %33, %47, %54 in 1 : vector<32x128xf32>, vector<32x128xf32>, vector<32x128xf32>, vector<32x128xf32> -> vector<32x512xf32>
    %73 = arith.truncf %72 : vector<32x512xf32> to vector<32x512xbf16>
    %c2_27 = arith.constant 2 : index
    %c0_28 = arith.constant 0 : index
    %c0_29 = arith.constant 0 : index
    %74 = vector.load %arg3[%c2_27, %c0_28, %c0_29] : memref<4x512x64xbf16, #tpu.memory_space<vmem>>, vector<1x512x64xbf16>
    %75 = vector.shape_cast %74 : vector<1x512x64xbf16> to vector<512x64xbf16>
    %cst_30 = arith.constant dense<0.000000e+00> : vector<32x64xf32>
    %76 = tpu.matmul %73, %75, %cst_30 {dimension_numbers = #tpu.dot_dimension_numbers<[1], [0], [0], [1], [0, 0, 1, 1], [], []>} : vector<32x512xbf16>, vector<512x64xbf16>, vector<32x64xf32> -> vector<32x64xf32>
    %77 = tpu.concatenate %33, %40, %54, %61 in 1 : vector<32x128xf32>, vector<32x128xf32>, vector<32x128xf32>, vector<32x128xf32> -> vector<32x512xf32>
    %78 = arith.truncf %77 : vector<32x512xf32> to vector<32x512xbf16>
    %c3_31 = arith.constant 3 : index
    %c0_32 = arith.constant 0 : index
    %c0_33 = arith.constant 0 : index
    %79 = vector.load %arg3[%c3_31, %c0_32, %c0_33] : memref<4x512x64xbf16, #tpu.memory_space<vmem>>, vector<1x512x64xbf16>
    %80 = vector.shape_cast %79 : vector<1x512x64xbf16> to vector<512x64xbf16>
    %cst_34 = arith.constant dense<0.000000e+00> : vector<32x64xf32>
    %81 = tpu.matmul %78, %80, %cst_34 {dimension_numbers = #tpu.dot_dimension_numbers<[1], [0], [0], [1], [0, 0, 1, 1], [], []>} : vector<32x512xbf16>, vector<512x64xbf16>, vector<32x64xf32> -> vector<32x64xf32>
    %82 = arith.addf %66, %71 : vector<32x64xf32>
    %83 = arith.addf %82, %76 : vector<32x64xf32>
    %84 = arith.addf %83, %81 : vector<32x64xf32>
    %cst_35 = arith.constant dense<0.000000e+00> : vector<64xf32>
    %85 = vector.multi_reduction <add>, %84, %cst_35 [0] : vector<32x64xf32> to vector<64xf32>
    %86 = vector.shape_cast %85 : vector<64xf32> to vector<1x64xf32>
    %cst_36 = arith.constant 7.812500e-03 : f32
    %87 = vector.broadcast %cst_36 : f32 to vector<1x64xf32>
    %88 = arith.mulf %86, %87 : vector<1x64xf32>
    %89 = vector.broadcast %88 : vector<1x64xf32> to vector<32x64xf32>
    %90 = arith.subf %66, %89 : vector<32x64xf32>
    %91 = arith.mulf %90, %90 : vector<32x64xf32>
    %92 = vector.broadcast %88 : vector<1x64xf32> to vector<32x64xf32>
    %93 = arith.subf %71, %92 : vector<32x64xf32>
    %94 = arith.mulf %93, %93 : vector<32x64xf32>
    %95 = arith.addf %91, %94 : vector<32x64xf32>
    %96 = vector.broadcast %88 : vector<1x64xf32> to vector<32x64xf32>
    %97 = arith.subf %76, %96 : vector<32x64xf32>
    %98 = arith.mulf %97, %97 : vector<32x64xf32>
    %99 = arith.addf %95, %98 : vector<32x64xf32>
    %100 = vector.broadcast %88 : vector<1x64xf32> to vector<32x64xf32>
    %101 = arith.subf %81, %100 : vector<32x64xf32>
    %102 = arith.mulf %101, %101 : vector<32x64xf32>
    %103 = arith.addf %99, %102 : vector<32x64xf32>
    %cst_37 = arith.constant dense<0.000000e+00> : vector<64xf32>
    %104 = vector.multi_reduction <add>, %103, %cst_37 [0] : vector<32x64xf32> to vector<64xf32>
    %105 = vector.shape_cast %104 : vector<64xf32> to vector<1x64xf32>
    %cst_38 = arith.constant 7.812500e-03 : f32
    %106 = vector.broadcast %cst_38 : f32 to vector<1x64xf32>
    %107 = arith.mulf %105, %106 : vector<1x64xf32>
    %cst_39 = arith.constant 9.99999974E-6 : f32
    %108 = vector.broadcast %cst_39 : f32 to vector<1x64xf32>
    %109 = arith.addf %107, %108 : vector<1x64xf32>
    %110 = math.rsqrt %109 : vector<1x64xf32>
    %111 = vector.broadcast %88 : vector<1x64xf32> to vector<32x64xf32>
    %112 = arith.subf %66, %111 : vector<32x64xf32>
    %113 = vector.broadcast %110 : vector<1x64xf32> to vector<32x64xf32>
    %114 = arith.mulf %112, %113 : vector<32x64xf32>
    %cst_40 = arith.constant 0.000000e+00 : f32
    %115 = vector.broadcast %cst_40 : f32 to vector<32x64xf32>
    %116 = arith.maximumf %114, %115 : vector<32x64xf32>
    %117 = vector.broadcast %88 : vector<1x64xf32> to vector<32x64xf32>
    %118 = arith.subf %71, %117 : vector<32x64xf32>
    %119 = vector.broadcast %110 : vector<1x64xf32> to vector<32x64xf32>
    %120 = arith.mulf %118, %119 : vector<32x64xf32>
    %cst_41 = arith.constant 0.000000e+00 : f32
    %121 = vector.broadcast %cst_41 : f32 to vector<32x64xf32>
    %122 = arith.maximumf %120, %121 : vector<32x64xf32>
    %123 = vector.broadcast %88 : vector<1x64xf32> to vector<32x64xf32>
    %124 = arith.subf %76, %123 : vector<32x64xf32>
    %125 = vector.broadcast %110 : vector<1x64xf32> to vector<32x64xf32>
    %126 = arith.mulf %124, %125 : vector<32x64xf32>
    %cst_42 = arith.constant 0.000000e+00 : f32
    %127 = vector.broadcast %cst_42 : f32 to vector<32x64xf32>
    %128 = arith.maximumf %126, %127 : vector<32x64xf32>
    %129 = vector.broadcast %88 : vector<1x64xf32> to vector<32x64xf32>
    %130 = arith.subf %81, %129 : vector<32x64xf32>
    %131 = vector.broadcast %110 : vector<1x64xf32> to vector<32x64xf32>
    %132 = arith.mulf %130, %131 : vector<32x64xf32>
    %cst_43 = arith.constant 0.000000e+00 : f32
    %133 = vector.broadcast %cst_43 : f32 to vector<32x64xf32>
    %134 = arith.maximumf %132, %133 : vector<32x64xf32>
    %135 = tpu.concatenate %116, %122, %128, %134 in 1 : vector<32x64xf32>, vector<32x64xf32>, vector<32x64xf32>, vector<32x64xf32> -> vector<32x256xf32>
    %136 = arith.truncf %135 : vector<32x256xf32> to vector<32x256xbf16>
    %c0_44 = arith.constant 0 : index
    %c0_45 = arith.constant 0 : index
    %137 = vector.load %arg4[%c0_44, %c0_45] : memref<32x256xbf16, #tpu.memory_space<vmem>>, vector<32x256xbf16>
    tpu.vector_store %arg4[%c0_44, %c0_45], %136 {strides = array<i32>} : memref<32x256xbf16, #tpu.memory_space<vmem>>, vector<32x256xbf16>,
    return
  }
  func.func @transform_0(%arg0: i32) -> (i32, i32) {
    %c0_i32 = arith.constant 0 : i32
    %c0_i32_0 = arith.constant 0 : i32
    %c0_i32_1 = arith.constant 0 : i32
    return %c0_i32, %c0_i32_0 : i32, i32
  }
  func.func @transform_1(%arg0: i32) -> (i32, i32, i32) {
    %c0_i32 = arith.constant 0 : i32
    %c0_i32_0 = arith.constant 0 : i32
    %c0_i32_1 = arith.constant 0 : i32
    %c0_i32_2 = arith.constant 0 : i32
    return %c0_i32, %c0_i32_0, %c0_i32_1 : i32, i32, i32
  }
  func.func @transform_2(%arg0: i32) -> (i32, i32, i32) {
    %c0_i32 = arith.constant 0 : i32
    %c0_i32_0 = arith.constant 0 : i32
    %c0_i32_1 = arith.constant 0 : i32
    %c0_i32_2 = arith.constant 0 : i32
    return %c0_i32, %c0_i32_0, %c0_i32_1 : i32, i32, i32
  }
  func.func @transform_3(%arg0: i32) -> (i32, i32) {
    %c0_i32 = arith.constant 0 : i32
    %c0_i32_0 = arith.constant 0 : i32
    %c0_i32_1 = arith.constant 0 : i32
    return %c0_i32, %c0_i32_0 : i32, i32
  }
}

module attributes {stable_mosaic.version = 11 : i64} {
  func.func @_deconv2_kernel(%arg0: i32, %arg1: memref<64x128xbf16, #tpu.memory_space<vmem>>, %arg2: memref<9x1x128xbf16, #tpu.memory_space<vmem>>, %arg3: memref<4x1x256xbf16, #tpu.memory_space<vmem>>, %arg4: memref<1x1xf32, #tpu.memory_space<vmem>>, %arg5: memref<4x1x128xf32, #tpu.memory_space<vmem>>) attributes {dimension_semantics = [#tpu.dimension_semantics<arbitrary>], iteration_bounds = array<i64: 1>, scalar_prefetch = 0 : i64, scratch_operands = 0 : i64, tpu.core_type = #tpu.core_type<tc>, window_params = [{pipeline_mode = #tpu.pipeline_mode<synchronous>, transform_indices = @transform_0, window_bounds = array<i64: 64, 128>}, {pipeline_mode = #tpu.pipeline_mode<synchronous>, transform_indices = @transform_1, window_bounds = array<i64: 9, 1, 128>}, {pipeline_mode = #tpu.pipeline_mode<synchronous>, transform_indices = @transform_2, window_bounds = array<i64: 4, 1, 256>}, {pipeline_mode = #tpu.pipeline_mode<synchronous>, transform_indices = @transform_3, window_bounds = array<i64: 1, 1>}, {pipeline_mode = #tpu.pipeline_mode<synchronous>, transform_indices = @transform_4, window_bounds = array<i64: 4, 1, 128>}]} {
    %c0 = arith.constant 0 : index
    %c0_0 = arith.constant 0 : index
    %0 = vector.load %arg1[%c0, %c0_0] : memref<64x128xbf16, #tpu.memory_space<vmem>>, vector<64x128xbf16>
    %1 = vector.extract_strided_slice %0 {offsets = [0, 119], sizes = [64, 9], strides = [1, 1]} : vector<64x128xbf16> to vector<64x9xbf16>
    %2 = vector.extract_strided_slice %0 {offsets = [0, 0], sizes = [64, 119], strides = [1, 1]} : vector<64x128xbf16> to vector<64x119xbf16>
    %3 = tpu.concatenate %1, %2 in 1 : vector<64x9xbf16>, vector<64x119xbf16> -> vector<64x128xbf16>
    %c0_1 = arith.constant 0 : index
    %c0_2 = arith.constant 0 : index
    %c0_3 = arith.constant 0 : index
    %4 = vector.load %arg2[%c0_1, %c0_2, %c0_3] : memref<9x1x128xbf16, #tpu.memory_space<vmem>>, vector<1x1x128xbf16>
    %5 = vector.shape_cast %4 : vector<1x1x128xbf16> to vector<1x128xbf16>
    %6 = vector.broadcast %5 : vector<1x128xbf16> to vector<64x128xbf16>
    %7 = arith.mulf %3, %6 : vector<64x128xbf16>
    %8 = vector.extract_strided_slice %0 {offsets = [0, 120], sizes = [64, 8], strides = [1, 1]} : vector<64x128xbf16> to vector<64x8xbf16>
    %9 = vector.extract_strided_slice %0 {offsets = [0, 0], sizes = [64, 120], strides = [1, 1]} : vector<64x128xbf16> to vector<64x120xbf16>
    %10 = tpu.concatenate %8, %9 in 1 : vector<64x8xbf16>, vector<64x120xbf16> -> vector<64x128xbf16>
    %c1 = arith.constant 1 : index
    %c0_4 = arith.constant 0 : index
    %c0_5 = arith.constant 0 : index
    %11 = vector.load %arg2[%c1, %c0_4, %c0_5] : memref<9x1x128xbf16, #tpu.memory_space<vmem>>, vector<1x1x128xbf16>
    %12 = vector.shape_cast %11 : vector<1x1x128xbf16> to vector<1x128xbf16>
    %13 = vector.broadcast %12 : vector<1x128xbf16> to vector<64x128xbf16>
    %14 = arith.mulf %10, %13 : vector<64x128xbf16>
    %15 = vector.extract_strided_slice %0 {offsets = [0, 121], sizes = [64, 7], strides = [1, 1]} : vector<64x128xbf16> to vector<64x7xbf16>
    %16 = vector.extract_strided_slice %0 {offsets = [0, 0], sizes = [64, 121], strides = [1, 1]} : vector<64x128xbf16> to vector<64x121xbf16>
    %17 = tpu.concatenate %15, %16 in 1 : vector<64x7xbf16>, vector<64x121xbf16> -> vector<64x128xbf16>
    %c2 = arith.constant 2 : index
    %c0_6 = arith.constant 0 : index
    %c0_7 = arith.constant 0 : index
    %18 = vector.load %arg2[%c2, %c0_6, %c0_7] : memref<9x1x128xbf16, #tpu.memory_space<vmem>>, vector<1x1x128xbf16>
    %19 = vector.shape_cast %18 : vector<1x1x128xbf16> to vector<1x128xbf16>
    %20 = vector.broadcast %19 : vector<1x128xbf16> to vector<64x128xbf16>
    %21 = arith.mulf %17, %20 : vector<64x128xbf16>
    %22 = vector.extract_strided_slice %0 {offsets = [0, 127], sizes = [64, 1], strides = [1, 1]} : vector<64x128xbf16> to vector<64x1xbf16>
    %23 = vector.extract_strided_slice %0 {offsets = [0, 0], sizes = [64, 127], strides = [1, 1]} : vector<64x128xbf16> to vector<64x127xbf16>
    %24 = tpu.concatenate %22, %23 in 1 : vector<64x1xbf16>, vector<64x127xbf16> -> vector<64x128xbf16>
    %c3 = arith.constant 3 : index
    %c0_8 = arith.constant 0 : index
    %c0_9 = arith.constant 0 : index
    %25 = vector.load %arg2[%c3, %c0_8, %c0_9] : memref<9x1x128xbf16, #tpu.memory_space<vmem>>, vector<1x1x128xbf16>
    %26 = vector.shape_cast %25 : vector<1x1x128xbf16> to vector<1x128xbf16>
    %27 = vector.broadcast %26 : vector<1x128xbf16> to vector<64x128xbf16>
    %28 = arith.mulf %24, %27 : vector<64x128xbf16>
    %c4 = arith.constant 4 : index
    %c0_10 = arith.constant 0 : index
    %c0_11 = arith.constant 0 : index
    %29 = vector.load %arg2[%c4, %c0_10, %c0_11] : memref<9x1x128xbf16, #tpu.memory_space<vmem>>, vector<1x1x128xbf16>
    %30 = vector.shape_cast %29 : vector<1x1x128xbf16> to vector<1x128xbf16>
    %31 = vector.broadcast %30 : vector<1x128xbf16> to vector<64x128xbf16>
    %32 = arith.mulf %0, %31 : vector<64x128xbf16>
    %33 = vector.extract_strided_slice %0 {offsets = [0, 1], sizes = [64, 127], strides = [1, 1]} : vector<64x128xbf16> to vector<64x127xbf16>
    %34 = vector.extract_strided_slice %0 {offsets = [0, 0], sizes = [64, 1], strides = [1, 1]} : vector<64x128xbf16> to vector<64x1xbf16>
    %35 = tpu.concatenate %33, %34 in 1 : vector<64x127xbf16>, vector<64x1xbf16> -> vector<64x128xbf16>
    %c5 = arith.constant 5 : index
    %c0_12 = arith.constant 0 : index
    %c0_13 = arith.constant 0 : index
    %36 = vector.load %arg2[%c5, %c0_12, %c0_13] : memref<9x1x128xbf16, #tpu.memory_space<vmem>>, vector<1x1x128xbf16>
    %37 = vector.shape_cast %36 : vector<1x1x128xbf16> to vector<1x128xbf16>
    %38 = vector.broadcast %37 : vector<1x128xbf16> to vector<64x128xbf16>
    %39 = arith.mulf %35, %38 : vector<64x128xbf16>
    %40 = vector.extract_strided_slice %0 {offsets = [0, 7], sizes = [64, 121], strides = [1, 1]} : vector<64x128xbf16> to vector<64x121xbf16>
    %41 = vector.extract_strided_slice %0 {offsets = [0, 0], sizes = [64, 7], strides = [1, 1]} : vector<64x128xbf16> to vector<64x7xbf16>
    %42 = tpu.concatenate %40, %41 in 1 : vector<64x121xbf16>, vector<64x7xbf16> -> vector<64x128xbf16>
    %c6 = arith.constant 6 : index
    %c0_14 = arith.constant 0 : index
    %c0_15 = arith.constant 0 : index
    %43 = vector.load %arg2[%c6, %c0_14, %c0_15] : memref<9x1x128xbf16, #tpu.memory_space<vmem>>, vector<1x1x128xbf16>
    %44 = vector.shape_cast %43 : vector<1x1x128xbf16> to vector<1x128xbf16>
    %45 = vector.broadcast %44 : vector<1x128xbf16> to vector<64x128xbf16>
    %46 = arith.mulf %42, %45 : vector<64x128xbf16>
    %47 = vector.extract_strided_slice %0 {offsets = [0, 8], sizes = [64, 120], strides = [1, 1]} : vector<64x128xbf16> to vector<64x120xbf16>
    %48 = vector.extract_strided_slice %0 {offsets = [0, 0], sizes = [64, 8], strides = [1, 1]} : vector<64x128xbf16> to vector<64x8xbf16>
    %49 = tpu.concatenate %47, %48 in 1 : vector<64x120xbf16>, vector<64x8xbf16> -> vector<64x128xbf16>
    %c7 = arith.constant 7 : index
    %c0_16 = arith.constant 0 : index
    %c0_17 = arith.constant 0 : index
    %50 = vector.load %arg2[%c7, %c0_16, %c0_17] : memref<9x1x128xbf16, #tpu.memory_space<vmem>>, vector<1x1x128xbf16>
    %51 = vector.shape_cast %50 : vector<1x1x128xbf16> to vector<1x128xbf16>
    %52 = vector.broadcast %51 : vector<1x128xbf16> to vector<64x128xbf16>
    %53 = arith.mulf %49, %52 : vector<64x128xbf16>
    %54 = vector.extract_strided_slice %0 {offsets = [0, 9], sizes = [64, 119], strides = [1, 1]} : vector<64x128xbf16> to vector<64x119xbf16>
    %55 = vector.extract_strided_slice %0 {offsets = [0, 0], sizes = [64, 9], strides = [1, 1]} : vector<64x128xbf16> to vector<64x9xbf16>
    %56 = tpu.concatenate %54, %55 in 1 : vector<64x119xbf16>, vector<64x9xbf16> -> vector<64x128xbf16>
    %c8 = arith.constant 8 : index
    %c0_18 = arith.constant 0 : index
    %c0_19 = arith.constant 0 : index
    %57 = vector.load %arg2[%c8, %c0_18, %c0_19] : memref<9x1x128xbf16, #tpu.memory_space<vmem>>, vector<1x1x128xbf16>
    %58 = vector.shape_cast %57 : vector<1x1x128xbf16> to vector<1x128xbf16>
    %59 = vector.broadcast %58 : vector<1x128xbf16> to vector<64x128xbf16>
    %60 = arith.mulf %56, %59 : vector<64x128xbf16>
    %c0_20 = arith.constant 0 : index
    %c0_21 = arith.constant 0 : index
    %61 = vector.load %arg4[%c0_20, %c0_21] : memref<1x1xf32, #tpu.memory_space<vmem>>, vector<1x1xf32>
    %62 = tpu.concatenate %7, %14, %28, %32 in 0 : vector<64x128xbf16>, vector<64x128xbf16>, vector<64x128xbf16>, vector<64x128xbf16> -> vector<256x128xbf16>
    %c0_22 = arith.constant 0 : index
    %c0_23 = arith.constant 0 : index
    %c0_24 = arith.constant 0 : index
    %63 = vector.load %arg3[%c0_22, %c0_23, %c0_24] : memref<4x1x256xbf16, #tpu.memory_space<vmem>>, vector<1x1x256xbf16>
    %64 = vector.shape_cast %63 : vector<1x1x256xbf16> to vector<1x256xbf16>
    %cst = arith.constant dense<0.000000e+00> : vector<1x128xf32>
    %65 = tpu.matmul %64, %62, %cst {dimension_numbers = #tpu.dot_dimension_numbers<[1], [0], [0], [1], [0, 0, 1, 1], [], []>} : vector<1x256xbf16>, vector<256x128xbf16>, vector<1x128xf32> -> vector<1x128xf32>
    %66 = vector.broadcast %61 : vector<1x1xf32> to vector<1x128xf32>
    %67 = arith.addf %65, %66 : vector<1x128xf32>
    %68 = math.tanh %67 : vector<1x128xf32>
    %c0_25 = arith.constant 0 : index
    %c0_26 = arith.constant 0 : index
    %c0_27 = arith.constant 0 : index
    %69 = vector.load %arg5[%c0_25, %c0_26, %c0_27] : memref<4x1x128xf32, #tpu.memory_space<vmem>>, vector<1x1x128xf32>
    %70 = vector.shape_cast %69 : vector<1x1x128xf32> to vector<1x128xf32>
    %71 = vector.shape_cast %68 : vector<1x128xf32> to vector<1x1x128xf32>
    tpu.vector_store %arg5[%c0_25, %c0_26, %c0_27], %71 {strides = array<i32>} : memref<4x1x128xf32, #tpu.memory_space<vmem>>, vector<1x1x128xf32>,
    %72 = tpu.concatenate %14, %21, %32, %39 in 0 : vector<64x128xbf16>, vector<64x128xbf16>, vector<64x128xbf16>, vector<64x128xbf16> -> vector<256x128xbf16>
    %c1_28 = arith.constant 1 : index
    %c0_29 = arith.constant 0 : index
    %c0_30 = arith.constant 0 : index
    %73 = vector.load %arg3[%c1_28, %c0_29, %c0_30] : memref<4x1x256xbf16, #tpu.memory_space<vmem>>, vector<1x1x256xbf16>
    %74 = vector.shape_cast %73 : vector<1x1x256xbf16> to vector<1x256xbf16>
    %cst_31 = arith.constant dense<0.000000e+00> : vector<1x128xf32>
    %75 = tpu.matmul %74, %72, %cst_31 {dimension_numbers = #tpu.dot_dimension_numbers<[1], [0], [0], [1], [0, 0, 1, 1], [], []>} : vector<1x256xbf16>, vector<256x128xbf16>, vector<1x128xf32> -> vector<1x128xf32>
    %76 = vector.broadcast %61 : vector<1x1xf32> to vector<1x128xf32>
    %77 = arith.addf %75, %76 : vector<1x128xf32>
    %78 = math.tanh %77 : vector<1x128xf32>
    %c1_32 = arith.constant 1 : index
    %c0_33 = arith.constant 0 : index
    %c0_34 = arith.constant 0 : index
    %79 = vector.load %arg5[%c1_32, %c0_33, %c0_34] : memref<4x1x128xf32, #tpu.memory_space<vmem>>, vector<1x1x128xf32>
    %80 = vector.shape_cast %79 : vector<1x1x128xf32> to vector<1x128xf32>
    %81 = vector.shape_cast %78 : vector<1x128xf32> to vector<1x1x128xf32>
    tpu.vector_store %arg5[%c1_32, %c0_33, %c0_34], %81 {strides = array<i32>} : memref<4x1x128xf32, #tpu.memory_space<vmem>>, vector<1x1x128xf32>,
    %82 = tpu.concatenate %28, %32, %46, %53 in 0 : vector<64x128xbf16>, vector<64x128xbf16>, vector<64x128xbf16>, vector<64x128xbf16> -> vector<256x128xbf16>
    %c2_35 = arith.constant 2 : index
    %c0_36 = arith.constant 0 : index
    %c0_37 = arith.constant 0 : index
    %83 = vector.load %arg3[%c2_35, %c0_36, %c0_37] : memref<4x1x256xbf16, #tpu.memory_space<vmem>>, vector<1x1x256xbf16>
    %84 = vector.shape_cast %83 : vector<1x1x256xbf16> to vector<1x256xbf16>
    %cst_38 = arith.constant dense<0.000000e+00> : vector<1x128xf32>
    %85 = tpu.matmul %84, %82, %cst_38 {dimension_numbers = #tpu.dot_dimension_numbers<[1], [0], [0], [1], [0, 0, 1, 1], [], []>} : vector<1x256xbf16>, vector<256x128xbf16>, vector<1x128xf32> -> vector<1x128xf32>
    %86 = vector.broadcast %61 : vector<1x1xf32> to vector<1x128xf32>
    %87 = arith.addf %85, %86 : vector<1x128xf32>
    %88 = math.tanh %87 : vector<1x128xf32>
    %c2_39 = arith.constant 2 : index
    %c0_40 = arith.constant 0 : index
    %c0_41 = arith.constant 0 : index
    %89 = vector.load %arg5[%c2_39, %c0_40, %c0_41] : memref<4x1x128xf32, #tpu.memory_space<vmem>>, vector<1x1x128xf32>
    %90 = vector.shape_cast %89 : vector<1x1x128xf32> to vector<1x128xf32>
    %91 = vector.shape_cast %88 : vector<1x128xf32> to vector<1x1x128xf32>
    tpu.vector_store %arg5[%c2_39, %c0_40, %c0_41], %91 {strides = array<i32>} : memref<4x1x128xf32, #tpu.memory_space<vmem>>, vector<1x1x128xf32>,
    %92 = tpu.concatenate %32, %39, %53, %60 in 0 : vector<64x128xbf16>, vector<64x128xbf16>, vector<64x128xbf16>, vector<64x128xbf16> -> vector<256x128xbf16>
    %c3_42 = arith.constant 3 : index
    %c0_43 = arith.constant 0 : index
    %c0_44 = arith.constant 0 : index
    %93 = vector.load %arg3[%c3_42, %c0_43, %c0_44] : memref<4x1x256xbf16, #tpu.memory_space<vmem>>, vector<1x1x256xbf16>
    %94 = vector.shape_cast %93 : vector<1x1x256xbf16> to vector<1x256xbf16>
    %cst_45 = arith.constant dense<0.000000e+00> : vector<1x128xf32>
    %95 = tpu.matmul %94, %92, %cst_45 {dimension_numbers = #tpu.dot_dimension_numbers<[1], [0], [0], [1], [0, 0, 1, 1], [], []>} : vector<1x256xbf16>, vector<256x128xbf16>, vector<1x128xf32> -> vector<1x128xf32>
    %96 = vector.broadcast %61 : vector<1x1xf32> to vector<1x128xf32>
    %97 = arith.addf %95, %96 : vector<1x128xf32>
    %98 = math.tanh %97 : vector<1x128xf32>
    %c3_46 = arith.constant 3 : index
    %c0_47 = arith.constant 0 : index
    %c0_48 = arith.constant 0 : index
    %99 = vector.load %arg5[%c3_46, %c0_47, %c0_48] : memref<4x1x128xf32, #tpu.memory_space<vmem>>, vector<1x1x128xf32>
    %100 = vector.shape_cast %99 : vector<1x1x128xf32> to vector<1x128xf32>
    %101 = vector.shape_cast %98 : vector<1x128xf32> to vector<1x1x128xf32>
    tpu.vector_store %arg5[%c3_46, %c0_47, %c0_48], %101 {strides = array<i32>} : memref<4x1x128xf32, #tpu.memory_space<vmem>>, vector<1x1x128xf32>,
    return
  }
  func.func @transform_0(%arg0: i32) -> (i32, i32) {
    %c0_i32 = arith.constant 0 : i32
    %c0_i32_0 = arith.constant 0 : i32
    %c0_i32_1 = arith.constant 0 : i32
    return %c0_i32, %c0_i32_0 : i32, i32
  }
  func.func @transform_1(%arg0: i32) -> (i32, i32, i32) {
    %c0_i32 = arith.constant 0 : i32
    %c0_i32_0 = arith.constant 0 : i32
    %c0_i32_1 = arith.constant 0 : i32
    %c0_i32_2 = arith.constant 0 : i32
    return %c0_i32, %c0_i32_0, %c0_i32_1 : i32, i32, i32
  }
  func.func @transform_2(%arg0: i32) -> (i32, i32, i32) {
    %c0_i32 = arith.constant 0 : i32
    %c0_i32_0 = arith.constant 0 : i32
    %c0_i32_1 = arith.constant 0 : i32
    %c0_i32_2 = arith.constant 0 : i32
    return %c0_i32, %c0_i32_0, %c0_i32_1 : i32, i32, i32
  }
  func.func @transform_3(%arg0: i32) -> (i32, i32) {
    %c0_i32 = arith.constant 0 : i32
    %c0_i32_0 = arith.constant 0 : i32
    %c0_i32_1 = arith.constant 0 : i32
    return %c0_i32, %c0_i32_0 : i32, i32
  }
  func.func @transform_4(%arg0: i32) -> (i32, i32, i32) {
    %c0_i32 = arith.constant 0 : i32
    %c0_i32_0 = arith.constant 0 : i32
    %c0_i32_1 = arith.constant 0 : i32
    %c0_i32_2 = arith.constant 0 : i32
    return %c0_i32, %c0_i32_0, %c0_i32_1 : i32, i32, i32
  }
}

</mosaic_0001>

<bundles_post_ra>
// kernel: generator_forward.5
= control target key start
LH: loop header
LB: loop body
LE: loop exit
PB: predicated region body
PF: predicated region fallthrough
CT: control target
= control target key end

     0   :  { %v68_v0 = vlaneseq  ;;  %s754_s23 = smov 7   ;;  %s755_s24 = smov 127   ;;  %v757_v31 = vmov 1966171168   ;;  %v763_v51 = vmov 0   ;;  %s1025_s0 = inlined_call_operand.vmem [shape: bf16[64,128], index: 0, kind: input, shape index: {}]   ;;  %s1026_s1 = inlined_call_operand.vmem [shape: bf16[9,1,128], index: 1, kind: input, shape index: {}]   ;;  %s1027_s2 = inlined_call_operand.vmem [shape: bf16[4,1,256], index: 2, kind: input, shape index: {}]   ;;  %s1028_s3 = inlined_call_operand.<no memory space> [shape: f32[1,1], index: 3, kind: input, shape index: {}]   ;;  %s1029_s4 = inlined_call_operand.vmem [shape: f32[4,1,128], index: 4, kind: output, shape index: {}]  }
   0x1   :  { %v26_v1 = vld [vmem:[%s1025_s0 + $0x18] sm:$0xf]  ;;  %v27_v2 = vld [vmem:[%s1025_s0 + $0x1c] sm:$0xf]  ;;  %v24_v4 = vld [vmem:[%s1025_s0 + $0x10] sm:$0xf]  ;;  %v345_v32 = vunpack.c.l.s4 %v757_v31  ;;  %741 = vset.pattern.permute.xlu0 %v763_v51  ;;  %v9_v52 = vstv %s1028_s3 }
   0x2   :  { %v795_v3 = vcombine.low %v26_v1, %v27_v2  ;;  %v25_v5 = vld [vmem:[%s1025_s0 + $0x14] sm:$0xf]  ;;  %v69_v7 = vshrl.u32 %v68_v0, 7  ;;  %v623_v9 = vld [vmem:[%s1026_s1 + $0x4] sm:$0x1]  ;;  %s756_s27 = smov 8  }
   0x3   :  { %v807_v6 = vcombine.low %v24_v4, %v25_v5  ;;  %v166_v10 = vpack.i.b16 %v623_v9, %v623_v9  ;;  %v22_v11 = vld [vmem:[%s1025_s0 + $0x8] sm:$0xf]  ;;  %v23_v12 = vld [vmem:[%s1025_s0 + $0xc] sm:$0xf]  ;;  %v20_v16 = vld [vmem:[%s1025_s0] sm:$0xf]  ;;  %v346_v33 = vunpack.c.0.s8 %v345_v32 }
   0x4   :  { %111 = vrot.lane.b32.xlu1 %v795_v3, %s754_s23  ;;  %190 = vrot.lane.b32.xlu0 %v795_v3, %s755_s24  ;;  %v809_v8 = vsub.s32 0, %v69_v7  ;;  %v829_v15 = vcombine.low %v22_v11, %v23_v12  ;;  %v21_v17 = vld [vmem:[%s1025_s0 + $0x4] sm:$0xf]  ;;  %s758_s11 = smov 1   ;;  %s759_s12 = smov 9  }
   0x5   :  { %v616_v28 = vcombine.low %v20_v16, %v21_v17  ;;  %v855_v34 = vsub.s32 %v346_v33, %v69_v7  ;;  %v860_v35 = vld.sshfl [vmem:[%s1027_s2 + $0x2] sm:$0x11 pattern:$0x75316420]  ;;  %s760_s15 = smov 120   ;;  %s761_s16 = smov 119  }
   0x6   :  { %v171_v13 = vrot.slane %v166_v10, %v809_v8  ;;  %v412_v36 = vcombine.high %v860_v35, %v860_v35  ;;  %v869_v37 = vld.sshfl [vmem:[%s1027_s2] sm:$0x11 pattern:$0x75316420]  ;;  %s762_s17 = smov 121  }
   0x7   :  { %v343_v38 = vcombine.high %v869_v37, %v869_v37  ;;  %v419_v40 = vrot.slane %v860_v35, %v855_v34  ;;  %v350_v42 = vrot.slane %v869_v37, %v855_v34  ;;  %v894_v43 = vld.sshfl [vmem:[%s1027_s2 + $0x4] sm:$0x11 pattern:$0x75316420]  ;;  %10 = vst [vmem:[#allocation2] sm:$0x1] %v9_v52 }
   0x8   :  { %82 = vrot.lane.b32.xlu0 %v795_v3, %s756_s27  ;;  %188 = vrot.lane.b32.xlu1 %v807_v6, %s755_s24  ;;  %v624_v14 = vcombine.low %v171_v13, %v171_v13  ;;  %v426_v39 = vrot.slane %v412_v36, %v855_v34  ;;  %v482_v44 = vcombine.high %v894_v43, %v894_v43  ;;  %v901_v45 = vld.sshfl [vmem:[%s1027_s2 + $0x6] sm:$0x11 pattern:$0x75316420]  ;;  %v621_v54 = vld [vmem:[%s1026_s1 + $0x2] sm:$0x1] }
   0x9   :  { %v357_v41 = vrot.slane %v343_v38, %v855_v34  ;;  %v552_v46 = vcombine.high %v901_v45, %v901_v45  ;;  %v489_v48 = vrot.slane %v894_v43, %v855_v34  ;;  %v559_v50 = vrot.slane %v901_v45, %v855_v34  ;;  %v625_v55 = vld [vmem:[%s1026_s1 + $0x5] sm:$0x1]  ;;  %v620_v58 = vld [vmem:[%s1026_s1 + $0x1] sm:$0x1]  ;;  %v626_v35 = vld [vmem:[%s1026_s1 + $0x6] sm:$0x1] }
   0xa   :  { %v182_v18 = vmul.bf16 %v624_v14, %v26_v1  ;;  %v183_v19 = vmul.bf16 %v624_v14, %v27_v2  ;;  %v180_v20 = vmul.bf16 %v624_v14, %v24_v4  ;;  %v181_v21 = vmul.bf16 %v624_v14, %v25_v5  ;;  %461 = vmatprep.mubr.bf16.mxu1 %v426_v39 }
   0xb   :  { %v178_v22 = vmul.bf16 %v624_v14, %v22_v11  ;;  %v179_v23 = vmul.bf16 %v624_v14, %v23_v12  ;;  %v176_v24 = vmul.bf16 %v624_v14, %v20_v16  ;;  %v177_v25 = vmul.bf16 %v624_v14, %v21_v17  ;;  %392 = vmatprep.mubr.bf16.mxu0 %v357_v41  ;;  %v622_v16 = vld [vmem:[%s1026_s1 + $0x3] sm:$0x1]  ;;  %v64_v17 = vld [vmem:[%s1026_s1] sm:$0x1] }
   0xc   :  { %80 = vrot.lane.b32.xlu0 %v807_v6, %s756_s27  ;;  %109 = vrot.lane.b32.xlu1 %v807_v6, %s754_s23  ;;  %v837_v26 = vcombine.low %v182_v18, %v183_v19  ;;  %v839_v27 = vcombine.low %v180_v20, %v181_v21  ;;  %v906_v47 = vrot.slane %v482_v44, %v855_v34 }
   0xd   :  { %v845_v29 = vcombine.low %v178_v22, %v179_v23  ;;  %v847_v30 = vcombine.low %v176_v24, %v177_v25  ;;  %v912_v49 = vrot.slane %v552_v46, %v855_v34  ;;  %v124_v56 = vpack.i.b16 %v621_v54, %v621_v54  ;;  %v628_v54 = vld [vmem:[%s1026_s1 + $0x8] sm:$0x1] }
   0xe   :  { %643 = vmatprep.subr.bf16.mxu0 %v837_v26  ;;  %v300_v53 = vld [vmem:[#allocation2] sm:$0x1]  ;;  %v203_v57 = vpack.i.b16 %v625_v55, %v625_v55  ;;  %v95_v61 = vpack.i.b16 %v620_v58, %v620_v58  ;;  %v153_v22 = vpack.i.b16 %v622_v16, %v622_v16  ;;  %v66_v23 = vpack.i.b16 %v64_v17, %v64_v17 }
   0xf   :  { %v129_v59 = vrot.slane %v124_v56, %v809_v8 }
  0x10   :  { %78 = vrot.lane.b32.xlu1 %v829_v15, %s756_s27  ;;  %186 = vrot.lane.b32.xlu0 %v829_v15, %s755_s24  ;;  %v208_v60 = vrot.slane %v203_v57, %v809_v8  ;;  %v100_v2 = vrot.slane %v95_v61, %v809_v8  ;;  %v158_v32 = vrot.slane %v153_v22, %v809_v8 }
  0x11   :  { %v71_v33 = vrot.slane %v66_v23, %v809_v8 }
  0x14   :  { %107 = vrot.lane.b32.xlu0 %v829_v15, %s754_s23  ;;  %184 = vrot.lane.b32.xlu1 %v616_v28, %s755_s24 }
  0x18   :  { %76 = vrot.lane.b32.xlu0 %v616_v28, %s756_s27  ;;  %105 = vrot.lane.b32.xlu1 %v616_v28, %s754_s23 }
  0x1c   :  { %140 = vrot.lane.b32.xlu0 %v795_v3, %s758_s11  ;;  %54 = vrot.lane.b32.xlu1 %v795_v3, %s759_s12 }
  0x20   :  { %138 = vrot.lane.b32.xlu0 %v807_v6, %s758_s11  ;;  %52 = vrot.lane.b32.xlu1 %v807_v6, %s759_s12 }
  0x24   :  { %136 = vrot.lane.b32.xlu0 %v829_v15, %s758_s11  ;;  %50 = vrot.lane.b32.xlu1 %v829_v15, %s759_s12 }
  0x28   :  { %134 = vrot.lane.b32.xlu0 %v616_v28, %s758_s11  ;;  %48 = vrot.lane.b32.xlu1 %v616_v28, %s759_s12 }
  0x2c   :  { %248 = vrot.lane.b32.xlu0 %v795_v3, %s760_s15  ;;  %277 = vrot.lane.b32.xlu1 %v795_v3, %s761_s16 }
  0x30   :  { %246 = vrot.lane.b32.xlu0 %v807_v6, %s760_s15  ;;  %275 = vrot.lane.b32.xlu1 %v807_v6, %s761_s16 }
  0x34   :  { %244 = vrot.lane.b32.xlu0 %v829_v15, %s760_s15  ;;  %273 = vrot.lane.b32.xlu1 %v829_v15, %s761_s16 }
  0x38   :  { %242 = vrot.lane.b32.xlu0 %v616_v28, %s760_s15  ;;  %271 = vrot.lane.b32.xlu1 %v616_v28, %s761_s16 }
  0x3c   :  { %219 = vrot.lane.b32.xlu0 %v795_v3, %s762_s17  ;;  %217 = vrot.lane.b32.xlu1 %v807_v6, %s762_s17 }
  0x40   :  { %215 = vrot.lane.b32.xlu0 %v829_v15, %s762_s17  ;;  %213 = vrot.lane.b32.xlu1 %v616_v28, %s762_s17 }
  0x44   :  { %328 = vperm.xlu0 %741, %v300_v53   ;;  %v627_v53 = vld [vmem:[%s1026_s1 + $0x7] sm:$0x1] }
  0x76   :  { %v112_v62 = vpop.permute.xlu1 %111  ;;  %v191_v63 = vpop.permute.xlu0 %190 }
  0x77   :  { %v133_v0 = vmul.bf16 %v129_v59, %v112_v62  ;;  %v930_v1 = vmul.bf16 %v208_v60, %v191_v63 }
  0x79   :  { %665 = vmatprep.subr.bf16.mxu1 %v930_v1 }
  0x7a   :  { %666 = vmatpush3.bf16.msra.mxu1 %v133_v0  ;;  %v83_v3 = vpop.permute.xlu0 %82  ;;  %v189_v4 = vpop.permute.xlu1 %188 }
  0x7b   :  { %v104_v5 = vmul.bf16 %v100_v2, %v83_v3  ;;  %v934_v6 = vmul.bf16 %v208_v60, %v189_v4 }
  0x7d   :  { %644 = vmatpush3.bf16.msra.mxu0 %v104_v5  ;;  %667 = vmatprep.subr.bf16.mxu1 %v934_v6 }
  0x7e   :  { %v81_v7 = vpop.permute.xlu0 %80  ;;  %v110_v9 = vpop.permute.xlu1 %109  ;;  %645 = vmatprep.subr.bf16.mxu0 %v839_v27 }
  0x7f   :  { %v103_v10 = vmul.bf16 %v100_v2, %v81_v7  ;;  %v132_v11 = vmul.bf16 %v129_v59, %v110_v9 }
  0x81   :  { %646 = vmatpush3.bf16.msra.mxu0 %v103_v10  ;;  %668 = vmatpush3.bf16.msra.mxu1 %v132_v11 }
  0x82   :  { %v79_v12 = vpop.permute.xlu1 %78  ;;  %v187_v13 = vpop.permute.xlu0 %186  ;;  %647 = vmatprep.subr.bf16.mxu0 %v845_v29 }
  0x83   :  { %v102_v14 = vmul.bf16 %v100_v2, %v79_v12  ;;  %v939_v15 = vmul.bf16 %v208_v60, %v187_v13 }
  0x85   :  { %648 = vmatpush3.bf16.msra.mxu0 %v102_v14  ;;  %669 = vmatprep.subr.bf16.mxu1 %v939_v15 }
  0x86   :  { %v108_v18 = vpop.permute.xlu0 %107  ;;  %v185_v19 = vpop.permute.xlu1 %184  ;;  %649 = vmatprep.subr.bf16.mxu0 %v847_v30 }
  0x87   :  { %v131_v20 = vmul.bf16 %v129_v59, %v108_v18  ;;  %v949_v21 = vmul.bf16 %v208_v60, %v185_v19  ;;  %v290_v60 = vpack.i.b16 %v628_v54, %v628_v54 }
  0x89   :  { %670 = vmatpush3.bf16.msra.mxu1 %v131_v20  ;;  %v295_v3 = vrot.slane %v290_v60, %v809_v8 }
  0x8a   :  { %v77_v24 = vpop.permute.xlu0 %76  ;;  %671 = vmatprep.subr.bf16.mxu1 %v949_v21  ;;  %v106_v25 = vpop.permute.xlu1 %105 }
  0x8b   :  { %v101_v28 = vmul.bf16 %v100_v2, %v77_v24  ;;  %v130_v31 = vmul.bf16 %v129_v59, %v106_v25  ;;  %v261_v59 = vpack.i.b16 %v627_v53, %v627_v53 }
  0x8d   :  { %650 = vmatpush3.bf16.msra.mxu0 %v101_v28  ;;  %672 = vmatpush3.bf16.msra.mxu1 %v130_v31  ;;  %v266_v2 = vrot.slane %v261_v59, %v809_v8 }
  0x8e   :  { %v141_v36 = vpop.permute.xlu0 %140  ;;  %v55_v38 = vpop.permute.xlu1 %54  ;;  %673 = vmatprep.subr.bf16.mxu1 %v837_v26 }
  0x8f   :  { %v955_v39 = vmul.bf16 %v158_v32, %v141_v36  ;;  %v75_v41 = vmul.bf16 %v71_v33, %v55_v38 }
  0x91   :  { %651 = vmatprep.subr.bf16.mxu0 %v955_v39  ;;  %674 = vmatpush3.bf16.msra.mxu1 %v104_v5 }
  0x92   :  { %v139_v44 = vpop.permute.xlu0 %138  ;;  %652 = vmatpush3.bf16.msra.mxu0 %v75_v41  ;;  %v53_v46 = vpop.permute.xlu1 %52  ;;  %675 = vmatprep.subr.bf16.mxu1 %v839_v27 }
  0x93   :  { %v959_v51 = vmul.bf16 %v158_v32, %v139_v44  ;;  %v74_v52 = vmul.bf16 %v71_v33, %v53_v46 }
  0x95   :  { %653 = vmatprep.subr.bf16.mxu0 %v959_v51  ;;  %676 = vmatpush3.bf16.msra.mxu1 %v103_v10 }
  0x96   :  { %v137_v55 = vpop.permute.xlu0 %136  ;;  %654 = vmatpush3.bf16.msra.mxu0 %v74_v52  ;;  %v51_v56 = vpop.permute.xlu1 %50  ;;  %677 = vmatprep.subr.bf16.mxu1 %v845_v29 }
  0x97   :  { %v969_v57 = vmul.bf16 %v158_v32, %v137_v55  ;;  %v73_v58 = vmul.bf16 %v71_v33, %v51_v56 }
  0x99   :  { %655 = vmatprep.subr.bf16.mxu0 %v969_v57  ;;  %678 = vmatpush3.bf16.msra.mxu1 %v102_v14 }
  0x9a   :  { %v135_v61 = vpop.permute.xlu0 %134  ;;  %656 = vmatpush3.bf16.msra.mxu0 %v73_v58  ;;  %v49_v62 = vpop.permute.xlu1 %48  ;;  %679 = vmatprep.subr.bf16.mxu1 %v847_v30 }
  0x9b   :  { %v973_v63 = vmul.bf16 %v158_v32, %v135_v61  ;;  %v72_v0 = vmul.bf16 %v71_v33, %v49_v62 }
  0x9d   :  { %657 = vmatprep.subr.bf16.mxu0 %v973_v63  ;;  %680 = vmatpush3.bf16.msra.mxu1 %v101_v28 }
  0x9e   :  { %v249_v4 = vpop.permute.xlu0 %248  ;;  %658 = vmatpush3.bf16.msra.mxu0 %v72_v0  ;;  %v278_v5 = vpop.permute.xlu1 %277 }
  0x9f   :  { %v270_v7 = vmul.bf16 %v266_v2, %v249_v4  ;;  %v299_v9 = vmul.bf16 %v295_v3, %v278_v5 }
  0xa0   :  { %462 = vmatmul.mubr.bf16.vlgmr.msra.gmra.mxu1 %v419_v40 }
  0xa1   :  { %393 = vmatmul.mubr.bf16.vlgmr.msra.gmra.mxu0 %v350_v42  ;;  %687 = vmatprep.subr.bf16.mxu0 %v270_v7 }
  0xa2   :  { %709 = vmatprep.subr.bf16.mxu1 %v299_v9  ;;  %v247_v10 = vpop.permute.xlu0 %246  ;;  %688 = vmatpush3.bf16.msra.mxu0 %v837_v26  ;;  %v276_v11 = vpop.permute.xlu1 %275 }
  0xa3   :  { %v269_v12 = vmul.bf16 %v266_v2, %v247_v10  ;;  %710 = vmatpush3.bf16.msra.mxu1 %v930_v1  ;;  %v298_v13 = vmul.bf16 %v295_v3, %v276_v11  ;;  %531 = vmatprep.mubr.bf16.mxu0 %v906_v47  ;;  %v232_v1 = vpack.i.b16 %v626_v35, %v626_v35 }
  0xa4   :  { %601 = vmatprep.mubr.bf16.mxu1 %v912_v49 }
  0xa5   :  { %689 = vmatprep.subr.bf16.mxu0 %v269_v12  ;;  %711 = vmatprep.subr.bf16.mxu1 %v298_v13  ;;  %v237_v18 = vrot.slane %v232_v1, %v809_v8 }
  0xa6   :  { %v245_v37 = vpop.permute.xlu0 %244  ;;  %690 = vmatpush3.bf16.msra.mxu0 %v839_v27  ;;  %v274_v40 = vpop.permute.xlu1 %273 }
  0xa7   :  { %v268_v42 = vmul.bf16 %v266_v2, %v245_v37  ;;  %712 = vmatpush3.bf16.msra.mxu1 %v934_v6  ;;  %v297_v14 = vmul.bf16 %v295_v3, %v274_v40 }
  0xa9   :  { %691 = vmatprep.subr.bf16.mxu0 %v268_v42  ;;  %713 = vmatprep.subr.bf16.mxu1 %v297_v14 }
  0xaa   :  { %v243_v47 = vpop.permute.xlu0 %242  ;;  %692 = vmatpush3.bf16.msra.mxu0 %v845_v29  ;;  %v272_v16 = vpop.permute.xlu1 %271 }
  0xab   :  { %v267_v17 = vmul.bf16 %v266_v2, %v243_v47  ;;  %714 = vmatpush3.bf16.msra.mxu1 %v939_v15  ;;  %v296_v49 = vmul.bf16 %v295_v3, %v272_v16 }
  0xad   :  { %693 = vmatprep.subr.bf16.mxu0 %v267_v17  ;;  %715 = vmatprep.subr.bf16.mxu1 %v296_v49 }
  0xae   :  { %v220_v19 = vpop.permute.xlu0 %219  ;;  %694 = vmatpush3.bf16.msra.mxu0 %v847_v30  ;;  %v218_v6 = vpop.permute.xlu1 %217 }
  0xaf   :  { %v241_v20 = vmul.bf16 %v237_v18, %v220_v19  ;;  %716 = vmatpush3.bf16.msra.mxu1 %v949_v21  ;;  %v240_v22 = vmul.bf16 %v237_v18, %v218_v6 }
  0xb0   :  { %717 = vmatprep.subr.bf16.mxu1 %v270_v7 }
  0xb1   :  { %695 = vmatprep.subr.bf16.mxu0 %v241_v20 }
  0xb2   :  { %696 = vmatpush3.bf16.msra.mxu0 %v955_v39  ;;  %v216_v23 = vpop.permute.xlu0 %215  ;;  %v214_v24 = vpop.permute.xlu1 %213 }
  0xb3   :  { %718 = vmatpush3.bf16.msra.mxu1 %v837_v26  ;;  %697 = vmatprep.subr.bf16.mxu0 %v240_v22  ;;  %v239_v15 = vmul.bf16 %v237_v18, %v216_v23  ;;  %v238_v25 = vmul.bf16 %v237_v18, %v214_v24 }
  0xb4   :  { %719 = vmatprep.subr.bf16.mxu1 %v269_v12 }
  0xb6   :  { %698 = vmatpush3.bf16.msra.mxu0 %v959_v51 }
  0xb7   :  { %720 = vmatpush3.bf16.msra.mxu1 %v839_v27  ;;  %699 = vmatprep.subr.bf16.mxu0 %v239_v15 }
  0xb8   :  { %721 = vmatprep.subr.bf16.mxu1 %v268_v42 }
  0xba   :  { %700 = vmatpush3.bf16.msra.mxu0 %v969_v57 }
  0xbb   :  { %722 = vmatpush3.bf16.msra.mxu1 %v845_v29  ;;  %701 = vmatprep.subr.bf16.mxu0 %v238_v25 }
  0xbc   :  { %723 = vmatprep.subr.bf16.mxu1 %v267_v17 }
  0xbe   :  { %702 = vmatpush3.bf16.msra.mxu0 %v973_v63 }
  0xbf   :  { %724 = vmatpush3.bf16.msra.mxu1 %v847_v30  ;;  %v329_v26 = vpop.permute.xlu0 %328 }
  0xc0   :  { %v334_v28 = vrot.slane %v329_v26, %v809_v8 }
  0xc1   :  { %532 = vmatmul.mubr.bf16.vlgmr.msra.gmra.mxu0 %v489_v48 }
  0xc2   :  { %602 = vmatmul.mubr.bf16.vlgmr.msra.gmra.mxu1 %v559_v50 }
 0x160   :  { %v681_v27 = vpop.f32.mrf.mxu1 }
 0x161   :  { %v659_v21 = vpop.f32.mrf.mxu0 }
 0x162   :  { %v682_v29 = vpop.f32.mrf.mxu1 }
 0x163   :  { %v683_v31 = vadd.f32 %v682_v29, %v681_v27  ;;  %v660_v32 = vpop.f32.mrf.mxu0 }
 0x164   :  { %v661_v33 = vadd.f32 %v660_v32, %v659_v21  ;;  %v684_v36 = vpop.f32.mrf.mxu1 }
 0x165   :  { %v464_v38 = vadd.f32 %v683_v31, %v334_v28  ;;  %v662_v30 = vpop.f32.mrf.mxu0 }
 0x166   :  { %v395_v39 = vadd.f32 %v661_v33, %v334_v28  ;;  %v685_v41 = vpop.f32.mrf.mxu1 }
 0x167   :  { %746 = vtanh.f32 %v464_v38  ;;  %v663_v43 = vpop.f32.mrf.mxu0 }
 0x168   :  { %748 = vtanh.f32 %v395_v39 }
 0x174   :  { %v747_v48 = vpop.eup %746 }
 0x175   :  { %v749_v34 = vpop.eup %748  ;;  %636 = vst [vmem:[%s1029_s4 + $0x1] sm:$0x1] %v747_v48 }
 0x176   :  { %401 = vst [vmem:[%s1029_s4] sm:$0x1] %v749_v34 }
 0x181   :  { %v703_v8 = vpop.f32.mrf.mxu0 }
 0x182   :  { %v725_v45 = vpop.f32.mrf.mxu1 }
 0x183   :  { %v704_v50 = vpop.f32.mrf.mxu0 }
 0x184   :  { %v705_v44 = vadd.f32 %v704_v50, %v703_v8  ;;  %v726_v46 = vpop.f32.mrf.mxu1 }
 0x185   :  { %v727_v51 = vadd.f32 %v726_v46, %v725_v45  ;;  %v706_v52 = vpop.f32.mrf.mxu0 }
 0x186   :  { %v534_v53 = vadd.f32 %v705_v44, %v334_v28  ;;  %v728_v54 = vpop.f32.mrf.mxu1 }
 0x187   :  { %v604_v55 = vadd.f32 %v727_v51, %v334_v28  ;;  %v707_v56 = vpop.f32.mrf.mxu0 }
 0x188   :  { %750 = vtanh.f32 %v534_v53  ;;  %v729_v57 = vpop.f32.mrf.mxu1 }
 0x189   :  { %752 = vtanh.f32 %v604_v55 }
 0x195   :  { %v751_v58 = vpop.eup %750 }
 0x196   :  { %v753_v59 = vpop.eup %752  ;;  %639 = vst [vmem:[%s1029_s4 + $0x2] sm:$0x1] %v751_v58 }
 0x197   :  { %642 = vst [vmem:[%s1029_s4 + $0x3] sm:$0x1] %v753_v59 }

// kernel: generator_forward.4
= control target key start
LH: loop header
LB: loop body
LE: loop exit
PB: predicated region body
PF: predicated region fallthrough
CT: control target
= control target key end

     0   :  { %v2732_v0 = vmov 0   ;;  %vm71_vm0 = vcmask 1043456   ;;  %vm29_vm1 = vcmask 1044480   ;;  %vm157_vm2 = vcmask 1040384   ;;  %s3556_s1 = inlined_call_operand.vmem [shape: f32[9,32,1], index: 1, kind: input, shape index: {}]   ;;  %s3557_s2 = inlined_call_operand.vmem [shape: bf16[4,512,64], index: 2, kind: input, shape index: {}]   ;;  %s3558_s0 = inlined_call_operand.vmem [shape: bf16[32,128], index: 0, kind: input, shape index: {}]   ;;  %s3559_s3 = inlined_call_operand.vmem [shape: bf16[32,256], index: 3, kind: output, shape index: {}]  }
   0x1   :  { %2581 = vset.pattern.permute.xlu1 %v2732_v0  ;;  %2580 = vset.pattern.permute.xlu0 %v2732_v0  ;;  %v1997_v1 = vld [vmem:[%s3556_s1 + $0x80] sm:$0xff]  ;;  %v1998_v3 = vld [vmem:[%s3556_s1 + $0x88] sm:$0xff]  ;;  %v1988_v9 = vld [vmem:[%s3556_s1 + $0x38] sm:$0xff]  ;;  %vm114_vm3 = vcmask 1042432   ;;  %vm227_vm4 = vcmask 1046528   ;;  %vm1806_vm5 = vcmask 523264  }
   0x2   :  { %v1985_v2 = vld [vmem:[%s3556_s1 + $0x20] sm:$0xff]  ;;  %205 = vperm.xlu1 %2581, %v1997_v1   ;;  %v1986_v4 = vld [vmem:[%s3556_s1 + $0x28] sm:$0xff]  ;;  %v1987_v10 = vld [vmem:[%s3556_s1 + $0x30] sm:$0xff] }
   0x3   :  { %90 = vperm.xlu0 %2580, %v1985_v2   ;;  %v42_v5 = vld [vmem:[%s3556_s1 + $0x8] sm:$0xff]  ;;  %v41_v6 = vld [vmem:[%s3556_s1] sm:$0xff]  ;;  %v2602_v11 = vld [vmem:[%s3557_s2 + $0x78] sm:$0xff]  }
   0x4   :  { %v1994_v7 = vld [vmem:[%s3556_s1 + $0x68] sm:$0xff]  ;;  %v1993_v8 = vld [vmem:[%s3556_s1 + $0x60] sm:$0xff]  ;;  %v2603_v12 = vld [vmem:[%s3557_s2 + $0x38] sm:$0xff]   ;;  %2354 = vmatprep.subr.bf16.mxu0 %v2602_v11 }
   0x5   :  { %v2604_v13 = vld [vmem:[%s3557_s2 + $0x70] sm:$0xff]   ;;  %2355 = vmatpush3.bf16.msra.mxu0 %v2603_v12  ;;  %v2605_v14 = vld [vmem:[%s3557_s2 + $0xf8] sm:$0xff]   ;;  %v2608_v19 = vld [vmem:[%s3557_s2 + $0x68] sm:$0xff]  }
   0x6   :  { %210 = vperm.xlu1 %2581, %v1998_v3   ;;  %v2000_v15 = vld [vmem:[%s3556_s1 + $0x98] sm:$0xff]  ;;  %v1999_v16 = vld [vmem:[%s3556_s1 + $0x90] sm:$0xff]  ;;  %2356 = vmatprep.subr.bf16.mxu0 %v2604_v13  ;;  %v2610_v23 = vld [vmem:[%s3557_s2 + $0x28] sm:$0xff]  }
   0x7   :  { %95 = vperm.xlu0 %2580, %v1986_v4   ;;  %v2606_v17 = vld [vmem:[%s3557_s2 + $0x30] sm:$0xff]   ;;  %v2607_v18 = vld [vmem:[%s3557_s2 + $0xb8] sm:$0xff]   ;;  %2382 = vmatprep.subr.bf16.mxu1 %v2605_v14  ;;  %v2612_v25 = vld [vmem:[%s3557_s2 + $0x60] sm:$0xff]  }
   0x8   :  { %2383 = vmatpush3.bf16.msra.mxu1 %v2607_v18  ;;  %v2609_v20 = vld [vmem:[%s3557_s2 + $0xf0] sm:$0xff]   ;;  %v44_v21 = vld [vmem:[%s3556_s1 + $0x18] sm:$0xff]  ;;  %v2613_v26 = vld [vmem:[%s3557_s2 + $0xe8] sm:$0xff]  }
   0x9   :  { %2357 = vmatpush3.bf16.msra.mxu0 %v2606_v17  ;;  %v43_v22 = vld [vmem:[%s3556_s1 + $0x10] sm:$0xff]  ;;  %2384 = vmatprep.subr.bf16.mxu1 %v2609_v20  ;;  %v1996_v27 = vld [vmem:[%s3556_s1 + $0x78] sm:$0xff]  ;;  %v2614_v29 = vld [vmem:[%s3557_s2 + $0x20] sm:$0xff]  }
   0xa   :  { %52 = vperm.xlu1 %2581, %v42_v5   ;;  %2358 = vmatprep.subr.bf16.mxu0 %v2608_v19  ;;  %v2611_v24 = vld [vmem:[%s3557_s2 + $0xb0] sm:$0xff]   ;;  %v2615_v30 = vld [vmem:[%s3557_s2 + $0xa8] sm:$0xff]   ;;  %v2616_v31 = vld [vmem:[%s3557_s2 + $0x58] sm:$0xff]  }
   0xb   :  { %47 = vperm.xlu0 %2580, %v41_v6   ;;  %v1995_v28 = vld [vmem:[%s3556_s1 + $0x70] sm:$0xff]  ;;  %v2617_v32 = vld [vmem:[%s3557_s2 + $0xe0] sm:$0xff]   ;;  %v1990_v33 = vld [vmem:[%s3556_s1 + $0x48] sm:$0xff] }
   0xc   :  { %2385 = vmatpush3.bf16.msra.mxu1 %v2611_v24  ;;  %v1989_v34 = vld [vmem:[%s3556_s1 + $0x40] sm:$0xff]  ;;  %v2618_v35 = vld [vmem:[%s3557_s2 + $0x18] sm:$0xff]   ;;  %v2620_v37 = vld [vmem:[%s3557_s2 + $0x50] sm:$0xff]  }
   0xd   :  { %2359 = vmatpush3.bf16.msra.mxu0 %v2610_v23  ;;  %2386 = vmatprep.subr.bf16.mxu1 %v2613_v26  ;;  %v2619_v36 = vld [vmem:[%s3557_s2 + $0xa0] sm:$0xff]   ;;  %v2621_v38 = vld [vmem:[%s3557_s2 + $0xd8] sm:$0xff]   ;;  %v2002_v39 = vld [vmem:[%s3556_s1 + $0xa8] sm:$0xff] }
   0xe   :  { %181 = vperm.xlu1 %2581, %v1994_v7   ;;  %2360 = vmatprep.subr.bf16.mxu0 %v2612_v25  ;;  %v2001_v40 = vld [vmem:[%s3556_s1 + $0xa0] sm:$0xff]  ;;  %v2622_v41 = vld [vmem:[%s3557_s2 + $0x10] sm:$0xff]   ;;  %v2623_v42 = vld [vmem:[%s3557_s2 + $0x98] sm:$0xff]  }
   0xf   :  { %176 = vperm.xlu0 %2580, %v1993_v8   ;;  %v2624_v43 = vld [vmem:[%s3557_s2 + $0x48] sm:$0xff]   ;;  %v2625_v44 = vld [vmem:[%s3557_s2 + $0xd0] sm:$0xff]   ;;  %v1992_v45 = vld [vmem:[%s3556_s1 + $0x58] sm:$0xff] }
  0x10   :  { %2387 = vmatpush3.bf16.msra.mxu1 %v2615_v30  ;;  %v1991_v46 = vld [vmem:[%s3556_s1 + $0x50] sm:$0xff]  ;;  %v2626_v47 = vld [vmem:[%s3557_s2 + $0x8] sm:$0xff]   ;;  %v2628_v49 = vld [vmem:[%s3557_s2 + $0x40] sm:$0xff]  }
  0x11   :  { %2361 = vmatpush3.bf16.msra.mxu0 %v2614_v29  ;;  %2388 = vmatprep.subr.bf16.mxu1 %v2617_v32  ;;  %v2627_v48 = vld [vmem:[%s3557_s2 + $0x90] sm:$0xff]   ;;  %v2004_v50 = vld [vmem:[%s3556_s1 + $0xb8] sm:$0xff]  ;;  %v2629_v52 = vld [vmem:[%s3557_s2 + $0xc8] sm:$0xff]  }
  0x12   :  { %105 = vperm.xlu1 %2581, %v1988_v9   ;;  %2362 = vmatprep.subr.bf16.mxu0 %v2616_v31  ;;  %v2003_v51 = vld [vmem:[%s3556_s1 + $0xb0] sm:$0xff]  ;;  %v2630_v53 = vld [vmem:[%s3557_s2] sm:$0xff]   ;;  %v2631_v54 = vld [vmem:[%s3557_s2 + $0x88] sm:$0xff]  }
  0x13   :  { %100 = vperm.xlu0 %2580, %v1987_v10   ;;  %v2632_v55 = vld [vmem:[%s3557_s2 + $0xc0] sm:$0xff]   ;;  %v2010_v56 = vld [vmem:[%s3556_s1 + $0xe8] sm:$0xff]  ;;  %v2633_v57 = vld [vmem:[%s3557_s2 + $0x178] sm:$0xff]  }
  0x14   :  { %2389 = vmatpush3.bf16.msra.mxu1 %v2619_v36  ;;  %v2634_v58 = vld [vmem:[%s3557_s2 + $0x80] sm:$0xff]   ;;  %v2636_v60 = vld [vmem:[%s3557_s2 + $0x1f8] sm:$0xff]   ;;  %v2006_v61 = vld [vmem:[%s3556_s1 + $0xc8] sm:$0xff] }
  0x15   :  { %2363 = vmatpush3.bf16.msra.mxu0 %v2618_v35  ;;  %2390 = vmatprep.subr.bf16.mxu1 %v2621_v38  ;;  %v2009_v59 = vld [vmem:[%s3556_s1 + $0xe0] sm:$0xff]  ;;  %v2012_v63 = vld [vmem:[%s3556_s1 + $0xf8] sm:$0xff]  ;;  %v2011_v0 = vld [vmem:[%s3556_s1 + $0xf0] sm:$0xff] }
  0x16   :  { %220 = vperm.xlu1 %2581, %v2000_v15   ;;  %2364 = vmatprep.subr.bf16.mxu0 %v2620_v37  ;;  %v2005_v62 = vld [vmem:[%s3556_s1 + $0xc0] sm:$0xff]  ;;  %v2008_v1 = vld [vmem:[%s3556_s1 + $0xd8] sm:$0xff]  ;;  %v2007_v2 = vld [vmem:[%s3556_s1 + $0xd0] sm:$0xff] }
  0x17   :  { %215 = vperm.xlu0 %2580, %v1999_v16   ;;  %v2014_v3 = vld [vmem:[%s3556_s1 + $0x108] sm:$0xff]  ;;  %v2013_v4 = vld [vmem:[%s3556_s1 + $0x100] sm:$0xff]  ;;  %v2016_v5 = vld [vmem:[%s3556_s1 + $0x118] sm:$0xff] }
  0x18   :  { %2391 = vmatpush3.bf16.msra.mxu1 %v2623_v42  ;;  %v2015_v6 = vld [vmem:[%s3556_s1 + $0x110] sm:$0xff]  ;;  %v2353_v7 = vld [vmem:[%s3558_s0 + $0x8] sm:$0xff]   ;;  %v2346_v8 = vld [vmem:[%s3558_s0] sm:$0xff]  }
  0x19   :  { %2365 = vmatpush3.bf16.msra.mxu0 %v2622_v41  ;;  %2392 = vmatprep.subr.bf16.mxu1 %v2625_v44  ;;  %v2970_v9 = vunpack.c.h.bf16 %v2353_v7  ;;  %v2972_v10 = vunpack.c.l.bf16 %v2346_v8  ;;  %v2974_v11 = vunpack.c.h.bf16 %v2346_v8  ;;  %v2989_v25 = vunpack.c.l.bf16 %v2353_v7  ;;  %v2635_v42 = vld [vmem:[%s3557_s2 + $0x138] sm:$0xff]  }
  0x1a   :  { %62 = vperm.xlu1 %2581, %v44_v21   ;;  %2366 = vmatprep.subr.bf16.mxu0 %v2624_v43 }
  0x1b   :  { %57 = vperm.xlu0 %2580, %v43_v22   ;;  %v69_v12 = vrot.slane %v2970_v9, 4  ;;  %v72_v13 = vrot.slane %v2972_v10, 4  ;;  %v73_v14 = vrot.slane %v2974_v11, 4  ;;  %v30_v17 = vrot.slane %v2972_v10, 3 }
  0x1c   :  { %2393 = vmatpush3.bf16.msra.mxu1 %v2627_v48  ;;  %v31_v20 = vrot.slane %v2974_v11, 3  ;;  %v24_v21 = vrot.slane %v2970_v9, 3  ;;  %v158_v24 = vrot.slane %v2972_v10, 7  ;;  %v159_v32 = vrot.slane %v2974_v11, 7  ;;  %v2638_v48 = vld [vmem:[%s3557_s2 + $0x130] sm:$0xff]  }
  0x1d   :  { %2367 = vmatpush3.bf16.msra.mxu0 %v2626_v47  ;;  %2394 = vmatprep.subr.bf16.mxu1 %v2629_v52  ;;  %v2981_v18 = vsel %vm71_vm0, %v69_v12, %v72_v13  ;;  %v2984_v19 = vsel %vm71_vm0, %v72_v13, %v73_v14  ;;  %v75_v43 = vrot.slane %v2989_v25, 4  ;;  %v2647_v13 = vld [vmem:[%s3557_s2 + $0x1a8] sm:$0xff]  }
  0x1e   :  { %191 = vperm.xlu1 %2581, %v1996_v27   ;;  %2368 = vmatprep.subr.bf16.mxu0 %v2628_v49  ;;  %v2998_v30 = vsel %vm29_vm1, %v30_v17, %v31_v20  ;;  %v3003_v31 = vsel %vm29_vm1, %v24_v21, %v30_v17  ;;  %v2649_v17 = vld [vmem:[%s3557_s2 + $0x1e0] sm:$0xff]  }
  0x1f   :  { %186 = vperm.xlu0 %2580, %v1995_v28   ;;  %v3035_v52 = vsel %vm71_vm0, %v75_v43, %v69_v12  ;;  %v2646_v12 = vld [vmem:[%s3557_s2 + $0x120] sm:$0xff]  }
  0x20   :  { %2395 = vmatpush3.bf16.msra.mxu1 %v2631_v54  ;;  %v2640_v54 = vld [vmem:[%s3557_s2 + $0x168] sm:$0xff]  }
  0x21   :  { %2369 = vmatpush3.bf16.msra.mxu0 %v2630_v53  ;;  %2396 = vmatprep.subr.bf16.mxu1 %v2632_v55  ;;  %v3038_v53 = vsel %vm71_vm0, %v73_v14, %v75_v43  ;;  %v161_v14 = vrot.slane %v2989_v25, 7 }
  0x22   :  { %138 = vperm.xlu1 %2581, %v1990_v33   ;;  %2410 = vmatprep.subr.bf16.mxu0 %v2633_v57  ;;  %v155_v33 = vrot.slane %v2970_v9, 7 }
  0x23   :  { %133 = vperm.xlu0 %2580, %v1989_v34  }
  0x24   :  { %2397 = vmatpush3.bf16.msra.mxu1 %v2634_v58  ;;  %v168_v41 = vsel %vm157_vm2, %v155_v33, %v158_v24 }
  0x25   :  { %2438 = vmatprep.subr.bf16.mxu1 %v2636_v60 }
  0x26   :  { %253 = vperm.xlu1 %2581, %v2002_v39  }
  0x27   :  { %248 = vperm.xlu0 %2580, %v2001_v40   ;;  %v160_v40 = vsel %vm157_vm2, %v158_v24, %v159_v32  ;;  %v115_v24 = vrot.slane %v2972_v10, 5 }
  0x2a   :  { %148 = vperm.xlu1 %2581, %v1992_v45   ;;  %v2637_v45 = vld [vmem:[%s3557_s2 + $0x170] sm:$0xff]  }
  0x2b   :  { %143 = vperm.xlu0 %2580, %v1991_v46  }
  0x2e   :  { %263 = vperm.xlu1 %2581, %v2004_v50  }
  0x2f   :  { %258 = vperm.xlu0 %2580, %v2003_v51   ;;  %v2639_v51 = vld [vmem:[%s3557_s2 + $0x1b8] sm:$0xff]  }
  0x32   :  { %311 = vperm.xlu1 %2581, %v2010_v56   ;;  %v2641_v56 = vld [vmem:[%s3557_s2 + $0x1f0] sm:$0xff]  }
  0x33   :  { %306 = vperm.xlu0 %2580, %v2009_v59  }
  0x36   :  { %282 = vperm.xlu1 %2581, %v2006_v61   ;;  %v2642_v61 = vld [vmem:[%s3557_s2 + $0x128] sm:$0xff]  }
  0x37   :  { %277 = vperm.xlu0 %2580, %v2005_v62   ;;  %v2643_v62 = vld [vmem:[%s3557_s2 + $0x1b0] sm:$0xff]  }
  0x3a   :  { %321 = vperm.xlu1 %2581, %v2012_v63   ;;  %v33_v63 = vrot.slane %v2989_v25, 3 }
  0x3b   :  { %316 = vperm.xlu0 %2580, %v2011_v0  }
  0x3c   :  { %v3072_v7 = vsel %vm29_vm1, %v33_v63, %v24_v21  ;;  %v3077_v8 = vsel %vm29_vm1, %v31_v20, %v33_v63 }
  0x3e   :  { %292 = vperm.xlu1 %2581, %v2008_v1   ;;  %v2644_v1 = vld [vmem:[%s3557_s2 + $0x160] sm:$0xff]  }
  0x3f   :  { %287 = vperm.xlu0 %2580, %v2007_v2   ;;  %v2645_v2 = vld [vmem:[%s3557_s2 + $0x1e8] sm:$0xff]  }
  0x42   :  { %340 = vperm.xlu1 %2581, %v2014_v3  }
  0x43   :  { %335 = vperm.xlu0 %2580, %v2013_v4  }
  0x46   :  { %350 = vperm.xlu1 %2581, %v2016_v5  }
  0x47   :  { %345 = vperm.xlu0 %2580, %v2015_v6  }
  0x7d   :  { %v206_v15 = vpop.permute.xlu1 %205 }
  0x7e   :  { %v91_v16 = vpop.permute.xlu0 %90  ;;  %v223_v26 = vmul.f32 %v2972_v10, %v206_v15 }
  0x7f   :  { %v108_v27 = vmul.f32 %v91_v16, %v2981_v18  ;;  %v2648_v16 = vld [vmem:[%s3557_s2 + $0x158] sm:$0xff]  }
  0x81   :  { %v211_v22 = vpop.permute.xlu1 %210 }
  0x82   :  { %v96_v23 = vpop.permute.xlu0 %95  ;;  %v224_v28 = vmul.f32 %v2974_v11, %v211_v22 }
  0x83   :  { %v109_v29 = vmul.f32 %v96_v23, %v2984_v19 }
  0x84   :  { %v3007_v34 = vpack.c.bf16 %v224_v28, %v223_v26  ;;  %v116_v26 = vrot.slane %v2974_v11, 5  ;;  %v162_v28 = vsel %vm157_vm2, %v159_v32, %v161_v14  ;;  %v2653_v32 = vld [vmem:[%s3557_s2 + $0x1d8] sm:$0xff]  }
  0x85   :  { %v3009_v35 = vpack.c.bf16 %v109_v29, %v108_v27  ;;  %v53_v36 = vpop.permute.xlu1 %52  ;;  %v163_v27 = vsel %vm157_vm2, %v161_v14, %v155_v33  ;;  %v2650_v29 = vld [vmem:[%s3557_s2 + $0x118] sm:$0xff]   ;;  %v2652_v33 = vld [vmem:[%s3557_s2 + $0x150] sm:$0xff]   ;;  %v2663_v14 = vld [vmem:[%s3557_s2 + $0x188] sm:$0xff]  }
  0x86   :  { %v48_v37 = vpop.permute.xlu0 %47  ;;  %v66_v38 = vmul.f32 %v53_v36, %v2998_v30  ;;  %702 = vmatprep.mubr.bf16.mxu1 %v3007_v34  ;;  %v2651_v36 = vld [vmem:[%s3557_s2 + $0x1a0] sm:$0xff]   ;;  %v3119_v43 = vsel %vm114_vm3, %v115_v24, %v116_v26 }
  0x87   :  { %v65_v39 = vmul.f32 %v48_v37, %v3003_v31  ;;  %653 = vmatprep.mubr.bf16.mxu0 %v3009_v35  ;;  %v112_v37 = vrot.slane %v2970_v9, 5 }
  0x89   :  { %v357_v44 = vpack.c.bf16 %v66_v38, %v65_v39  ;;  %v182_v46 = vpop.permute.xlu1 %181 }
  0x8a   :  { %v177_v47 = vpop.permute.xlu0 %176  ;;  %v195_v49 = vmul.f32 %v182_v46, %v160_v40  ;;  %v2655_v46 = vld [vmem:[%s3557_s2 + $0x198] sm:$0xff]  }
  0x8b   :  { %v194_v50 = vmul.f32 %v177_v47, %v168_v41  ;;  %654 = vmatmul.mubr.bf16.vlgmr.msra.gmra.mxu0 %v357_v44  ;;  %v3122_v44 = vsel %vm114_vm3, %v112_v37, %v115_v24  ;;  %v229_v47 = vrot.slane %v2974_v11, 1 }
  0x8c   :  { %2411 = vmatpush3.bf16.msra.mxu0 %v2635_v42 }
  0x8d   :  { %v3043_v55 = vpack.c.bf16 %v195_v49, %v194_v50  ;;  %2412 = vmatprep.subr.bf16.mxu0 %v2637_v45  ;;  %v106_v57 = vpop.permute.xlu1 %105  ;;  %v2654_v45 = vld [vmem:[%s3557_s2 + $0x110] sm:$0xff]   ;;  %v228_v49 = vrot.slane %v2972_v10, 1 }
  0x8e   :  { %v101_v58 = vpop.permute.xlu0 %100  ;;  %v111_v59 = vmul.f32 %v106_v57, %v3035_v52 }
  0x8f   :  { %v110_v60 = vmul.f32 %v101_v58, %v3038_v53  ;;  %703 = vmatmul.mubr.bf16.vlgmr.msra.gmra.mxu1 %v3043_v55 }
  0x90   :  { %2413 = vmatpush3.bf16.msra.mxu0 %v2638_v48  ;;  %2439 = vmatpush3.bf16.msra.mxu1 %v2639_v51  ;;  %v231_v48 = vrot.slane %v2989_v25, 1  ;;  %v2656_v51 = vld [vmem:[%s3557_s2 + $0x148] sm:$0xff]  }
  0x91   :  { %v3058_v0 = vpack.c.bf16 %v111_v59, %v110_v60  ;;  %2414 = vmatprep.subr.bf16.mxu0 %v2640_v54  ;;  %2440 = vmatprep.subr.bf16.mxu1 %v2641_v56  ;;  %v221_v3 = vpop.permute.xlu1 %220  ;;  %v2657_v54 = vld [vmem:[%s3557_s2 + $0x1d0] sm:$0xff]   ;;  %v230_v59 = vsel %vm227_vm4, %v228_v49, %v229_v47  ;;  %v2658_v60 = vld [vmem:[%s3557_s2 + $0x108] sm:$0xff]  }
  0x92   :  { %v216_v4 = vpop.permute.xlu0 %215  ;;  %v226_v5 = vmul.f32 %v2970_v9, %v221_v3  ;;  %v232_v10 = vsel %vm227_vm4, %v229_v47, %v231_v48 }
  0x93   :  { %v225_v6 = vmul.f32 %v2989_v25, %v216_v4  ;;  %661 = vmatprep.mubr.bf16.mxu0 %v3058_v0 }
  0x94   :  { %2415 = vmatpush3.bf16.msra.mxu0 %v2642_v61  ;;  %2441 = vmatpush3.bf16.msra.mxu1 %v2643_v62  ;;  %v2659_v61 = vld [vmem:[%s3557_s2 + $0x190] sm:$0xff]   ;;  %v118_v62 = vrot.slane %v2989_v25, 5 }
  0x95   :  { %v3086_v15 = vpack.c.bf16 %v226_v5, %v225_v6  ;;  %2416 = vmatprep.subr.bf16.mxu0 %v2644_v1  ;;  %2442 = vmatprep.subr.bf16.mxu1 %v2645_v2  ;;  %v63_v20 = vpop.permute.xlu1 %62  ;;  %v2660_v1 = vld [vmem:[%s3557_s2 + $0x140] sm:$0xff]   ;;  %v2661_v2 = vld [vmem:[%s3557_s2 + $0x1c8] sm:$0xff]  }
  0x96   :  { %v58_v21 = vpop.permute.xlu0 %57  ;;  %v68_v22 = vmul.f32 %v63_v20, %v3072_v7  ;;  %v3160_v25 = vsel %vm114_vm3, %v118_v62, %v112_v37  ;;  %v2664_v20 = vld [vmem:[%s3557_s2 + $0x1c0] sm:$0xff]   ;;  %v2669_v37 = vld [vmem:[%s3557_s2 + $0x2f8] sm:$0xff]  }
  0x97   :  { %v67_v23 = vmul.f32 %v58_v21, %v3077_v8  ;;  %710 = vmatprep.mubr.bf16.mxu1 %v3086_v15  ;;  %v2665_v21 = vld [vmem:[%s3557_s2 + $0x278] sm:$0xff]  }
  0x98   :  { %2417 = vmatpush3.bf16.msra.mxu0 %v2646_v12  ;;  %2443 = vmatpush3.bf16.msra.mxu1 %v2647_v13  ;;  %v3163_v12 = vsel %vm114_vm3, %v116_v26, %v118_v62  ;;  %v2662_v13 = vld [vmem:[%s3557_s2 + $0x100] sm:$0xff]   ;;  %v2680_v62 = vld [vmem:[%s3557_s2 + $0x258] sm:$0xff]  }
  0x99   :  { %v361_v38 = vpack.c.bf16 %v68_v22, %v67_v23  ;;  %2418 = vmatprep.subr.bf16.mxu0 %v2648_v16  ;;  %2444 = vmatprep.subr.bf16.mxu1 %v2649_v17  ;;  %v192_v39 = vpop.permute.xlu1 %191  ;;  %v233_v16 = vrot.slane %v2970_v9, 1 }
  0x9a   :  { %v187_v40 = vpop.permute.xlu0 %186  ;;  %v197_v41 = vmul.f32 %v192_v39, %v163_v27 }
  0x9b   :  { %v196_v42 = vmul.f32 %v187_v40, %v162_v28  ;;  %662 = vmatmul.mubr.bf16.gmra.mxu0 %v361_v38  ;;  %v240_v9 = vsel %vm227_vm4, %v233_v16, %v228_v49  ;;  %v234_v27 = vsel %vm227_vm4, %v231_v48, %v233_v16  ;;  %v2666_v28 = vld [vmem:[%s3557_s2 + $0x180] sm:$0xff]   ;;  %v2672_v48 = vld [vmem:[%s3557_s2 + $0x268] sm:$0xff]   ;;  %v2675_v49 = vld [vmem:[%s3557_s2 + $0x2b0] sm:$0xff]  }
  0x9c   :  { %2419 = vmatpush3.bf16.msra.mxu0 %v2650_v29  ;;  %2445 = vmatpush3.bf16.msra.mxu1 %v2651_v36  ;;  %v2667_v36 = vld [vmem:[%s3557_s2 + $0x238] sm:$0xff]  }
  0x9d   :  { %v3133_v50 = vpack.c.bf16 %v197_v41, %v196_v42  ;;  %2420 = vmatprep.subr.bf16.mxu0 %v2652_v33  ;;  %2446 = vmatprep.subr.bf16.mxu1 %v2653_v32  ;;  %v139_v56 = vpop.permute.xlu1 %138  ;;  %v2668_v32 = vld [vmem:[%s3557_s2 + $0x270] sm:$0xff]   ;;  %v2671_v41 = vld [vmem:[%s3557_s2 + $0x2b8] sm:$0xff]  }
  0x9e   :  { %v134_v57 = vpop.permute.xlu0 %133  ;;  %v152_v11 = vmul.f32 %v139_v56, %v3119_v43 }
  0x9f   :  { %v151_v58 = vmul.f32 %v134_v57, %v3122_v44  ;;  %711 = vmatmul.mubr.bf16.gmra.mxu1 %v3133_v50 }
  0xa0   :  { %2421 = vmatpush3.bf16.msra.mxu0 %v2654_v45  ;;  %2447 = vmatpush3.bf16.msra.mxu1 %v2655_v46  ;;  %v2670_v45 = vld [vmem:[%s3557_s2 + $0x230] sm:$0xff]  }
  0xa1   :  { %v719_v63 = vpack.c.bf16 %v152_v11, %v151_v58  ;;  %2422 = vmatprep.subr.bf16.mxu0 %v2656_v51  ;;  %2448 = vmatprep.subr.bf16.mxu1 %v2657_v54  ;;  %v254_v3 = vpop.permute.xlu1 %253  ;;  %v2673_v46 = vld [vmem:[%s3557_s2 + $0x2f0] sm:$0xff]   ;;  %v2674_v51 = vld [vmem:[%s3557_s2 + $0x228] sm:$0xff]  }
  0xa2   :  { %v249_v4 = vpop.permute.xlu0 %248  ;;  %v267_v5 = vmul.f32 %v254_v3, %v232_v10  ;;  %v2677_v54 = vld [vmem:[%s3557_s2 + $0x2e8] sm:$0xff]   ;;  %v2676_v10 = vld [vmem:[%s3557_s2 + $0x260] sm:$0xff]  }
  0xa3   :  { %v266_v6 = vmul.f32 %v249_v4, %v230_v59  ;;  %1012 = vmatprep.mubr.bf16.mxu0 %v719_v63  ;;  %v2679_v59 = vld [vmem:[%s3557_s2 + $0x2a8] sm:$0xff]   ;;  %v2683_v63 = vld [vmem:[%s3557_s2 + $0x2a0] sm:$0xff]  }
  0xa4   :  { %2423 = vmatpush3.bf16.msra.mxu0 %v2658_v60  ;;  %2449 = vmatpush3.bf16.msra.mxu1 %v2659_v61 }
  0xa5   :  { %v3172_v17 = vpack.c.bf16 %v267_v5, %v266_v6  ;;  %2424 = vmatprep.subr.bf16.mxu0 %v2660_v1  ;;  %2450 = vmatprep.subr.bf16.mxu1 %v2661_v2  ;;  %v149_v22 = vpop.permute.xlu1 %148  ;;  %v2682_v1 = vld [vmem:[%s3557_s2 + $0x218] sm:$0xff]   ;;  %v2684_v5 = vld [vmem:[%s3557_s2 + $0x250] sm:$0xff]  }
  0xa6   :  { %v144_v23 = vpop.permute.xlu0 %143  ;;  %v154_v24 = vmul.f32 %v149_v22, %v3160_v25  ;;  %v2685_v2 = vld [vmem:[%s3557_s2 + $0x2d8] sm:$0xff]   ;;  %v2691_v22 = vld [vmem:[%s3557_s2 + $0x290] sm:$0xff]  }
  0xa7   :  { %v153_v26 = vmul.f32 %v144_v23, %v3163_v12  ;;  %1061 = vmatprep.mubr.bf16.mxu1 %v3172_v17  ;;  %v2687_v6 = vld [vmem:[%s3557_s2 + $0x298] sm:$0xff]   ;;  %v2690_v23 = vld [vmem:[%s3557_s2 + $0x208] sm:$0xff]  }
  0xa8   :  { %2425 = vmatpush3.bf16.msra.mxu0 %v2662_v13  ;;  %2451 = vmatpush3.bf16.msra.mxu1 %v2663_v14  ;;  %v2686_v13 = vld [vmem:[%s3557_s2 + $0x210] sm:$0xff]  }
  0xa9   :  { %v721_v29 = vpack.c.bf16 %v154_v24, %v153_v26  ;;  %2452 = vmatprep.subr.bf16.mxu1 %v2664_v20  ;;  %2466 = vmatprep.subr.bf16.mxu0 %v2665_v21  ;;  %v264_v38 = vpop.permute.xlu1 %263  ;;  %v2689_v14 = vld [vmem:[%s3557_s2 + $0x2d0] sm:$0xff]   ;;  %v2688_v21 = vld [vmem:[%s3557_s2 + $0x248] sm:$0xff]  }
  0xaa   :  { %v259_v33 = vpop.permute.xlu0 %258  ;;  %v269_v39 = vmul.f32 %v264_v38, %v240_v9  ;;  %v2693_v24 = vld [vmem:[%s3557_s2 + $0x2c8] sm:$0xff]   ;;  %v2694_v38 = vld [vmem:[%s3557_s2 + $0x200] sm:$0xff]  }
  0xab   :  { %v268_v40 = vmul.f32 %v259_v33, %v234_v27  ;;  %1013 = vmatmul.mubr.bf16.vlgmr.msra.gmra.mxu0 %v3009_v35  ;;  %v2692_v27 = vld [vmem:[%s3557_s2 + $0x240] sm:$0xff]  }
  0xac   :  { %1020 = vmatprep.mubr.bf16.mxu0 %v721_v29  ;;  %2453 = vmatpush3.bf16.msra.mxu1 %v2666_v28  ;;  %v2698_v33 = vld [vmem:[%s3557_s2 + $0x280] sm:$0xff]  }
  0xad   :  { %v3201_v42 = vpack.c.bf16 %v269_v39, %v268_v40  ;;  %2467 = vmatpush3.bf16.msra.mxu0 %v2667_v36  ;;  %2494 = vmatprep.subr.bf16.mxu1 %v2669_v37  ;;  %v312_v47 = vpop.permute.xlu1 %311  ;;  %v2695_v36 = vld [vmem:[%s3557_s2 + $0x288] sm:$0xff]   ;;  %v2699_v40 = vld [vmem:[%s3557_s2 + $0x338] sm:$0xff]  }
  0xae   :  { %v307_v35 = vpop.permute.xlu0 %306  ;;  %2468 = vmatprep.subr.bf16.mxu0 %v2668_v32  ;;  %v325_v56 = vmul.f32 %v312_v47, %v3038_v53  ;;  %v2681_v53 = vld [vmem:[%s3557_s2 + $0x2e0] sm:$0xff]  }
  0xaf   :  { %1062 = vmatmul.mubr.bf16.vlgmr.msra.gmra.mxu1 %v3007_v34  ;;  %v324_v57 = vmul.f32 %v307_v35, %v2984_v19  ;;  %v2678_v19 = vld [vmem:[%s3557_s2 + $0x220] sm:$0xff]  }
  0xb0   :  { %1069 = vmatprep.mubr.bf16.mxu1 %v3201_v42  ;;  %2495 = vmatpush3.bf16.msra.mxu1 %v2671_v41 }
  0xb1   :  { %2469 = vmatpush3.bf16.msra.mxu0 %v2670_v45  ;;  %2496 = vmatprep.subr.bf16.mxu1 %v2673_v46  ;;  %v283_v11 = vpop.permute.xlu1 %282  ;;  %v3239_v60 = vpack.c.bf16 %v325_v56, %v324_v57  ;;  %v2700_v46 = vld [vmem:[%s3557_s2 + $0x370] sm:$0xff]  }
  0xb2   :  { %v278_v58 = vpop.permute.xlu0 %277  ;;  %2470 = vmatprep.subr.bf16.mxu0 %v2672_v48  ;;  %v296_v32 = vmul.f32 %v283_v11, %v3077_v8  ;;  %v2701_v8 = vld [vmem:[%s3557_s2 + $0x3f8] sm:$0xff]   ;;  %v2707_v48 = vld [vmem:[%s3557_s2 + $0x3b0] sm:$0xff]   ;;  %v2708_v11 = vld [vmem:[%s3557_s2 + $0x360] sm:$0xff]  }
  0xb3   :  { %1021 = vmatmul.mubr.bf16.gmra.mxu0 %v3058_v0  ;;  %v295_v39 = vmul.f32 %v278_v58, %v2998_v30  ;;  %v2703_v30 = vld [vmem:[%s3557_s2 + $0x3b8] sm:$0xff]  }
  0xb4   :  { %1371 = vmatprep.mubr.bf16.mxu0 %v3007_v34  ;;  %2497 = vmatpush3.bf16.msra.mxu1 %v2675_v49 }
  0xb5   :  { %2471 = vmatpush3.bf16.msra.mxu0 %v2674_v51  ;;  %2498 = vmatprep.subr.bf16.mxu1 %v2677_v54  ;;  %v322_v0 = vpop.permute.xlu1 %321  ;;  %v1078_v47 = vpack.c.bf16 %v296_v32, %v295_v39  ;;  %v2706_v54 = vld [vmem:[%s3557_s2 + $0x328] sm:$0xff]  }
  0xb6   :  { %v317_v61 = vpop.permute.xlu0 %316  ;;  %2472 = vmatprep.subr.bf16.mxu0 %v2676_v10  ;;  %v327_v41 = vmul.f32 %v322_v0, %v2981_v18  ;;  %v2702_v18 = vld [vmem:[%s3557_s2 + $0x330] sm:$0xff]   ;;  %v2719_v0 = vld [vmem:[%s3557_s2 + $0x398] sm:$0xff]  }
  0xb7   :  { %1070 = vmatmul.mubr.bf16.gmra.mxu1 %v3086_v15  ;;  %v326_v45 = vmul.f32 %v317_v61, %v3035_v52  ;;  %v2705_v52 = vld [vmem:[%s3557_s2 + $0x3f0] sm:$0xff]  }
  0xb8   :  { %2499 = vmatpush3.bf16.msra.mxu1 %v2679_v59  ;;  %1420 = vmatprep.mubr.bf16.mxu1 %v3239_v60  ;;  %v2714_v59 = vld [vmem:[%s3557_s2 + $0x318] sm:$0xff]   ;;  %v2718_v61 = vld [vmem:[%s3557_s2 + $0x310] sm:$0xff]  }
  0xb9   :  { %2473 = vmatpush3.bf16.msra.mxu0 %v2678_v19  ;;  %2500 = vmatprep.subr.bf16.mxu1 %v2681_v53  ;;  %v3255_v3 = vpop.permute.xlu1 %292  ;;  %v3333_v35 = vpack.c.bf16 %v327_v41, %v326_v45  ;;  %v2717_v19 = vld [vmem:[%s3557_s2 + $0x3d8] sm:$0xff]   ;;  %v2716_v53 = vld [vmem:[%s3557_s2 + $0x350] sm:$0xff]  }
  0xba   :  { %v3257_v4 = vpop.permute.xlu0 %287  ;;  %2474 = vmatprep.subr.bf16.mxu0 %v2680_v62  ;;  %v298_v49 = vmul.f32 %v3255_v3, %v3003_v31  ;;  %v2709_v31 = vld [vmem:[%s3557_s2 + $0x3e8] sm:$0xff]   ;;  %v2721_v62 = vld [vmem:[%s3557_s2 + $0x3d0] sm:$0xff]  }
  0xbb   :  { %v297_v51 = vmul.f32 %v3257_v4, %v3072_v7  ;;  %v2711_v7 = vld [vmem:[%s3557_s2 + $0x3a8] sm:$0xff]   ;;  %v2724_v4 = vld [vmem:[%s3557_s2 + $0x340] sm:$0xff]  }
  0xbc   :  { %2501 = vmatpush3.bf16.msra.mxu1 %v2683_v63  ;;  %v2720_v63 = vld [vmem:[%s3557_s2 + $0x348] sm:$0xff]  }
  0xbd   :  { %2475 = vmatpush3.bf16.msra.mxu0 %v2682_v1  ;;  %2502 = vmatprep.subr.bf16.mxu1 %v2685_v2  ;;  %v341_v16 = vpop.permute.xlu1 %340  ;;  %v1080_v58 = vpack.c.bf16 %v298_v49, %v297_v51  ;;  %v2723_v1 = vld [vmem:[%s3557_s2 + $0x390] sm:$0xff]   ;;  %v2722_v2 = vld [vmem:[%s3557_s2 + $0x308] sm:$0xff]  }
  0xbe   :  { %v336_v20 = vpop.permute.xlu0 %335  ;;  %2476 = vmatprep.subr.bf16.mxu0 %v2684_v5  ;;  %v354_v56 = vmul.f32 %v341_v16, %v3163_v12  ;;  %v2713_v12 = vld [vmem:[%s3557_s2 + $0x3e0] sm:$0xff]   ;;  %v2725_v3 = vld [vmem:[%s3557_s2 + $0x3c8] sm:$0xff]  }
  0xbf   :  { %v353_v57 = vmul.f32 %v336_v20, %v3119_v43  ;;  %v2710_v43 = vld [vmem:[%s3557_s2 + $0x320] sm:$0xff]   ;;  %v2727_v5 = vld [vmem:[%s3557_s2 + $0x388] sm:$0xff]  }
  0xc0   :  { %2503 = vmatpush3.bf16.msra.mxu1 %v2687_v6  ;;  %v2726_v6 = vld [vmem:[%s3557_s2 + $0x300] sm:$0xff]  }
  0xc1   :  { %2477 = vmatpush3.bf16.msra.mxu0 %v2686_v13  ;;  %2504 = vmatprep.subr.bf16.mxu1 %v2689_v14  ;;  %v351_v26 = vpop.permute.xlu1 %350  ;;  %v1437_v10 = vpack.c.bf16 %v354_v56, %v353_v57  ;;  %v2728_v13 = vld [vmem:[%s3557_s2 + $0x3c0] sm:$0xff]  }
  0xc2   :  { %v346_v9 = vpop.permute.xlu0 %345  ;;  %2478 = vmatprep.subr.bf16.mxu0 %v2688_v21  ;;  %v3287_v28 = vmul.f32 %v351_v26, %v3122_v44  ;;  %v2696_v44 = vld [vmem:[%s3557_s2 + $0x2c0] sm:$0xff]  }
  0xc3   :  { %v3290_v29 = vmul.f32 %v346_v9, %v3160_v25  ;;  %v2697_v25 = vld [vmem:[%s3557_s2 + $0x378] sm:$0xff]   ;;  %v2729_v14 = vld [vmem:[%s3557_s2 + $0x380] sm:$0xff]  }
  0xc4   :  { %2505 = vmatpush3.bf16.msra.mxu1 %v2691_v22 }
  0xc5   :  { %v1438_v37 = vpack.c.bf16 %v3287_v28, %v3290_v29  ;;  %2479 = vmatpush3.bf16.msra.mxu0 %v2690_v23  ;;  %2506 = vmatprep.subr.bf16.mxu1 %v2693_v24 }
  0xc6   :  { %2480 = vmatprep.subr.bf16.mxu0 %v2692_v27 }
  0xc8   :  { %2507 = vmatpush3.bf16.msra.mxu1 %v2695_v36 }
  0xc9   :  { %2481 = vmatpush3.bf16.msra.mxu0 %v2694_v38  ;;  %2508 = vmatprep.subr.bf16.mxu1 %v2696_v44 }
  0xca   :  { %2522 = vmatprep.subr.bf16.mxu0 %v2697_v25 }
  0xcc   :  { %1372 = vmatmul.mubr.bf16.vlgmr.msra.gmra.mxu0 %v3043_v55  ;;  %2509 = vmatpush3.bf16.msra.mxu1 %v2698_v33  ;;  %v2704_v55 = vld [vmem:[%s3557_s2 + $0x368] sm:$0xff]  }
  0xcd   :  { %1379 = vmatprep.mubr.bf16.mxu0 %v3086_v15  ;;  %2523 = vmatpush3.bf16.msra.mxu0 %v2699_v40 }
  0xce   :  { %2524 = vmatprep.subr.bf16.mxu0 %v2700_v46  ;;  %2550 = vmatprep.subr.bf16.mxu1 %v2701_v8 }
  0xcf   :  { %1421 = vmatmul.mubr.bf16.vlgmr.msra.gmra.mxu1 %v1078_v47 }
  0xd0   :  { %1428 = vmatprep.mubr.bf16.mxu1 %v3333_v35  ;;  %2551 = vmatpush3.bf16.msra.mxu1 %v2703_v30 }
  0xd1   :  { %2525 = vmatpush3.bf16.msra.mxu0 %v2702_v18  ;;  %2552 = vmatprep.subr.bf16.mxu1 %v2705_v52 }
  0xd2   :  { %2526 = vmatprep.subr.bf16.mxu0 %v2704_v55 }
  0xd4   :  { %1380 = vmatmul.mubr.bf16.gmra.mxu0 %v3133_v50  ;;  %2553 = vmatpush3.bf16.msra.mxu1 %v2707_v48  ;;  %v2712_v50 = vld [vmem:[%s3557_s2 + $0x358] sm:$0xff]  }
  0xd5   :  { %2527 = vmatpush3.bf16.msra.mxu0 %v2706_v54  ;;  %1728 = vmatprep.mubr.bf16.mxu0 %v3172_v17  ;;  %v2715_v17 = vld [vmem:[%s3557_s2 + $0x3a0] sm:$0xff]   ;;  %s2733_s2 = smov 64  }
  0xd6   :  { %2528 = vmatprep.subr.bf16.mxu0 %v2708_v11  ;;  %2554 = vmatprep.subr.bf16.mxu1 %v2709_v31 }
  0xd7   :  { %1429 = vmatmul.mubr.bf16.gmra.mxu1 %v1080_v58 }
  0xd8   :  { %2555 = vmatpush3.bf16.msra.mxu1 %v2711_v7  ;;  %1777 = vmatprep.mubr.bf16.mxu1 %v1437_v10 }
  0xd9   :  { %2529 = vmatpush3.bf16.msra.mxu0 %v2710_v43  ;;  %2556 = vmatprep.subr.bf16.mxu1 %v2713_v12 }
  0xda   :  { %2530 = vmatprep.subr.bf16.mxu0 %v2712_v50 }
  0xdc   :  { %2557 = vmatpush3.bf16.msra.mxu1 %v2715_v17 }
  0xdd   :  { %2531 = vmatpush3.bf16.msra.mxu0 %v2714_v59  ;;  %2558 = vmatprep.subr.bf16.mxu1 %v2717_v19 }
  0xde   :  { %2532 = vmatprep.subr.bf16.mxu0 %v2716_v53 }
  0xe0   :  { %2559 = vmatpush3.bf16.msra.mxu1 %v2719_v0 }
  0xe1   :  { %2533 = vmatpush3.bf16.msra.mxu0 %v2718_v61  ;;  %2560 = vmatprep.subr.bf16.mxu1 %v2721_v62 }
  0xe2   :  { %2534 = vmatprep.subr.bf16.mxu0 %v2720_v63 }
  0xe4   :  { %2561 = vmatpush3.bf16.msra.mxu1 %v2723_v1 }
  0xe5   :  { %2535 = vmatpush3.bf16.msra.mxu0 %v2722_v2  ;;  %2562 = vmatprep.subr.bf16.mxu1 %v2725_v3 }
  0xe6   :  { %2536 = vmatprep.subr.bf16.mxu0 %v2724_v4 }
  0xe8   :  { %2563 = vmatpush3.bf16.msra.mxu1 %v2727_v5 }
  0xe9   :  { %2537 = vmatpush3.bf16.msra.mxu0 %v2726_v6  ;;  %2564 = vmatprep.subr.bf16.mxu1 %v2728_v13 }
  0xec   :  { %1729 = vmatmul.mubr.bf16.vlgmr.msra.gmra.mxu0 %v3007_v34  ;;  %2565 = vmatpush3.bf16.msra.mxu1 %v2729_v14 }
  0xed   :  { %1736 = vmatprep.mubr.bf16.mxu0 %v3201_v42 }
  0xef   :  { %1778 = vmatmul.mubr.bf16.vlgmr.msra.gmra.mxu1 %v3239_v60 }
  0xf0   :  { %1785 = vmatprep.mubr.bf16.mxu1 %v1438_v37 }
  0xf4   :  { %1737 = vmatmul.mubr.bf16.gmra.mxu0 %v3086_v15 }
  0xf7   :  { %1786 = vmatmul.mubr.bf16.gmra.mxu1 %v3333_v35 }
 0x14b   :  { %v3427_v16 = vpop.f32.mrf.mxu0 }
 0x14d   :  { %v3429_v21 = vpop.f32.mrf.mxu0 }
 0x14f   :  { %v2398_v20 = vpop.f32.mrf.mxu1  ;;  %v2373_v34 = vpop.f32.mrf.mxu0 }
 0x151   :  { %v2399_v22 = vpop.f32.mrf.mxu1  ;;  %v2374_v24 = vpop.f32.mrf.mxu0 }
 0x152   :  { %v2375_v1 = vadd.f32 %v2374_v24, %v2373_v34  ;;  %v2400_v2 = vadd.f32 %v2399_v22, %v2398_v20 }
 0x153   :  { %v2401_v23 = vpop.f32.mrf.mxu1 }
 0x155   :  { %v2402_v26 = vpop.f32.mrf.mxu1 }
 0x156   :  { %v2403_v19 = vadd.f32 %v2402_v26, %v2401_v23 }
 0x158   :  { %v3445_v23 = vadd.f32 %v2403_v19, %v2375_v1 }
 0x15b   :  { %v2376_v42 = vpop.f32.mrf.mxu0 }
 0x15d   :  { %v2377_v9 = vpop.f32.mrf.mxu0 }
 0x15e   :  { %v2378_v26 = vadd.f32 %v2377_v9, %v2376_v42 }
 0x15f   :  { %v2404_v60 = vpop.f32.mrf.mxu1  ;;  %v3431_v28 = vpop.f32.mrf.mxu0 }
 0x160   :  { %3560 = vst [vmem:[#allocation2_spill] sm:$0xff] %v3431_v28 }
 0x161   :  { %v2405_v27 = vpop.f32.mrf.mxu1  ;;  %v3435_v15 = vpop.f32.mrf.mxu0 }
 0x162   :  { %3561 = vst [vmem:[#allocation3_spill] sm:$0xff] %v3435_v15  ;;  %v2406_v3 = vadd.f32 %v2405_v27, %v2404_v60 }
 0x163   :  { %v3433_v29 = vpop.f32.mrf.mxu1 }
 0x164   :  { %v3453_v27 = vadd.f32 %v2406_v3, %v2378_v26 }
 0x165   :  { %v3437_v37 = vpop.f32.mrf.mxu1 }
 0x16b   :  { %v2426_v36 = vpop.f32.mrf.mxu0 }
 0x16d   :  { %v2427_v44 = vpop.f32.mrf.mxu0 }
 0x16e   :  { %v2428_v4 = vadd.f32 %v2427_v44, %v2426_v36 }
 0x16f   :  { %v2454_v38 = vpop.f32.mrf.mxu1  ;;  %v2429_v33 = vpop.f32.mrf.mxu0 }
 0x171   :  { %v2455_v25 = vpop.f32.mrf.mxu1  ;;  %v2430_v39 = vpop.f32.mrf.mxu0 }
 0x172   :  { %v2431_v0 = vadd.f32 %v2430_v39, %v2429_v33  ;;  %v2456_v61 = vadd.f32 %v2455_v25, %v2454_v38 }
 0x173   :  { %v2457_v32 = vpop.f32.mrf.mxu1  ;;  %v2432_v41 = vpop.f32.mrf.mxu0 }
 0x174   :  { %v3447_v25 = vadd.f32 %v2456_v61, %v2428_v4 }
 0x175   :  { %v2458_v40 = vpop.f32.mrf.mxu1  ;;  %v2433_v46 = vpop.f32.mrf.mxu0 }
 0x176   :  { %v2459_v17 = vadd.f32 %v2458_v40, %v2457_v32  ;;  %v2372_v32 = vadd.f32 %v3429_v21, %v3427_v16  ;;  %v2434_v34 = vadd.f32 %v2433_v46, %v2432_v41 }
 0x177   :  { %v2460_v45 = vpop.f32.mrf.mxu1  ;;  %v3439_v30 = vpop.f32.mrf.mxu0 }
 0x178   :  { %v3441_v6 = vadd.f32 %v2459_v17, %v2431_v0  ;;  %v3451_v60 = vadd.f32 %v2400_v2, %v2372_v32 }
 0x179   :  { %v2461_v8 = vpop.f32.mrf.mxu1  ;;  %v2436_v18 = vpop.f32.mrf.mxu0 }
 0x17a   :  { %v2462_v13 = vadd.f32 %v2461_v8, %v2460_v45  ;;  %v1795_v16 = vadd.f32 %v3441_v6, %v3445_v23 }
 0x17b   :  { %v2463_v47 = vpop.f32.mrf.mxu1 }
 0x17c   :  { %v3457_v21 = vadd.f32 %v2462_v13, %v2434_v34 }
 0x17d   :  { %v2464_v35 = vpop.f32.mrf.mxu1 }
 0x17e   :  { %v2465_v42 = vadd.f32 %v2464_v35, %v2463_v47 }
 0x18c   :  { %v2482_v52 = vpop.f32.mrf.mxu0 }
 0x18e   :  { %v2483_v48 = vpop.f32.mrf.mxu0 }
 0x18f   :  { %v2510_v55 = vpop.f32.mrf.mxu1  ;;  %v2484_v20 = vadd.f32 %v2483_v48, %v2482_v52  ;;  %v2409_v52 = vadd.f32 %v3437_v37, %v3433_v29  ;;  %v1796_v29 = vadd.f32 %v3457_v21, %v3453_v27 }
 0x190   :  { %v2485_v51 = vpop.f32.mrf.mxu0 }
 0x191   :  { %v2511_v49 = vpop.f32.mrf.mxu1 }
 0x192   :  { %v2486_v56 = vpop.f32.mrf.mxu0  ;;  %v2512_v15 = vadd.f32 %v2511_v49, %v2510_v55  ;;  %v2437_v55 = vadd.f32 %v2436_v18, %v3439_v30 }
 0x193   :  { %v2513_v54 = vpop.f32.mrf.mxu1  ;;  %v2487_v14 = vadd.f32 %v2486_v56, %v2485_v51  ;;  %v3562_v56 = vld [vmem:[#allocation2_spill] sm:$0xff] }
 0x194   :  { %v2488_v11 = vpop.f32.mrf.mxu0  ;;  %v3459_v9 = vadd.f32 %v2512_v15, %v2484_v20  ;;  %v1075_v37 = vadd.f32 %v2465_v42, %v2437_v55 }
 0x195   :  { %v2514_v57 = vpop.f32.mrf.mxu1 }
 0x196   :  { %v2489_v7 = vpop.f32.mrf.mxu0  ;;  %v2515_v62 = vadd.f32 %v2514_v57, %v2513_v54  ;;  %v3563_v57 = vld [vmem:[#allocation3_spill] sm:$0xff] }
 0x197   :  { %v2516_v31 = vpop.f32.mrf.mxu1  ;;  %v2490_v40 = vadd.f32 %v2489_v7, %v2488_v11  ;;  %v2381_v11 = vadd.f32 %v3563_v57, %v3562_v56 }
 0x198   :  { %v2491_v43 = vpop.f32.mrf.mxu0  ;;  %v3449_v22 = vadd.f32 %v2515_v62, %v2487_v14 }
 0x199   :  { %v2517_v58 = vpop.f32.mrf.mxu1 }
 0x19a   :  { %v2492_v10 = vpop.f32.mrf.mxu0  ;;  %v2518_v36 = vadd.f32 %v2517_v58, %v2516_v31  ;;  %v1799_v48 = vadd.f32 %v1795_v16, %v3449_v22 }
 0x19b   :  { %v2519_v12 = vpop.f32.mrf.mxu1  ;;  %v2493_v18 = vadd.f32 %v2492_v10, %v2491_v43 }
 0x19c   :  { %v3467_v47 = vadd.f32 %v2518_v36, %v2490_v40 }
 0x19d   :  { %v2520_v59 = vpop.f32.mrf.mxu1 }
 0x19e   :  { %v2521_v15 = vadd.f32 %v2520_v59, %v2519_v12  ;;  %v716_v12 = vadd.f32 %v2409_v52, %v2381_v11  ;;  %v1800_v19 = vadd.f32 %v1796_v29, %v3467_v47 }
 0x1a0   :  { %v1797_v62 = vadd.f32 %v1075_v37, %v716_v12 }
 0x1ac   :  { %v2538_v50 = vpop.f32.mrf.mxu0 }
 0x1ae   :  { %v2539_v53 = vpop.f32.mrf.mxu0 }
 0x1af   :  { %v2566_v63 = vpop.f32.mrf.mxu1  ;;  %v2540_v41 = vadd.f32 %v2539_v53, %v2538_v50  ;;  %v1434_v53 = vadd.f32 %v2521_v15, %v2493_v18 }
 0x1b0   :  { %v2541_v5 = vpop.f32.mrf.mxu0 }
 0x1b1   :  { %v2567_v28 = vpop.f32.mrf.mxu1  ;;  %v1801_v10 = vadd.f32 %v1797_v62, %v1434_v53 }
 0x1b2   :  { %v2542_v38 = vpop.f32.mrf.mxu0  ;;  %v2568_v44 = vadd.f32 %v2567_v28, %v2566_v63  ;;  %v1794_v28 = vadd.f32 %v3447_v25, %v3451_v60 }
 0x1b3   :  { %v2569_v24 = vpop.f32.mrf.mxu1  ;;  %v2543_v45 = vadd.f32 %v2542_v38, %v2541_v5 }
 0x1b4   :  { %v2544_v33 = vpop.f32.mrf.mxu0  ;;  %v1780_v35 = vadd.f32 %v2568_v44, %v2540_v41  ;;  %v1798_v31 = vadd.f32 %v1794_v28, %v3459_v9 }
 0x1b5   :  { %v2570_v39 = vpop.f32.mrf.mxu1 }
 0x1b6   :  { %v2545_v46 = vpop.f32.mrf.mxu0  ;;  %v2571_v8 = vadd.f32 %v2570_v39, %v2569_v24  ;;  %v1802_v0 = vadd.f32 %v1798_v31, %v1780_v35 }
 0x1b7   :  { %v2572_v49 = vpop.f32.mrf.mxu1  ;;  %v2546_v7 = vadd.f32 %v2545_v46, %v2544_v33 }
 0x1b8   :  { %v3469_v51 = vadd.f32 %v2571_v8, %v2543_v45  ;;  %v2547_v54 = vpop.f32.mrf.mxu0  ;;  %v1807_v4 = vsel %vm1806_vm5, %v1802_v0, 0.0 }
 0x1b9   :  { %v2573_v30 = vpop.f32.mrf.mxu1 }
 0x1ba   :  { %v1803_v58 = vadd.f32 %v1799_v48, %v3469_v51  ;;  %v2574_v50 = vadd.f32 %v2573_v30, %v2572_v49  ;;  %v2548_v17 = vpop.f32.mrf.mxu0 }
 0x1bb   :  { %v2575_v59 = vpop.f32.mrf.mxu1  ;;  %v2549_v2 = vadd.f32 %v2548_v17, %v2547_v54 }
 0x1bc   :  { %v1788_v61 = vadd.f32 %v2574_v50, %v2546_v7  ;;  %v1808_v1 = vsel %vm1806_vm5, %v1803_v58, 0.0 }
 0x1bd   :  { %v2576_v63 = vpop.f32.mrf.mxu1  ;;  %v1809_v14 = vadd.f32 %v1808_v1, %v1807_v4 }
 0x1be   :  { %v1804_v3 = vadd.f32 %v1800_v19, %v1788_v61  ;;  %v2577_v43 = vadd.f32 %v2576_v63, %v2575_v59 }
 0x1c0   :  { %v1810_v5 = vsel %vm1806_vm5, %v1804_v3, 0.0  ;;  %v1791_v13 = vadd.f32 %v2577_v43, %v2549_v2 }
 0x1c1   :  { %v1811_v26 = vadd.f32 %v1810_v5, %v1809_v14 }
 0x1c2   :  { %v1805_v32 = vadd.f32 %v1801_v10, %v1791_v13 }
 0x1c4   :  { %v1812_v38 = vsel %vm1806_vm5, %v1805_v32, 0.0 }
 0x1c5   :  { %v1813_v34 = vadd.f32 %v1812_v38, %v1811_v26 }
 0x1c7   :  { %v1814_v20 = vrot.slane %v1813_v34, 4 }
 0x1c9   :  { %v1815_v24 = vadd.f32 %v1814_v20, %v1813_v34 }
 0x1cb   :  { %v1816_v36 = vrot.slane %v1815_v24, 2 }
 0x1cd   :  { %v1817_v44 = vadd.f32 %v1816_v36, %v1815_v24 }
 0x1cf   :  { %v1818_v33 = vrot.slane %v1817_v44, 1 }
 0x1d1   :  { %v1819_v16 = vadd.f32 %v1818_v33, %v1817_v44 }
 0x1d3   :  { %v1820_v42 = vmul.f32 0.0078125, %v1819_v16 }
 0x1d5   :  { %v3482_v39 = vsub.f32 %v716_v12, %v1820_v42  ;;  %v1832_v40 = vsub.f32 %v1075_v37, %v1820_v42  ;;  %v3485_v41 = vsub.f32 %v3451_v60, %v1820_v42  ;;  %v3488_v45 = vsub.f32 %v3445_v23, %v1820_v42 }
 0x1d6   :  { %v3491_v46 = vsub.f32 %v3453_v27, %v1820_v42  ;;  %v1829_v8 = vsub.f32 %v3447_v25, %v1820_v42  ;;  %v3496_v55 = vsub.f32 %v1434_v53, %v1820_v42  ;;  %v1830_v27 = vsub.f32 %v3441_v6, %v1820_v42 }
 0x1d7   :  { %v1828_v52 = vmul.f32 %v3482_v39, %v3482_v39  ;;  %v1836_v28 = vmul.f32 %v1832_v40, %v1832_v40  ;;  %v1825_v48 = vmul.f32 %v3485_v41, %v3485_v41  ;;  %v1826_v60 = vmul.f32 %v3488_v45, %v3488_v45 }
 0x1d8   :  { %v1827_v23 = vmul.f32 %v3491_v46, %v3491_v46  ;;  %v1831_v25 = vsub.f32 %v3457_v21, %v1820_v42  ;;  %v1833_v15 = vmul.f32 %v1829_v8, %v1829_v8  ;;  %v3507_v54 = vsub.f32 %v3459_v9, %v1820_v42 }
 0x1d9   :  { %v1840_v49 = vadd.f32 %v1836_v28, %v1828_v52  ;;  %v1834_v56 = vmul.f32 %v1830_v27, %v1830_v27  ;;  %v3510_v57 = vsub.f32 %v3449_v22, %v1820_v42  ;;  %v3513_v11 = vsub.f32 %v3467_v47, %v1820_v42 }
 0x1da   :  { %v1853_v29 = vsub.f32 %v1780_v35, %v1820_v42  ;;  %v1856_v37 = vsub.f32 %v1791_v13, %v1820_v42  ;;  %v1835_v31 = vmul.f32 %v1831_v25, %v1831_v25  ;;  %v1837_v30 = vadd.f32 %v1833_v15, %v1825_v48 }
 0x1db   :  { %v1845_v6 = vmul.f32 %v3507_v54, %v3507_v54  ;;  %v1848_v21 = vmul.f32 %v3496_v55, %v3496_v55  ;;  %v1838_v18 = vadd.f32 %v1834_v56, %v1826_v60  ;;  %v1846_v9 = vmul.f32 %v3510_v57, %v3510_v57 }
 0x1dc   :  { %v1854_v22 = vsub.f32 %v3469_v51, %v1820_v42  ;;  %v1839_v7 = vadd.f32 %v1835_v31, %v1827_v23  ;;  %v1847_v47 = vmul.f32 %v3513_v11, %v3513_v11  ;;  %v1855_v58 = vsub.f32 %v1788_v61, %v1820_v42 }
 0x1dd   :  { %v1849_v35 = vadd.f32 %v1845_v6, %v1837_v30  ;;  %v1852_v50 = vadd.f32 %v1848_v21, %v1840_v49  ;;  %v1850_v12 = vadd.f32 %v1846_v9, %v1838_v18  ;;  %v1857_v17 = vmul.f32 %v1853_v29, %v1853_v29 }
 0x1de   :  { %v1858_v59 = vmul.f32 %v1854_v22, %v1854_v22  ;;  %v1851_v19 = vadd.f32 %v1847_v47, %v1839_v7  ;;  %v1859_v53 = vmul.f32 %v1855_v58, %v1855_v58  ;;  %v1860_v0 = vmul.f32 %v1856_v37, %v1856_v37 }
 0x1df   :  { %v1861_v62 = vadd.f32 %v1857_v17, %v1849_v35 }
 0x1e0   :  { %v1862_v63 = vadd.f32 %v1858_v59, %v1850_v12  ;;  %v1863_v1 = vadd.f32 %v1859_v53, %v1851_v19  ;;  %v1864_v2 = vadd.f32 %v1860_v0, %v1852_v50 }
 0x1e1   :  { %v1865_v3 = vsel %vm1806_vm5, %v1861_v62, 0.0 }
 0x1e2   :  { %v1866_v51 = vsel %vm1806_vm5, %v1862_v63, 0.0  ;;  %v1868_v10 = vsel %vm1806_vm5, %v1863_v1, 0.0  ;;  %v1870_v61 = vsel %vm1806_vm5, %v1864_v2, 0.0 }
 0x1e3   :  { %v1867_v43 = vadd.f32 %v1866_v51, %v1865_v3 }
 0x1e5   :  { %v1869_v4 = vadd.f32 %v1868_v10, %v1867_v43 }
 0x1e7   :  { %v1871_v5 = vadd.f32 %v1870_v61, %v1869_v4 }
 0x1e9   :  { %v1872_v13 = vrot.slane %v1871_v5, 4 }
 0x1eb   :  { %v1873_v14 = vadd.f32 %v1872_v13, %v1871_v5 }
 0x1ed   :  { %v1874_v32 = vrot.slane %v1873_v14, 2 }
 0x1ef   :  { %v1875_v26 = vadd.f32 %v1874_v32, %v1873_v14 }
 0x1f1   :  { %v1876_v38 = vrot.slane %v1875_v26, 1 }
 0x1f3   :  { %v1877_v34 = vadd.f32 %v1876_v38, %v1875_v26 }
 0x1f5   :  { %v1878_v20 = vmul.f32 0.0078125, %v1877_v34 }
 0x1f7   :  { %v1879_v24 = vadd.f32 1e-05, %v1878_v20 }
 0x1f9   :  { %2730 = vrsqrt.f32 %v1879_v24 }
 0x206   :  { %v2731_v36 = vpop.eup %2730 }
 0x207   :  { %v1891_v44 = vmul.f32 %v2731_v36, %v1831_v25  ;;  %v1892_v33 = vmul.f32 %v2731_v36, %v1832_v40  ;;  %v1889_v16 = vmul.f32 %v2731_v36, %v1829_v8  ;;  %v1890_v42 = vmul.f32 %v2731_v36, %v1830_v27 }
 0x208   :  { %v1907_v52 = vmul.f32 %v2731_v36, %v1855_v58  ;;  %v1908_v28 = vmul.f32 %v2731_v36, %v1856_v37  ;;  %v1905_v48 = vmul.f32 %v2731_v36, %v1853_v29  ;;  %v1906_v60 = vmul.f32 %v2731_v36, %v1854_v22 }
 0x209   :  { %v1895_v23 = vmax.f32 %v1891_v44, 0.0  ;;  %v1896_v49 = vmax.f32 %v1892_v33, 0.0  ;;  %v1893_v15 = vmax.f32 %v1889_v16, 0.0  ;;  %v1894_v56 = vmax.f32 %v1890_v42, 0.0 }
 0x20a   :  { %v1911_v31 = vmax.f32 %v1907_v52, 0.0  ;;  %v1912_v30 = vmax.f32 %v1908_v28, 0.0  ;;  %v1909_v6 = vmax.f32 %v1905_v48, 0.0  ;;  %v1910_v21 = vmax.f32 %v1906_v60, 0.0 }
 0x20b   :  { %v2587_v18 = vpack.i.bf16 %v1896_v49, %v1895_v23  ;;  %v2582_v9 = vpack.i.bf16 %v1894_v56, %v1893_v15  ;;  %v1883_v7 = vmul.f32 %v2731_v36, %v3491_v46  ;;  %v1884_v40 = vmul.f32 %v2731_v36, %v3482_v39 }
 0x20c   :  { %v1881_v8 = vmul.f32 %v2731_v36, %v3485_v41  ;;  %v1882_v27 = vmul.f32 %v2731_v36, %v3488_v45  ;;  %v1899_v25 = vmul.f32 %v2731_v36, %v3513_v11  ;;  %v1900_v29 = vmul.f32 %v2731_v36, %v3496_v55 }
 0x20d   :  { %2588 = vrot.lane.b32.xlu1 %v2587_v18, %s2733_s2  ;;  %2583 = vrot.lane.b32.xlu0 %v2582_v9, %s2733_s2  ;;  %v1897_v37 = vmul.f32 %v2731_v36, %v3507_v54  ;;  %v1898_v22 = vmul.f32 %v2731_v36, %v3510_v57  ;;  %v2597_v47 = vpack.i.bf16 %v1912_v30, %v1911_v31  ;;  %v1887_v12 = vmax.f32 %v1883_v7, 0.0 }
 0x20e   :  { %v2592_v35 = vpack.i.bf16 %v1910_v21, %v1909_v6  ;;  %v1888_v17 = vmax.f32 %v1884_v40, 0.0  ;;  %v1885_v59 = vmax.f32 %v1881_v8, 0.0  ;;  %v1886_v11 = vmax.f32 %v1882_v27, 0.0 }
 0x20f   :  { %v1903_v19 = vmax.f32 %v1899_v25, 0.0  ;;  %v1904_v55 = vmax.f32 %v1900_v29, 0.0  ;;  %v1901_v54 = vmax.f32 %v1897_v37, 0.0  ;;  %v1902_v0 = vmax.f32 %v1898_v22, 0.0 }
 0x211   :  { %2598 = vrot.lane.b32.xlu1 %v2597_v47, %s2733_s2  ;;  %2593 = vrot.lane.b32.xlu0 %v2592_v35, %s2733_s2 }
 0x27f   :  { %v2589_v39 = vpop.permute.xlu1 %2588  ;;  %v2584_v46 = vpop.permute.xlu0 %2583 }
 0x280   :  { %v2591_v41 = vunpack.i.h.bf16 %v2589_v39  ;;  %v2590_v58 = vunpack.i.l.bf16 %v2589_v39  ;;  %v2586_v45 = vunpack.i.h.bf16 %v2584_v46  ;;  %v2585_v50 = vunpack.i.l.bf16 %v2584_v46 }
 0x282   :  { %v1947_v3 = vsel %vm1806_vm5, %v1887_v12, %v2590_v58  ;;  %v1948_v51 = vsel %vm1806_vm5, %v1888_v17, %v2591_v41  ;;  %v1945_v43 = vsel %vm1806_vm5, %v1885_v59, %v2585_v50  ;;  %v1946_v10 = vsel %vm1806_vm5, %v1886_v11, %v2586_v45 }
 0x283   :  { %v2599_v53 = vpop.permute.xlu1 %2598  ;;  %v2594_v57 = vpop.permute.xlu0 %2593 }
 0x284   :  { %v2601_v62 = vunpack.i.h.bf16 %v2599_v53  ;;  %v2600_v63 = vunpack.i.l.bf16 %v2599_v53  ;;  %v2596_v1 = vunpack.i.h.bf16 %v2594_v57  ;;  %v2595_v2 = vunpack.i.l.bf16 %v2594_v57 }
 0x286   :  { %v1952_v4 = vsel %vm1806_vm5, %v1904_v55, %v2601_v62  ;;  %v1951_v61 = vsel %vm1806_vm5, %v1903_v19, %v2600_v63  ;;  %v1950_v5 = vsel %vm1806_vm5, %v1902_v0, %v2596_v1  ;;  %v1949_v13 = vsel %vm1806_vm5, %v1901_v54, %v2595_v2 }
 0x287   :  { %v2343_v14 = vpack.c.bf16 %v1951_v61, %v1947_v3  ;;  %v2344_v32 = vpack.c.bf16 %v1952_v4, %v1948_v51  ;;  %v2341_v26 = vpack.c.bf16 %v1949_v13, %v1945_v43  ;;  %v2342_v38 = vpack.c.bf16 %v1950_v5, %v1946_v10 }
 0x289   :  { %1979 = vst [vmem:[%s3559_s3 + $0x10] sm:$0xff] %v2343_v14  ;;  %1980 = vst [vmem:[%s3559_s3 + $0x18] sm:$0xff] %v2344_v32 }
 0x28a   :  { %1977 = vst [vmem:[%s3559_s3] sm:$0xff] %v2341_v26  ;;  %1978 = vst [vmem:[%s3559_s3 + $0x8] sm:$0xff] %v2342_v38 }

// kernel: generator_forward.3
= control target key start
LH: loop header
LB: loop body
LE: loop exit
PB: predicated region body
PF: predicated region fallthrough
CT: control target
= control target key end

     0   :  { %8 = vsyncpa [#allocation4], 0  ;;  %s6595_s0 = inlined_call_operand.vmem [shape: bf16[2,64], index: 0, kind: input, shape index: {}]   ;;  %s6596_s1 = inlined_call_operand.hbm [shape: bf16[64,1024], index: 1, kind: input, shape index: {}]   ;;  %s6597_s2 = inlined_call_operand.hbm [shape: bf16[1024,2048], index: 2, kind: input, shape index: {}]   ;;  %s6598_s3 = inlined_call_operand.vmem [shape: bf16[2,2048], index: 3, kind: output, shape index: {}]  }
   0x1   :  { %9 = vsyncpa [#allocation6], 0 }
   0x2   :  { %11 = vsyncpa [#allocation6 + $0x1], 0  ;;  %s5705_s12 = smov 0   ;;  %s5707_s13 = smov 0  }
   0x3   :  { %s5709_s14 = smov 0   ;;  %s5711_s15 = smov 0  }
   0x4 LB: > { %s5724_s16 = sadd.s32 4294967295, %s5675_s15   ;;  %s5727_s17 = sadd.s32 1, %s5675_s15   ;;  %s5675_s15 = sphi %s5711_s15, %s6615_s15   ;;  %s5671_s14 = sphi %s5709_s14, %s6614_s14   ;;  %s5667_s13 = sphi %s5707_s13, %s6613_s13   ;;  %s5663_s12 = sphi %s5705_s12, %s6612_s12  }
   0x5   : > { %s63_s18 = ssub.s32 %s5675_s15, %s5727_s17  ;;  %s66_s19 = sadd.s32 1, %s5671_s14 }
   0x6   : > { %p64_p0 = scmp.eq.s32.totalorder %s63_s18, 0  ;;  %p73_p1 = scmp.ne.s32.totalorder %s5671_s14, %s5667_s13 }
   0x7   : > { %p74_p2 = scmp.eq.s32.totalorder %s5675_s15, 0  ;;  %p79_p3 = scmp.ne.s32.totalorder %s5667_s13, %s5663_s12 }
   0x8   : > { %s5737_s20 = scalar_select %p64_p0, %s5671_s14, %s66_s19  }
   0x9   : > { %p5739_p4 = por %p74_p2, %p73_p1  ;;  %p6599_p5 = scmp.eq.s32.totalorder %s5724_s16, 0 }
   0xa   : > { %p4924_p6 = scmp.ge.s32.totalorder %s5675_s15, 1  ;;  %p116_p7 = scmp.lt.s32.totalorder %s5675_s15, 3 }
   0xb   : > { %p5748_p8 = por %p6599_p5, %p79_p3  ;;  %s5677_s24 = smov [#allocation3]  }
   0xc   : > { %p5753_p10 = pnand %p4924_p6, %p116_p7  ;;  %s131_s25 = sshll.u32 %s5677_s24, 4  ;;  %s132_s25 = int_to_ptr.vmem [resolvable:$true] %s131_s25 }
   0xd   : > { %s6603_s22 = scalar_select %p5748_p8, 1, 0 }
   0xe   : > { %s6604_s23 = scalar_select %p5753_p10, 1, 0 }
   0xf   : > { %p5500_p11 = pneg %p5753_p10  ;;  %p5509_p13 = scmp.lt.s32.totalorder %s5675_s15, 2 }
  0x10   : > { %s145_s27 = sand.u32 1, %s5671_s14   ;;  %s5493_s28 = sshll.u32 %s5675_s15, 9 }
  0x11   : > { %p5761_p12 = pnand %p5500_p11, %p6599_p5  ;;  %p5770_p0 = pnand %p5509_p13, %p5739_p4 }
  0x12   : > { %s5594_s30 = scalar_lea.vmem %s132_s25, 4096  ;;  %p5602_p7 = scmp.lt.s32.totalorder %s132_s25, %s132_s25 }
  0x13   : > { %p5585_p1 = pneg %p5761_p12  ;;  %p5595_p2 = scmp.ne.s32.totalorder %s132_s25, %s5594_s30 }
  0x14   : > { %p5603_p11 = scmp.lt.s32.totalorder %s5594_s30, %s5594_s30 }
  0x15   : > { %p5597_p3 = pnand %p5595_p2, %p5585_p1 }
  0x16   : > { %p5604_p9 = por %p5603_p11, %p5602_p7 }
  0x17   : > { %p5598_p6 = pneg %p5597_p3 }
  0x19   : > { %p5605_p5 = pnand %p5604_p9, %p5598_p6 }
  0x1b   : > { %5608 = shalt.err (!%p5605_p5)
}
  0x1c   : > { %s5678_s4 = smov 512   ;;  %s5679_s5 = smov 32  }
  0x1d   : > { %5503 = dma.hbm_to_vmem [thread:$0]  (!%p5761_p12), %s6596_s1, 4096, %s132_s25, [#allocation4], %s5678_s4, %s5678_s4, %s5679_s5  }
  0x1e   : > { %s4927_s8 = sshll.u32 %s145_s27, 12  ;;  %s5787_s11 = scalar_lea.hbm %s6597_s2, %s5493_s28 }
  0x1f   : > { %s149_s12 = scalar_lea.vmem [#allocation5], %s4927_s8  ;;  %s5791_s18 = scalar_lea.sflag [#allocation6], %s145_s27 }
  0x20   : > { %s156_s15 = sshll.u32 %s149_s12, 4  ;;  %s5609_s19 = scalar_lea.hbm %s5787_s11, 65536  ;;  %s5789_s15 = int_to_ptr.vmem [resolvable:$true] %s156_s15 }
  0x21   : > { %p5610_p4 = scmp.ne.s32.totalorder %s5787_s11, %s5609_s19  ;;  %p5611_p5 = pneg %p5770_p0 }
  0x22   : > { %s5614_s25 = scalar_lea.hbm %s6597_s2, 131072  ;;  %p5615_p13 = scmp.lt.s32.totalorder %s5787_s11, %s6597_s2 }
  0x23   : > { %p5612_p9 = pnand %p5611_p5, %p5610_p4  ;;  %p5616_p1 = scmp.lt.s32.totalorder %s5614_s25, %s5609_s19 }
  0x25   : > { %p5613_p12 = pneg %p5612_p9  ;;  %p5617_p2 = por %p5616_p1, %p5615_p13 }
  0x27   : > { %p5618_p3 = pnand %p5617_p2, %p5613_p12 }
  0x29   : > { %5621 = shalt.err (!%p5618_p3)
}
  0x2a   : > { %s5622_s27 = scalar_lea.vmem %s5789_s15, 65536  ;;  %s5680_s30 = smov [#allocation5]  }
  0x2b   : > { %p5623_p6 = scmp.ne.s32.totalorder %s5789_s15, %s5622_s27  ;;  %s5627_s6 = sshll.u32 %s5680_s30, 4  ;;  %s5628_s6 = int_to_ptr.vmem [resolvable:$false] %s5627_s6 }
  0x2c   : > { %s5629_s7 = scalar_lea.vmem %s5628_s6, 131072  ;;  %p5630_p4 = scmp.lt.s32.totalorder %s5789_s15, %s5628_s6 }
  0x2d   : > { %p5625_p7 = pnand %p5623_p6, %p5611_p5  ;;  %p5631_p9 = scmp.lt.s32.totalorder %s5629_s7, %s5622_s27 }
  0x2f   : > { %p5626_p11 = pneg %p5625_p7  ;;  %p5632_p8 = por %p5631_p9, %p5630_p4 }
  0x31   : > { %p5633_p10 = pnand %p5632_p8, %p5626_p11 }
  0x33   : > { %5636 = shalt.err (!%p5633_p10)
}
  0x34   : > { %s5681_s8 = smov 1024   ;;  %p6607_p5 = scmp.ne.s32.totalorder %s6604_s23, 0 }
  0x35   : > { %5507 = dma.hbm_to_vmem [thread:$0]  (!%p5770_p0), %s5787_s11, 65536, %s5789_s15, %s5791_s18, %s5681_s8, %s5678_s4, %s5679_s5  }
  0x36   : > { %168 = sbr.rel (%p6607_p5) target bundleno = 1152 (0x480), region = 32  ;;  %p6608_p12 = scmp.eq.s32.totalorder (!%p6607_p5), %s5724_s16, 0 }
  0x3b   : > { %5654 = dma.done.wait (%p6608_p12), [#allocation4], 4096   ;;  %p6609_p13 = pmov %p6608_p12 }
  0x3c   : > { %s174_s9 = sand.u32 1, %s5667_s13   ;;  %p6610_p8 = scmp.ne.s32.totalorder %s6603_s22, 0 }
  0x3d   : > { %5656 = vsyncadd (%p6609_p13), [#allocation4], 4294963200  ;;  %s4932_s10 = sshll.u32 %s174_s9, 12  ;;  %s175_s29 = scalar_lea.sflag [#allocation6], %s174_s9 }
  0x3e   : > { %s5821_s12 = scalar_lea.vmem [#allocation5], %s4932_s10 }
  0x3f   : > { %5658 = dma.done.wait (%p6610_p8), %s175_s29, 65536  }
  0x40   : > { %5660 = vsyncadd (%p6610_p8), %s175_s29, 4294901760  ;;  %s4933_s23 = sshll.u32 %s5724_s16, 3  ;;  %p6611_p0 = scmp.ne.s32.totalorder %s5724_s16, 0 }
  0x41   : > { %p202_p10 = scmp.lt.s32.totalorder %s4933_s23, 15 }
  0x42   : > { %210 = sbr.rel (%p6611_p0) target bundleno = 372 (0x174), region = 44 }
  0x43   : > { %s6617_s23 = smov (!%p202_p10, %s4933_s23), 15 }
  0x44   : > { %s204_s11 = scalar_lea.vmem %s6598_s3, %s6617_s23 }
  0x47   : > { %v236_v0 = vld [vmem:[#allocation3 + $0xc0] sm:$0xff]  ;;  %v237_v2 = vld [vmem:[#allocation3 + $0xc8] sm:$0xff]  ;;  %v5682_v8 = vmov 0   ;;  %v238_v31 = vld [vmem:[#allocation3 + $0xd0] sm:$0xff]  ;;  %vm404_vm0 = vcmask 523264   ;;  %vm572_vm1 = vcmask 1041408  }
  0x48   : > { %v240_v1 = vld [vmem:[#allocation3 + $0xe0] sm:$0xff]  ;;  %v241_v4 = vld [vmem:[#allocation3 + $0xe8] sm:$0xff]  ;;  %440 = vmatprep.mubr.bf16.mxu0 %v5682_v8  ;;  %481 = vmatprep.mubr.bf16.mxu1 %v5682_v8  ;;  %v242_v32 = vld [vmem:[#allocation3 + $0xf0] sm:$0xff] }
  0x49   : > { %v4960_v3 = vcombine.high %v236_v0, %v240_v1  ;;  %v4959_v5 = vcombine.low %v236_v0, %v240_v1  ;;  %v228_v6 = vld [vmem:[#allocation3 + $0x80] sm:$0xff]  ;;  %v4962_v9 = vcombine.high %v237_v2, %v241_v4  ;;  %v4961_v10 = vcombine.low %v237_v2, %v241_v4  ;;  %v229_v12 = vld [vmem:[#allocation3 + $0x88] sm:$0xff]  ;;  %v239_v33 = vld [vmem:[#allocation3 + $0xd8] sm:$0xff] }
  0x4a   : > { %v232_v7 = vld [vmem:[#allocation3 + $0xa0] sm:$0xff]  ;;  %v233_v13 = vld [vmem:[#allocation3 + $0xa8] sm:$0xff]  ;;  %v243_v34 = vld [vmem:[#allocation3 + $0xf8] sm:$0xff]  ;;  %v4964_v37 = vcombine.high %v238_v31, %v242_v32  ;;  %v4963_v44 = vcombine.low %v238_v31, %v242_v32 }
  0x4b   : > { %v4952_v11 = vcombine.high %v228_v6, %v232_v7  ;;  %v220_v14 = vld [vmem:[#allocation3 + $0x40] sm:$0xff]  ;;  %416 = vmatprep.subr.bf16.mxu0 %v4960_v3  ;;  %v4954_v15 = vcombine.high %v229_v12, %v233_v13  ;;  %v221_v17 = vld [vmem:[#allocation3 + $0x48] sm:$0xff]  ;;  %457 = vmatprep.subr.bf16.mxu1 %v4962_v9  ;;  %v4951_v19 = vcombine.low %v228_v6, %v232_v7  ;;  %v230_v39 = vld [vmem:[#allocation3 + $0x90] sm:$0xff] }
  0x4c   : > { %v224_v16 = vld [vmem:[#allocation3 + $0x60] sm:$0xff]  ;;  %v225_v18 = vld [vmem:[#allocation3 + $0x68] sm:$0xff]  ;;  %417 = vmatpush1.bf16.msra.mxu0 %v4959_v5  ;;  %458 = vmatpush1.bf16.msra.mxu1 %v4961_v10  ;;  %v4953_v20 = vcombine.low %v229_v12, %v233_v13  ;;  %v4966_v38 = vcombine.high %v239_v33, %v243_v34  ;;  %v234_v40 = vld [vmem:[#allocation3 + $0xb0] sm:$0xff]  ;;  %v4965_v45 = vcombine.low %v239_v33, %v243_v34 }
  0x4d   : > { %418 = vmatprep.subr.bf16.mxu0 %v4952_v11  ;;  %v4944_v21 = vcombine.high %v220_v14, %v224_v16  ;;  %459 = vmatprep.subr.bf16.mxu1 %v4954_v15  ;;  %v4946_v22 = vcombine.high %v221_v17, %v225_v18  ;;  %v212_v23 = vld [vmem:[#allocation3] sm:$0xff]  ;;  %v213_v25 = vld [vmem:[#allocation3 + $0x8] sm:$0xff]  ;;  %v4943_v27 = vcombine.low %v220_v14, %v224_v16  ;;  %v231_v41 = vld [vmem:[#allocation3 + $0x98] sm:$0xff] }
  0x4e   : > { %v216_v24 = vld [vmem:[#allocation3 + $0x20] sm:$0xff]  ;;  %v217_v26 = vld [vmem:[#allocation3 + $0x28] sm:$0xff]  ;;  %v4945_v28 = vcombine.low %v221_v17, %v225_v18  ;;  %v235_v42 = vld [vmem:[#allocation3 + $0xb8] sm:$0xff]  ;;  %v4956_v46 = vcombine.high %v230_v39, %v234_v40  ;;  %v4955_v52 = vcombine.low %v230_v39, %v234_v40 }
  0x4f   : > { %v4936_v29 = vcombine.high %v212_v23, %v216_v24  ;;  %v4938_v30 = vcombine.high %v213_v25, %v217_v26  ;;  %v4935_v35 = vcombine.low %v212_v23, %v216_v24  ;;  %v4937_v36 = vcombine.low %v213_v25, %v217_v26  ;;  %v211_v43 = vld [vmem:[%s6595_s0] sm:$0x1]  ;;  %v222_v48 = vld [vmem:[#allocation3 + $0x50] sm:$0xff] }
  0x50   : > { %419 = vmatpush1.bf16.msra.mxu0 %v4951_v19  ;;  %460 = vmatpush1.bf16.msra.mxu1 %v4953_v20  ;;  %v4958_v47 = vcombine.high %v231_v41, %v235_v42  ;;  %v226_v49 = vld [vmem:[#allocation3 + $0x70] sm:$0xff]  ;;  %v223_v50 = vld [vmem:[#allocation3 + $0x58] sm:$0xff]  ;;  %v4957_v53 = vcombine.low %v231_v41, %v235_v42 }
  0x51   : > { %420 = vmatprep.subr.bf16.mxu0 %v4944_v21  ;;  %461 = vmatprep.subr.bf16.mxu1 %v4946_v22  ;;  %v227_v51 = vld [vmem:[#allocation3 + $0x78] sm:$0xff]  ;;  %v4948_v54 = vcombine.high %v222_v48, %v226_v49  ;;  %v214_v56 = vld [vmem:[#allocation3 + $0x10] sm:$0xff]  ;;  %v4947_v60 = vcombine.low %v222_v48, %v226_v49 }
  0x52   : > { %v4950_v55 = vcombine.high %v223_v50, %v227_v51  ;;  %v218_v57 = vld [vmem:[#allocation3 + $0x30] sm:$0xff]  ;;  %v215_v58 = vld [vmem:[#allocation3 + $0x18] sm:$0xff]  ;;  %v4949_v61 = vcombine.low %v223_v50, %v227_v51 }
  0x53   : > { %v219_v59 = vld [vmem:[#allocation3 + $0x38] sm:$0xff]  ;;  %v4940_v62 = vcombine.high %v214_v56, %v218_v57  ;;  %v4939_v0 = vcombine.low %v214_v56, %v218_v57 }
  0x54   : > { %421 = vmatpush1.bf16.msra.mxu0 %v4943_v27  ;;  %462 = vmatpush1.bf16.msra.mxu1 %v4945_v28  ;;  %v4942_v63 = vcombine.high %v215_v58, %v219_v59  ;;  %v4941_v1 = vcombine.low %v215_v58, %v219_v59 }
  0x55   : > { %422 = vmatprep.subr.bf16.mxu0 %v4936_v29  ;;  %463 = vmatprep.subr.bf16.mxu1 %v4938_v30 }
  0x58   : > { %423 = vmatpush1.bf16.msra.mxu0 %v4935_v35  ;;  %464 = vmatpush1.bf16.msra.mxu1 %v4937_v36 }
  0x59   : > { %498 = vmatprep.subr.bf16.mxu0 %v4964_v37  ;;  %539 = vmatprep.subr.bf16.mxu1 %v4966_v38 }
  0x5b   : > { %4967 = vmatmul.mubr.msk.bf16.vlgmr.msra.gmra.mxu0 %vm404_vm0, %v211_v43  ;;  %4968 = vmatmul.mubr.msk.bf16.vlgmr.msra.gmra.mxu1 %vm404_vm0, %v211_v43 }
  0x5c   : > { %499 = vmatpush1.bf16.msra.mxu0 %v4963_v44  ;;  %540 = vmatpush1.bf16.msra.mxu1 %v4965_v45 }
  0x5d   : > { %500 = vmatprep.subr.bf16.mxu0 %v4956_v46  ;;  %541 = vmatprep.subr.bf16.mxu1 %v4958_v47 }
  0x5e   : > { %522 = vmatprep.mubr.bf16.mxu0 %v5682_v8  ;;  %563 = vmatprep.mubr.bf16.mxu1 %v5682_v8 }
  0x60   : > { %501 = vmatpush1.bf16.msra.mxu0 %v4955_v52  ;;  %542 = vmatpush1.bf16.msra.mxu1 %v4957_v53 }
  0x61   : > { %502 = vmatprep.subr.bf16.mxu0 %v4948_v54  ;;  %543 = vmatprep.subr.bf16.mxu1 %v4950_v55 }
  0x64   : > { %503 = vmatpush1.bf16.msra.mxu0 %v4947_v60  ;;  %544 = vmatpush1.bf16.msra.mxu1 %v4949_v61 }
  0x65   : > { %504 = vmatprep.subr.bf16.mxu0 %v4940_v62  ;;  %545 = vmatprep.subr.bf16.mxu1 %v4942_v63 }
  0x68   : > { %505 = vmatpush1.bf16.msra.mxu0 %v4939_v0  ;;  %546 = vmatpush1.bf16.msra.mxu1 %v4941_v1 }
  0x6b   : > { %4969 = vmatmul.mubr.msk.bf16.vlgmr.msra.gmra.mxu0 %vm404_vm0, %v211_v43  ;;  %4970 = vmatmul.mubr.msk.bf16.vlgmr.msra.gmra.mxu1 %vm404_vm0, %v211_v43 }
 0x11b   : > { %v442_v2 = vpop.f32.mrf.mxu0  ;;  %v483_v4 = vpop.f32.mrf.mxu1 }
 0x11c   : > { %v573_v3 = vsel %vm572_vm1, %v442_v2, 0.0  ;;  %v587_v6 = vsel %vm572_vm1, %v483_v4, 0.0 }
 0x11d   : > { %v574_v5 = vrot.slane %v573_v3, 4  ;;  %v444_v7 = vpop.f32.mrf.mxu0  ;;  %v588_v8 = vrot.slane %v587_v6, 4  ;;  %v485_v10 = vpop.f32.mrf.mxu1 }
 0x11e   : > { %v580_v9 = vsel %vm572_vm1, %v444_v7, 0.0  ;;  %v594_v13 = vsel %vm572_vm1, %v485_v10, 0.0 }
 0x11f   : > { %v575_v11 = vadd.f32 %v574_v5, %v573_v3  ;;  %v581_v12 = vrot.slane %v580_v9, 4  ;;  %v446_v14 = vpop.f32.mrf.mxu0  ;;  %v589_v15 = vadd.f32 %v588_v8, %v587_v6  ;;  %v595_v16 = vrot.slane %v594_v13, 4  ;;  %v487_v17 = vpop.f32.mrf.mxu1 }
 0x121   : > { %v576_v18 = vrot.slane %v575_v11, 2  ;;  %v582_v19 = vadd.f32 %v581_v12, %v580_v9  ;;  %v447_v20 = vpop.f32.mrf.mxu0  ;;  %v590_v21 = vrot.slane %v589_v15, 2  ;;  %v596_v22 = vadd.f32 %v595_v16, %v594_v13  ;;  %v488_v23 = vpop.f32.mrf.mxu1 }
 0x123   : > { %v577_v24 = vadd.f32 %v576_v18, %v575_v11  ;;  %v583_v25 = vrot.slane %v582_v19, 2  ;;  %v591_v26 = vadd.f32 %v590_v21, %v589_v15  ;;  %v597_v27 = vrot.slane %v596_v22, 2 }
 0x125   : > { %v578_v28 = vrot.slane %v577_v24, 1  ;;  %v584_v29 = vadd.f32 %v583_v25, %v582_v19  ;;  %v592_v30 = vrot.slane %v591_v26, 1  ;;  %v598_v31 = vadd.f32 %v597_v27, %v596_v22 }
 0x127   : > { %v579_v32 = vadd.f32 %v578_v28, %v577_v24  ;;  %v585_v33 = vrot.slane %v584_v29, 1  ;;  %v593_v34 = vadd.f32 %v592_v30, %v591_v26  ;;  %v599_v35 = vrot.slane %v598_v31, 1 }
 0x129   : > { %v630_v36 = vmul.f32 0.5, %v579_v32  ;;  %v586_v37 = vadd.f32 %v585_v33, %v584_v29  ;;  %v632_v38 = vmul.f32 0.5, %v593_v34  ;;  %v600_v39 = vadd.f32 %v599_v35, %v598_v31 }
 0x12b   : > { %v5851_v40 = vsub.f32 %v442_v2, %v630_v36  ;;  %v631_v41 = vmul.f32 0.5, %v586_v37  ;;  %v524_v42 = vpop.f32.mrf.mxu0  ;;  %v5853_v43 = vsub.f32 %v483_v4, %v632_v38  ;;  %v633_v44 = vmul.f32 0.5, %v600_v39  ;;  %v565_v46 = vpop.f32.mrf.mxu1 }
 0x12c   : > { %v601_v45 = vsel %vm572_vm1, %v524_v42, 0.0  ;;  %v615_v50 = vsel %vm572_vm1, %v565_v46, 0.0 }
 0x12d   : > { %v646_v47 = vmul.f32 %v5851_v40, %v5851_v40  ;;  %v5858_v48 = vsub.f32 %v444_v7, %v631_v41  ;;  %v602_v49 = vrot.slane %v601_v45, 4  ;;  %v526_v51 = vpop.f32.mrf.mxu0  ;;  %v648_v52 = vmul.f32 %v5853_v43, %v5853_v43  ;;  %v5866_v56 = vpop.f32.mrf.mxu1 }
 0x12e   : > { %v5863_v53 = vsub.f32 %v485_v10, %v633_v44  ;;  %v616_v54 = vrot.slane %v615_v50, 4  ;;  %v608_v55 = vsel %vm572_vm1, %v526_v51, 0.0  ;;  %v622_v18 = vsel %vm572_vm1, %v5866_v56, 0.0 }
 0x12f   : > { %v654_v57 = vsel %vm572_vm1, %v646_v47, 0.0  ;;  %v647_v58 = vmul.f32 %v5858_v48, %v5858_v48  ;;  %v603_v59 = vadd.f32 %v602_v49, %v601_v45  ;;  %v609_v60 = vrot.slane %v608_v55, 4  ;;  %v528_v61 = vpop.f32.mrf.mxu0  ;;  %v569_v2 = vpop.f32.mrf.mxu1 }
 0x130   : > { %v655_v62 = vrot.slane %v654_v57, 4  ;;  %v668_v63 = vsel %vm572_vm1, %v648_v52, 0.0  ;;  %v649_v0 = vmul.f32 %v5863_v53, %v5863_v53  ;;  %v617_v1 = vadd.f32 %v616_v54, %v615_v50 }
 0x131   : > { %v669_v3 = vrot.slane %v668_v63, 4  ;;  %v661_v4 = vsel %vm572_vm1, %v647_v58, 0.0  ;;  %v604_v5 = vrot.slane %v603_v59, 2  ;;  %v610_v6 = vadd.f32 %v609_v60, %v608_v55  ;;  %v529_v7 = vpop.f32.mrf.mxu0  ;;  %v570_v11 = vpop.f32.mrf.mxu1 }
 0x132   : > { %v662_v8 = vrot.slane %v661_v4, 4  ;;  %v675_v9 = vsel %vm572_vm1, %v649_v0, 0.0  ;;  %v618_v10 = vrot.slane %v617_v1, 2  ;;  %v656_v15 = vadd.f32 %v655_v62, %v654_v57 }
 0x133   : > { %v676_v12 = vrot.slane %v675_v9, 4  ;;  %v605_v13 = vadd.f32 %v604_v5, %v603_v59  ;;  %v611_v14 = vrot.slane %v610_v6, 2  ;;  %v670_v19 = vadd.f32 %v669_v3, %v668_v63 }
 0x134   : > { %v663_v16 = vadd.f32 %v662_v8, %v661_v4  ;;  %v619_v17 = vadd.f32 %v618_v10, %v617_v1  ;;  %v623_v25 = vrot.slane %v622_v18, 4  ;;  %v657_v29 = vrot.slane %v656_v15, 2 }
 0x135   : > { %v677_v20 = vadd.f32 %v676_v12, %v675_v9  ;;  %v606_v21 = vrot.slane %v605_v13, 1  ;;  %v612_v22 = vadd.f32 %v611_v14, %v610_v6  ;;  %v671_v32 = vrot.slane %v670_v19, 2 }
 0x136   : > { %v664_v23 = vrot.slane %v663_v16, 2  ;;  %v620_v24 = vrot.slane %v619_v17, 1  ;;  %v624_v31 = vadd.f32 %v623_v25, %v622_v18  ;;  %v658_v44 = vadd.f32 %v657_v29, %v656_v15 }
 0x137   : > { %v678_v26 = vrot.slane %v677_v20, 2  ;;  %v607_v27 = vadd.f32 %v606_v21, %v605_v13  ;;  %v613_v28 = vrot.slane %v612_v22, 1  ;;  %v672_v49 = vadd.f32 %v671_v32, %v670_v19 }
 0x138   : > { %v621_v30 = vadd.f32 %v620_v24, %v619_v17  ;;  %v665_v35 = vadd.f32 %v664_v23, %v663_v16  ;;  %v625_v37 = vrot.slane %v624_v31, 2 }
 0x139   : > { %v634_v33 = vmul.f32 0.5, %v607_v27  ;;  %v614_v34 = vadd.f32 %v613_v28, %v612_v22  ;;  %v679_v38 = vadd.f32 %v678_v26, %v677_v20  ;;  %v673_v62 = vrot.slane %v672_v49, 1 }
 0x13a   : > { %v636_v36 = vmul.f32 0.5, %v621_v30  ;;  %v626_v47 = vadd.f32 %v625_v37, %v624_v31  ;;  %v666_v54 = vrot.slane %v665_v35, 1 }
 0x13b   : > { %v5878_v39 = vsub.f32 %v524_v42, %v634_v33  ;;  %v635_v41 = vmul.f32 0.5, %v614_v34  ;;  %v680_v58 = vrot.slane %v679_v38, 1  ;;  %v674_v10 = vadd.f32 %v673_v62, %v672_v49 }
 0x13c   : > { %v5880_v45 = vsub.f32 %v565_v46, %v636_v36  ;;  %v627_v57 = vrot.slane %v626_v47, 1  ;;  %v659_v46 = vrot.slane %v658_v44, 1  ;;  %v667_v0 = vadd.f32 %v666_v54, %v665_v35 }
 0x13d   : > { %v650_v50 = vmul.f32 %v5878_v39, %v5878_v39  ;;  %v5884_v52 = vsub.f32 %v526_v51, %v635_v41  ;;  %v681_v4 = vadd.f32 %v680_v58, %v679_v38  ;;  %v712_v22 = vmul.f32 0.5, %v674_v10 }
 0x13e   : > { %v652_v55 = vmul.f32 %v5880_v45, %v5880_v45  ;;  %v628_v3 = vadd.f32 %v627_v57, %v626_v47  ;;  %v660_v6 = vadd.f32 %v659_v46, %v658_v44  ;;  %v711_v12 = vmul.f32 0.5, %v667_v0 }
 0x13f   : > { %v682_v42 = vsel %vm572_vm1, %v650_v50, 0.0  ;;  %v651_v59 = vmul.f32 %v5884_v52, %v5884_v52  ;;  %v713_v16 = vmul.f32 0.5, %v681_v4  ;;  %v720_v33 = vadd.f32 1e-05, %v712_v22 }
 0x140   : > { %v683_v60 = vrot.slane %v682_v42, 4  ;;  %v696_v61 = vsel %vm572_vm1, %v652_v55, 0.0  ;;  %v637_v9 = vmul.f32 0.5, %v628_v3  ;;  %v710_v18 = vmul.f32 0.5, %v660_v6 }
 0x141   : > { %v697_v63 = vrot.slane %v696_v61, 4  ;;  %v689_v51 = vsel %vm572_vm1, %v651_v59, 0.0  ;;  %v719_v24 = vadd.f32 1e-05, %v711_v12  ;;  %v721_v28 = vadd.f32 1e-05, %v713_v16 }
 0x142   : > { %v684_v1 = vadd.f32 %v683_v60, %v682_v42  ;;  %v690_v2 = vrot.slane %v689_v51, 4  ;;  %v5894_v15 = vsub.f32 %v5866_v56, %v637_v9  ;;  %v718_v56 = vadd.f32 1e-05, %v710_v18 }
 0x143   : > { %v698_v5 = vadd.f32 %v697_v63, %v696_v61  ;;  %5550 = vrsqrt.f32 %v719_v24  ;;  %v5683_v46 = vmov 1966171168   ;;  %v773_v61 = vlaneseq }
 0x144   : > { %v685_v7 = vrot.slane %v684_v1, 2  ;;  %v691_v8 = vadd.f32 %v690_v2, %v689_v51  ;;  %v653_v21 = vmul.f32 %v5894_v15, %v5894_v15  ;;  %5552 = vrsqrt.f32 %v721_v28 }
 0x145   : > { %v699_v11 = vrot.slane %v698_v5, 2  ;;  %5554 = vrsqrt.f32 %v718_v56  ;;  %v771_v60 = vunpack.c.l.s4 %v5683_v46 }
 0x146   : > { %v686_v13 = vadd.f32 %v685_v7, %v684_v1  ;;  %v692_v14 = vrot.slane %v691_v8, 2  ;;  %v703_v27 = vsel %vm572_vm1, %v653_v21, 0.0  ;;  %5556 = vrsqrt.f32 %v720_v33 }
 0x147   : > { %v700_v17 = vadd.f32 %v699_v11, %v698_v5  ;;  %v704_v30 = vrot.slane %v703_v27, 4  ;;  %v772_v4 = vunpack.c.0.s8 %v771_v60  ;;  %v774_v5 = vshrl.u32 %v773_v61, 7 }
 0x148   : > { %v687_v19 = vrot.slane %v686_v13, 1  ;;  %v693_v20 = vadd.f32 %v692_v14, %v691_v8 }
 0x149   : > { %v701_v23 = vrot.slane %v700_v17, 1  ;;  %v705_v34 = vadd.f32 %v704_v30, %v703_v27 }
 0x14a   : > { %v688_v25 = vadd.f32 %v687_v19, %v686_v13  ;;  %v694_v26 = vrot.slane %v693_v20, 1 }
 0x14b   : > { %v702_v29 = vadd.f32 %v701_v23, %v700_v17  ;;  %v706_v38 = vrot.slane %v705_v34, 2 }
 0x14c   : > { %v714_v31 = vmul.f32 0.5, %v688_v25  ;;  %v695_v32 = vadd.f32 %v694_v26, %v693_v20 }
 0x14d   : > { %v716_v37 = vmul.f32 0.5, %v702_v29  ;;  %v707_v44 = vadd.f32 %v706_v38, %v705_v34 }
 0x14e   : > { %v715_v35 = vmul.f32 0.5, %v695_v32  ;;  %v722_v36 = vadd.f32 1e-05, %v714_v31 }
 0x14f   : > { %v724_v47 = vadd.f32 1e-05, %v716_v37  ;;  %v708_v49 = vrot.slane %v707_v44, 1 }
 0x150   : > { %v723_v41 = vadd.f32 1e-05, %v715_v35  ;;  %v5551_v57 = vpop.eup %5550 }
 0x151   : > { %v709_v50 = vadd.f32 %v708_v49, %v707_v44  ;;  %v5553_v58 = vpop.eup %5552  ;;  %v735_v63 = vmul.f32 %v5551_v57, %v5858_v48  ;;  %v775_v48 = vsub.s32 %v772_v4, %v774_v5 }
 0x152   : > { %5558 = vrsqrt.f32 %v723_v41  ;;  %v5555_v42 = vpop.eup %5554  ;;  %v737_v51 = vmul.f32 %v5553_v58, %v5863_v53 }
 0x153   : > { %5560 = vrsqrt.f32 %v722_v36  ;;  %v717_v54 = vmul.f32 0.5, %v709_v50  ;;  %v5557_v59 = vpop.eup %5556  ;;  %v734_v1 = vmul.f32 %v5555_v42, %v5851_v40  ;;  %v743_v6 = vmax.f32 %v735_v63, 0.0 }
 0x154   : > { %5562 = vrsqrt.f32 %v724_v47  ;;  %v736_v2 = vmul.f32 %v5557_v59, %v5853_v43  ;;  %v745_v7 = vmax.f32 %v737_v51, 0.0 }
 0x155   : > { %v725_v55 = vadd.f32 1e-05, %v717_v54  ;;  %v742_v10 = vmax.f32 %v734_v1, 0.0 }
 0x156   : > { %v744_v11 = vmax.f32 %v736_v2, 0.0 }
 0x157   : > { %5564 = vrsqrt.f32 %v725_v55  ;;  %v4971_v13 = vpack.c.bf16 %v743_v6, %v742_v10 }
 0x158   : > { %v4972_v53 = vpack.c.bf16 %v745_v7, %v744_v11 }
 0x159   : > { %v776_v17 = vrot.slane %v4971_v13, %v775_v48 }
 0x15a   : > { %v783_v18 = vrot.slane %v4972_v53, %v775_v48 }
 0x15c   : > { %v798_v22 = vcombine.low %v776_v17, %v783_v18 }
 0x15e   : > { %v806_v25 = vrot.slane %v798_v22, %v775_v48 }
 0x15f   : > { %v5559_v62 = vpop.eup %5558 }
 0x160   : > { %v5561_v0 = vpop.eup %5560  ;;  %v739_v3 = vmul.f32 %v5559_v62, %v5884_v52 }
 0x161   : > { %v738_v8 = vmul.f32 %v5561_v0, %v5878_v39  ;;  %v5563_v9 = vpop.eup %5562 }
 0x162   : > { %v747_v12 = vmax.f32 %v739_v3, 0.0  ;;  %v740_v40 = vmul.f32 %v5563_v9, %v5880_v45 }
 0x163   : > { %v746_v14 = vmax.f32 %v738_v8, 0.0 }
 0x164   : > { %v5565_v16 = vpop.eup %5564  ;;  %v748_v19 = vmax.f32 %v740_v40, 0.0 }
 0x165   : > { %v4973_v43 = vpack.c.bf16 %v747_v12, %v746_v14  ;;  %v741_v52 = vmul.f32 %v5565_v16, %v5894_v15 }
 0x167   : > { %v749_v20 = vmax.f32 %v741_v52, 0.0  ;;  %v790_v21 = vrot.slane %v4973_v43, %v775_v48 }
 0x169   : > { %v4974_v39 = vpack.c.bf16 %v749_v20, %v748_v19 }
 0x16b   : > { %v797_v23 = vrot.slane %v4974_v39, %v775_v48 }
 0x16d   : > { %v799_v24 = vcombine.low %v790_v21, %v797_v23 }
 0x16f   : > { %v813_v26 = vrot.slane %v799_v24, %v775_v48 }
 0x171   : > { %v814_v27 = vcombine.low %v806_v25, %v813_v26 }
 0x173   : > { %816 = vst [vmem:[#allocation2] sm:$0xff] %v814_v27 }
 0x174 PF: > { %v874_v45 = vld [vmem:[%s5821_s12 + $0x1c0] sm:$0xff]  ;;  %v5684_v1 = vmov 1966171168   ;;  %v1335_v3 = vlaneseq  ;;  %vm4604_vm2 = vcmask 1041408  }
 0x175   : > { %v878_v15 = vld [vmem:[%s5821_s12 + $0x1e0] sm:$0xff]  ;;  %v1333_v2 = vunpack.c.l.s4 %v5684_v1 }
 0x176   : > { %v1002_v28 = vld [vmem:[%s5821_s12 + $0x5c0] sm:$0xff]  ;;  %v5032_v29 = vcombine.high %v874_v45, %v878_v15  ;;  %v5031_v56 = vcombine.low %v874_v45, %v878_v15  ;;  %v1336_v48 = vshrl.u32 %v1335_v3, 7 }
 0x177   : > { %v1006_v30 = vld [vmem:[%s5821_s12 + $0x5e0] sm:$0xff]  ;;  %v1334_v12 = vunpack.c.0.s8 %v1333_v2 }
 0x178   : > { %v866_v31 = vld [vmem:[%s5821_s12 + $0x180] sm:$0xff]  ;;  %v5160_v33 = vcombine.high %v1002_v28, %v1006_v30  ;;  %v5159_v34 = vcombine.low %v1002_v28, %v1006_v30  ;;  %3948 = vmatprep.subr.bf16.mxu0 %v5032_v29 }
 0x179   : > { %v870_v32 = vld [vmem:[%s5821_s12 + $0x1a0] sm:$0xff]  ;;  %3949 = vmatpush1.bf16.msra.mxu0 %v5031_v56  ;;  %v5933_v18 = vsub.s32 %v1334_v12, %v1336_v48 }
 0x17a   : > { %v5024_v35 = vcombine.high %v866_v31, %v870_v32  ;;  %v994_v36 = vld [vmem:[%s5821_s12 + $0x580] sm:$0xff]  ;;  %3989 = vmatprep.subr.bf16.mxu1 %v5160_v33  ;;  %v5023_v50 = vcombine.low %v866_v31, %v870_v32  ;;  %v5937_v23 = vld [vmem:[#allocation2] sm:$0xff] }
 0x17b   : > { %v998_v37 = vld [vmem:[%s5821_s12 + $0x5a0] sm:$0xff]  ;;  %3990 = vmatpush1.bf16.msra.mxu1 %v5159_v34  ;;  %v5943_v27 = vrot.slane %v5937_v23, %v5933_v18 }
 0x17c   : > { %v858_v38 = vld [vmem:[%s5821_s12 + $0x140] sm:$0xff]  ;;  %v5152_v41 = vcombine.high %v994_v36, %v998_v37  ;;  %3950 = vmatprep.subr.bf16.mxu0 %v5024_v35  ;;  %v5151_v54 = vcombine.low %v994_v36, %v998_v37 }
 0x17d   : > { %v862_v44 = vld [vmem:[%s5821_s12 + $0x160] sm:$0xff]  ;;  %3951 = vmatpush1.bf16.msra.mxu0 %v5023_v50  ;;  %v1346_v29 = vcombine.high %v5943_v27, %v5943_v27 }
 0x17e   : > { %v986_v47 = vld [vmem:[%s5821_s12 + $0x540] sm:$0xff]  ;;  %v5016_v55 = vcombine.high %v858_v38, %v862_v44  ;;  %3991 = vmatprep.subr.bf16.mxu1 %v5152_v41  ;;  %v5015_v60 = vcombine.low %v858_v38, %v862_v44 }
 0x17f   : > { %v990_v49 = vld [vmem:[%s5821_s12 + $0x560] sm:$0xff]  ;;  %3992 = vmatpush1.bf16.msra.mxu1 %v5151_v54  ;;  %v5952_v34 = vrot.slane %v1346_v29, %v5933_v18 }
 0x180   : > { %v5144_v57 = vcombine.high %v986_v47, %v990_v49  ;;  %v850_v58 = vld [vmem:[%s5821_s12 + $0x100] sm:$0xff]  ;;  %3952 = vmatprep.subr.bf16.mxu0 %v5016_v55  ;;  %v5143_v61 = vcombine.low %v986_v47, %v990_v49 }
 0x181   : > { %v854_v42 = vld [vmem:[%s5821_s12 + $0x120] sm:$0xff]  ;;  %3953 = vmatpush1.bf16.msra.mxu0 %v5015_v60  ;;  %3980 = vmatprep.mubr.bf16.mxu0 %v5952_v34  ;;  %v5959_v38 = vcombine.high %v5952_v34, %v5952_v34 }
 0x182   : > { %v978_v59 = vld [vmem:[%s5821_s12 + $0x500] sm:$0xff]  ;;  %v5008_v62 = vcombine.high %v850_v58, %v854_v42  ;;  %3993 = vmatprep.subr.bf16.mxu1 %v5144_v57  ;;  %v5007_v6 = vcombine.low %v850_v58, %v854_v42 }
 0x183   : > { %v982_v46 = vld [vmem:[%s5821_s12 + $0x520] sm:$0xff]  ;;  %3994 = vmatpush1.bf16.msra.mxu1 %v5143_v61  ;;  %4021 = vmatprep.mubr.bf16.mxu1 %v5959_v38 }
 0x184   : > { %v5136_v63 = vcombine.high %v978_v59, %v982_v46  ;;  %v842_v51 = vld [vmem:[%s5821_s12 + $0xc0] sm:$0xff]  ;;  %3954 = vmatprep.subr.bf16.mxu0 %v5008_v62  ;;  %v5135_v7 = vcombine.low %v978_v59, %v982_v46 }
 0x185   : > { %v846_v0 = vld [vmem:[%s5821_s12 + $0xe0] sm:$0xff]  ;;  %3955 = vmatpush1.bf16.msra.mxu0 %v5007_v6 }
 0x186   : > { %v970_v4 = vld [vmem:[%s5821_s12 + $0x4c0] sm:$0xff]  ;;  %v5000_v8 = vcombine.high %v842_v51, %v846_v0  ;;  %3995 = vmatprep.subr.bf16.mxu1 %v5136_v63  ;;  %v4999_v14 = vcombine.low %v842_v51, %v846_v0 }
 0x187   : > { %v974_v5 = vld [vmem:[%s5821_s12 + $0x4e0] sm:$0xff]  ;;  %3996 = vmatpush1.bf16.msra.mxu1 %v5135_v7 }
 0x188   : > { %v5128_v9 = vcombine.high %v970_v4, %v974_v5  ;;  %v834_v10 = vld [vmem:[%s5821_s12 + $0x80] sm:$0xff]  ;;  %3956 = vmatprep.subr.bf16.mxu0 %v5000_v8  ;;  %v5127_v40 = vcombine.low %v970_v4, %v974_v5 }
 0x189   : > { %v838_v11 = vld [vmem:[%s5821_s12 + $0xa0] sm:$0xff]  ;;  %3957 = vmatpush1.bf16.msra.mxu0 %v4999_v14 }
 0x18a   : > { %v962_v13 = vld [vmem:[%s5821_s12 + $0x480] sm:$0xff]  ;;  %v4992_v16 = vcombine.high %v834_v10, %v838_v11  ;;  %3997 = vmatprep.subr.bf16.mxu1 %v5128_v9  ;;  %v4991_v21 = vcombine.low %v834_v10, %v838_v11 }
 0x18b   : > { %v966_v53 = vld [vmem:[%s5821_s12 + $0x4a0] sm:$0xff]  ;;  %3998 = vmatpush1.bf16.msra.mxu1 %v5127_v40 }
 0x18c   : > { %v5120_v43 = vcombine.high %v962_v13, %v966_v53  ;;  %v826_v52 = vld [vmem:[%s5821_s12 + $0x40] sm:$0xff]  ;;  %3958 = vmatprep.subr.bf16.mxu0 %v4992_v16  ;;  %v5119_v39 = vcombine.low %v962_v13, %v966_v53 }
 0x18d   : > { %v830_v17 = vld [vmem:[%s5821_s12 + $0x60] sm:$0xff]  ;;  %3959 = vmatpush1.bf16.msra.mxu0 %v4991_v21 }
 0x18e   : > { %v954_v19 = vld [vmem:[%s5821_s12 + $0x440] sm:$0xff]  ;;  %v4984_v22 = vcombine.high %v826_v52, %v830_v17  ;;  %3999 = vmatprep.subr.bf16.mxu1 %v5120_v43  ;;  %v4983_v28 = vcombine.low %v826_v52, %v830_v17 }
 0x18f   : > { %v958_v20 = vld [vmem:[%s5821_s12 + $0x460] sm:$0xff]  ;;  %4000 = vmatpush1.bf16.msra.mxu1 %v5119_v39 }
 0x190   : > { %v5112_v24 = vcombine.high %v954_v19, %v958_v20  ;;  %v818_v25 = vld [vmem:[%s5821_s12] sm:$0xff]  ;;  %3960 = vmatprep.subr.bf16.mxu0 %v4984_v22  ;;  %v5111_v30 = vcombine.low %v954_v19, %v958_v20 }
 0x191   : > { %v822_v26 = vld [vmem:[%s5821_s12 + $0x20] sm:$0xff]  ;;  %3961 = vmatpush1.bf16.msra.mxu0 %v4983_v28 }
 0x192   : > { %v946_v45 = vld [vmem:[%s5821_s12 + $0x400] sm:$0xff]  ;;  %v4976_v56 = vcombine.high %v818_v25, %v822_v26  ;;  %4001 = vmatprep.subr.bf16.mxu1 %v5112_v24  ;;  %v4975_v37 = vcombine.low %v818_v25, %v822_v26 }
 0x193   : > { %v950_v15 = vld [vmem:[%s5821_s12 + $0x420] sm:$0xff]  ;;  %4002 = vmatpush1.bf16.msra.mxu1 %v5111_v30 }
 0x194   : > { %v5104_v31 = vcombine.high %v946_v45, %v950_v15  ;;  %v938_v32 = vld [vmem:[%s5821_s12 + $0x3c0] sm:$0xff]  ;;  %3962 = vmatprep.subr.bf16.mxu0 %v4976_v56  ;;  %v5103_v41 = vcombine.low %v946_v45, %v950_v15  ;;  %v1331_v45 = vcombine.high %v5937_v23, %v5937_v23 }
 0x195   : > { %v942_v33 = vld [vmem:[%s5821_s12 + $0x3e0] sm:$0xff]  ;;  %3963 = vmatpush1.bf16.msra.mxu0 %v4975_v37 }
 0x196   : > { %v1066_v35 = vld [vmem:[%s5821_s12 + $0x7c0] sm:$0xff]  ;;  %v5096_v44 = vcombine.high %v938_v32, %v942_v33  ;;  %4003 = vmatprep.subr.bf16.mxu1 %v5104_v31  ;;  %v5095_v57 = vcombine.low %v938_v32, %v942_v33 }
 0x197   : > { %v1070_v36 = vld [vmem:[%s5821_s12 + $0x7e0] sm:$0xff]  ;;  %4004 = vmatpush1.bf16.msra.mxu1 %v5103_v41 }
 0x198   : > { %v5224_v47 = vcombine.high %v1066_v35, %v1070_v36  ;;  %v930_v49 = vld [vmem:[%s5821_s12 + $0x380] sm:$0xff]  ;;  %3964 = vmatprep.subr.bf16.mxu0 %v5096_v44  ;;  %v5223_v58 = vcombine.low %v1066_v35, %v1070_v36  ;;  %v5993_v35 = vrot.slane %v1331_v45, %v5933_v18 }
 0x199   : > { %v934_v50 = vld [vmem:[%s5821_s12 + $0x3a0] sm:$0xff]  ;;  %3965 = vmatpush2.bf16.msra.mxu0 %v5095_v57  ;;  %v6003_v57 = vrot.slane %v5943_v27, %v5933_v18 }
 0x19a   : > { %v1058_v54 = vld [vmem:[%s5821_s12 + $0x780] sm:$0xff]  ;;  %v5088_v42 = vcombine.high %v930_v49, %v934_v50  ;;  %4005 = vmatprep.subr.bf16.mxu1 %v5224_v47  ;;  %v5087_v63 = vcombine.low %v930_v49, %v934_v50 }
 0x19b   : > { %v1062_v55 = vld [vmem:[%s5821_s12 + $0x7a0] sm:$0xff]  ;;  %4006 = vmatpush2.bf16.msra.mxu1 %v5223_v58  ;;  %v6014_v27 = vcombine.high %v6003_v57, %v6003_v57 }
 0x19c   : > { %v5216_v59 = vcombine.high %v1058_v54, %v1062_v55  ;;  %v922_v46 = vld [vmem:[%s5821_s12 + $0x340] sm:$0xff]  ;;  %3966 = vmatprep.subr.bf16.mxu0 %v5088_v42  ;;  %v5215_v51 = vcombine.low %v1058_v54, %v1062_v55  ;;  %v1347_v54 = vcombine.high %v5993_v35, %v5993_v35 }
 0x19d   : > { %v926_v60 = vld [vmem:[%s5821_s12 + $0x360] sm:$0xff]  ;;  %3967 = vmatpush2.bf16.msra.mxu0 %v5087_v63 }
 0x19e   : > { %v1050_v61 = vld [vmem:[%s5821_s12 + $0x740] sm:$0xff]  ;;  %v5080_v0 = vcombine.high %v922_v46, %v926_v60  ;;  %4007 = vmatprep.subr.bf16.mxu1 %v5216_v59  ;;  %v5079_v6 = vcombine.low %v922_v46, %v926_v60  ;;  %v6010_v63 = vrot.slane %v1347_v54, %v5933_v18 }
 0x19f   : > { %v1054_v62 = vld [vmem:[%s5821_s12 + $0x760] sm:$0xff]  ;;  %4008 = vmatpush2.bf16.msra.mxu1 %v5215_v51 }
 0x1a0   : > { %v5208_v1 = vcombine.high %v1050_v61, %v1054_v62  ;;  %v914_v2 = vld [vmem:[%s5821_s12 + $0x300] sm:$0xff]  ;;  %3968 = vmatprep.subr.bf16.mxu0 %v5080_v0  ;;  %v5207_v7 = vcombine.low %v1050_v61, %v1054_v62 }
 0x1a1   : > { %v918_v3 = vld [vmem:[%s5821_s12 + $0x320] sm:$0xff]  ;;  %3969 = vmatpush2.bf16.msra.mxu0 %v5079_v6 }
 0x1a2   : > { %v1042_v4 = vld [vmem:[%s5821_s12 + $0x700] sm:$0xff]  ;;  %v5072_v8 = vcombine.high %v914_v2, %v918_v3  ;;  %4009 = vmatprep.subr.bf16.mxu1 %v5208_v1  ;;  %v5071_v13 = vcombine.low %v914_v2, %v918_v3 }
 0x1a3   : > { %v1046_v5 = vld [vmem:[%s5821_s12 + $0x720] sm:$0xff]  ;;  %4010 = vmatpush2.bf16.msra.mxu1 %v5207_v7  ;;  %v6023_v7 = vcombine.high %v6010_v63, %v6010_v63 }
 0x1a4   : > { %v5200_v9 = vcombine.high %v1042_v4, %v1046_v5  ;;  %v906_v10 = vld [vmem:[%s5821_s12 + $0x2c0] sm:$0xff]  ;;  %3970 = vmatprep.subr.bf16.mxu0 %v5072_v8  ;;  %v5199_v53 = vcombine.low %v1042_v4, %v1046_v5 }
 0x1a5   : > { %v910_v11 = vld [vmem:[%s5821_s12 + $0x2e0] sm:$0xff]  ;;  %3971 = vmatpush2.bf16.msra.mxu0 %v5071_v13 }
 0x1a6   : > { %v1034_v12 = vld [vmem:[%s5821_s12 + $0x6c0] sm:$0xff]  ;;  %v5064_v14 = vcombine.high %v906_v10, %v910_v11  ;;  %4011 = vmatprep.subr.bf16.mxu1 %v5200_v9  ;;  %v5063_v19 = vcombine.low %v906_v10, %v910_v11 }
 0x1a7   : > { %v1038_v48 = vld [vmem:[%s5821_s12 + $0x6e0] sm:$0xff]  ;;  %4012 = vmatpush2.bf16.msra.mxu1 %v5199_v53 }
 0x1a8   : > { %v5192_v40 = vcombine.high %v1034_v12, %v1038_v48  ;;  %v898_v16 = vld [vmem:[%s5821_s12 + $0x280] sm:$0xff]  ;;  %3972 = vmatprep.subr.bf16.mxu0 %v5064_v14  ;;  %v5191_v20 = vcombine.low %v1034_v12, %v1038_v48 }
 0x1a9   : > { %v902_v43 = vld [vmem:[%s5821_s12 + $0x2a0] sm:$0xff]  ;;  %3973 = vmatpush2.bf16.msra.mxu0 %v5063_v19 }
 0x1aa   : > { %v1026_v52 = vld [vmem:[%s5821_s12 + $0x680] sm:$0xff]  ;;  %v5056_v21 = vcombine.high %v898_v16, %v902_v43  ;;  %4013 = vmatprep.subr.bf16.mxu1 %v5192_v40  ;;  %v5055_v15 = vcombine.low %v898_v16, %v902_v43 }
 0x1ab   : > { %v1030_v17 = vld [vmem:[%s5821_s12 + $0x6a0] sm:$0xff]  ;;  %4014 = vmatpush2.bf16.msra.mxu1 %v5191_v20 }
 0x1ac   : > { %v5184_v39 = vcombine.high %v1026_v52, %v1030_v17  ;;  %v890_v22 = vld [vmem:[%s5821_s12 + $0x240] sm:$0xff]  ;;  %3974 = vmatprep.subr.bf16.mxu0 %v5056_v21  ;;  %v5183_v28 = vcombine.low %v1026_v52, %v1030_v17 }
 0x1ad   : > { %v894_v24 = vld [vmem:[%s5821_s12 + $0x260] sm:$0xff]  ;;  %3975 = vmatpush2.bf16.msra.mxu0 %v5055_v15 }
 0x1ae   : > { %v1018_v25 = vld [vmem:[%s5821_s12 + $0x640] sm:$0xff]  ;;  %v5048_v29 = vcombine.high %v890_v22, %v894_v24  ;;  %4015 = vmatprep.subr.bf16.mxu1 %v5184_v39  ;;  %v5047_v23 = vcombine.low %v890_v22, %v894_v24 }
 0x1af   : > { %v1022_v26 = vld [vmem:[%s5821_s12 + $0x660] sm:$0xff]  ;;  %4016 = vmatpush2.bf16.msra.mxu1 %v5183_v28 }
 0x1b0   : > { %v5176_v30 = vcombine.high %v1018_v25, %v1022_v26  ;;  %v882_v56 = vld [vmem:[%s5821_s12 + $0x200] sm:$0xff]  ;;  %3976 = vmatprep.subr.bf16.mxu0 %v5048_v29  ;;  %v5175_v36 = vcombine.low %v1018_v25, %v1022_v26 }
 0x1b1   : > { %v886_v31 = vld [vmem:[%s5821_s12 + $0x220] sm:$0xff]  ;;  %3977 = vmatpush2.bf16.msra.mxu0 %v5047_v23 }
 0x1b2   : > { %v1010_v32 = vld [vmem:[%s5821_s12 + $0x600] sm:$0xff]  ;;  %v5040_v37 = vcombine.high %v882_v56, %v886_v31  ;;  %4017 = vmatprep.subr.bf16.mxu1 %v5176_v30  ;;  %v5039_v55 = vcombine.low %v882_v56, %v886_v31 }
 0x1b3   : > { %v1014_v33 = vld [vmem:[%s5821_s12 + $0x620] sm:$0xff]  ;;  %4018 = vmatpush2.bf16.msra.mxu1 %v5175_v36 }
 0x1b4   : > { %v5168_v41 = vcombine.high %v1010_v32, %v1014_v33  ;;  %v1130_v44 = vld [vmem:[%s5821_s12 + $0x9c0] sm:$0xff]  ;;  %3978 = vmatprep.subr.bf16.mxu0 %v5040_v37  ;;  %v5167_v58 = vcombine.low %v1010_v32, %v1014_v33 }
 0x1b5   : > { %v1134_v47 = vld [vmem:[%s5821_s12 + $0x9e0] sm:$0xff]  ;;  %3979 = vmatpush2.bf16.msra.mxu0 %v5039_v55 }
 0x1b6   : > { %v1258_v49 = vld [vmem:[%s5821_s12 + $0xdc0] sm:$0xff]  ;;  %v5288_v42 = vcombine.high %v1130_v44, %v1134_v47  ;;  %4019 = vmatprep.subr.bf16.mxu1 %v5168_v41  ;;  %v5287_v51 = vcombine.low %v1130_v44, %v1134_v47 }
 0x1b7   : > { %v1262_v50 = vld [vmem:[%s5821_s12 + $0xde0] sm:$0xff]  ;;  %4020 = vmatpush2.bf16.msra.mxu1 %v5167_v58 }
 0x1b8   : > { %v5416_v59 = vcombine.high %v1258_v49, %v1262_v50  ;;  %v1122_v46 = vld [vmem:[%s5821_s12 + $0x980] sm:$0xff]  ;;  %4030 = vmatprep.subr.bf16.mxu0 %v5288_v42  ;;  %v5415_v0 = vcombine.low %v1258_v49, %v1262_v50  ;;  %3981 = vmatmul.mubr.bf16.vlgmr.msra.gmra.mxu0 %v6003_v57 }
 0x1b9   : > { %v1126_v60 = vld [vmem:[%s5821_s12 + $0x9a0] sm:$0xff]  ;;  %4031 = vmatpush1.bf16.msra.mxu0 %v5287_v51  ;;  %4062 = vmatprep.mubr.bf16.mxu0 %v6010_v63 }
 0x1ba   : > { %v1250_v61 = vld [vmem:[%s5821_s12 + $0xd80] sm:$0xff]  ;;  %v5280_v1 = vcombine.high %v1122_v46, %v1126_v60  ;;  %4071 = vmatprep.subr.bf16.mxu1 %v5416_v59  ;;  %4022 = vmatmul.mubr.bf16.vlgmr.msra.gmra.mxu1 %v6014_v27  ;;  %v5279_v8 = vcombine.low %v1122_v46, %v1126_v60 }
 0x1bb   : > { %v1254_v62 = vld [vmem:[%s5821_s12 + $0xda0] sm:$0xff]  ;;  %4072 = vmatpush1.bf16.msra.mxu1 %v5415_v0  ;;  %4103 = vmatprep.mubr.bf16.mxu1 %v6023_v7 }
 0x1bc   : > { %v5408_v2 = vcombine.high %v1250_v61, %v1254_v62  ;;  %v1114_v3 = vld [vmem:[%s5821_s12 + $0x940] sm:$0xff]  ;;  %4032 = vmatprep.subr.bf16.mxu0 %v5280_v1  ;;  %v5407_v9 = vcombine.low %v1250_v61, %v1254_v62 }
 0x1bd   : > { %v1118_v4 = vld [vmem:[%s5821_s12 + $0x960] sm:$0xff]  ;;  %4033 = vmatpush1.bf16.msra.mxu0 %v5279_v8 }
 0x1be   : > { %v1242_v5 = vld [vmem:[%s5821_s12 + $0xd40] sm:$0xff]  ;;  %v5272_v10 = vcombine.high %v1114_v3, %v1118_v4  ;;  %4073 = vmatprep.subr.bf16.mxu1 %v5408_v2  ;;  %v5271_v14 = vcombine.low %v1114_v3, %v1118_v4 }
 0x1bf   : > { %v1246_v6 = vld [vmem:[%s5821_s12 + $0xd60] sm:$0xff]  ;;  %4074 = vmatpush1.bf16.msra.mxu1 %v5407_v9 }
 0x1c0   : > { %v5400_v11 = vcombine.high %v1242_v5, %v1246_v6  ;;  %v1106_v12 = vld [vmem:[%s5821_s12 + $0x900] sm:$0xff]  ;;  %4034 = vmatprep.subr.bf16.mxu0 %v5272_v10  ;;  %v5399_v40 = vcombine.low %v1242_v5, %v1246_v6 }
 0x1c1   : > { %v1110_v48 = vld [vmem:[%s5821_s12 + $0x920] sm:$0xff]  ;;  %4035 = vmatpush1.bf16.msra.mxu0 %v5271_v14 }
 0x1c2   : > { %v1234_v13 = vld [vmem:[%s5821_s12 + $0xd00] sm:$0xff]  ;;  %v5264_v16 = vcombine.high %v1106_v12, %v1110_v48  ;;  %4075 = vmatprep.subr.bf16.mxu1 %v5400_v11  ;;  %v5263_v21 = vcombine.low %v1106_v12, %v1110_v48 }
 0x1c3   : > { %v1238_v53 = vld [vmem:[%s5821_s12 + $0xd20] sm:$0xff]  ;;  %4076 = vmatpush1.bf16.msra.mxu1 %v5399_v40 }
 0x1c4   : > { %v5392_v43 = vcombine.high %v1234_v13, %v1238_v53  ;;  %v1098_v52 = vld [vmem:[%s5821_s12 + $0x8c0] sm:$0xff]  ;;  %4036 = vmatprep.subr.bf16.mxu0 %v5264_v16  ;;  %v5391_v39 = vcombine.low %v1234_v13, %v1238_v53 }
 0x1c5   : > { %v1102_v17 = vld [vmem:[%s5821_s12 + $0x8e0] sm:$0xff]  ;;  %4037 = vmatpush1.bf16.msra.mxu0 %v5263_v21 }
 0x1c6   : > { %v1226_v19 = vld [vmem:[%s5821_s12 + $0xcc0] sm:$0xff]  ;;  %v5256_v22 = vcombine.high %v1098_v52, %v1102_v17  ;;  %4077 = vmatprep.subr.bf16.mxu1 %v5392_v43  ;;  %v5255_v28 = vcombine.low %v1098_v52, %v1102_v17 }
 0x1c7   : > { %v1230_v20 = vld [vmem:[%s5821_s12 + $0xce0] sm:$0xff]  ;;  %4078 = vmatpush1.bf16.msra.mxu1 %v5391_v39 }
 0x1c8   : > { %v5384_v24 = vcombine.high %v1226_v19, %v1230_v20  ;;  %v1090_v25 = vld [vmem:[%s5821_s12 + $0x880] sm:$0xff]  ;;  %4038 = vmatprep.subr.bf16.mxu0 %v5256_v22  ;;  %v5383_v29 = vcombine.low %v1226_v19, %v1230_v20 }
 0x1c9   : > { %v1094_v26 = vld [vmem:[%s5821_s12 + $0x8a0] sm:$0xff]  ;;  %4039 = vmatpush1.bf16.msra.mxu0 %v5255_v28 }
 0x1ca   : > { %v1218_v45 = vld [vmem:[%s5821_s12 + $0xc80] sm:$0xff]  ;;  %v5248_v30 = vcombine.high %v1090_v25, %v1094_v26  ;;  %4079 = vmatprep.subr.bf16.mxu1 %v5384_v24  ;;  %v5247_v36 = vcombine.low %v1090_v25, %v1094_v26 }
 0x1cb   : > { %v1222_v15 = vld [vmem:[%s5821_s12 + $0xca0] sm:$0xff]  ;;  %4080 = vmatpush1.bf16.msra.mxu1 %v5383_v29 }
 0x1cc   : > { %v5376_v56 = vcombine.high %v1218_v45, %v1222_v15  ;;  %v1082_v31 = vld [vmem:[%s5821_s12 + $0x840] sm:$0xff]  ;;  %4040 = vmatprep.subr.bf16.mxu0 %v5248_v30  ;;  %v5375_v37 = vcombine.low %v1218_v45, %v1222_v15 }
 0x1cd   : > { %v1086_v32 = vld [vmem:[%s5821_s12 + $0x860] sm:$0xff]  ;;  %4041 = vmatpush1.bf16.msra.mxu0 %v5247_v36 }
 0x1ce   : > { %v1210_v33 = vld [vmem:[%s5821_s12 + $0xc40] sm:$0xff]  ;;  %v5240_v41 = vcombine.high %v1082_v31, %v1086_v32  ;;  %4081 = vmatprep.subr.bf16.mxu1 %v5376_v56  ;;  %v5239_v55 = vcombine.low %v1082_v31, %v1086_v32 }
 0x1cf   : > { %v1214_v23 = vld [vmem:[%s5821_s12 + $0xc60] sm:$0xff]  ;;  %4082 = vmatpush1.bf16.msra.mxu1 %v5375_v37 }
 0x1d0   : > { %v5368_v44 = vcombine.high %v1210_v33, %v1214_v23  ;;  %v1074_v47 = vld [vmem:[%s5821_s12 + $0x800] sm:$0xff]  ;;  %4042 = vmatprep.subr.bf16.mxu0 %v5240_v41  ;;  %v5367_v58 = vcombine.low %v1210_v33, %v1214_v23 }
 0x1d1   : > { %v1078_v49 = vld [vmem:[%s5821_s12 + $0x820] sm:$0xff]  ;;  %4043 = vmatpush1.bf16.msra.mxu0 %v5239_v55 }
 0x1d2   : > { %v1202_v50 = vld [vmem:[%s5821_s12 + $0xc00] sm:$0xff]  ;;  %v5232_v42 = vcombine.high %v1074_v47, %v1078_v49  ;;  %4083 = vmatprep.subr.bf16.mxu1 %v5368_v44  ;;  %v5231_v51 = vcombine.low %v1074_v47, %v1078_v49 }
 0x1d3   : > { %v1206_v54 = vld [vmem:[%s5821_s12 + $0xc20] sm:$0xff]  ;;  %4084 = vmatpush1.bf16.msra.mxu1 %v5367_v58 }
 0x1d4   : > { %v5360_v59 = vcombine.high %v1202_v50, %v1206_v54  ;;  %v1194_v46 = vld [vmem:[%s5821_s12 + $0xbc0] sm:$0xff]  ;;  %4044 = vmatprep.subr.bf16.mxu0 %v5232_v42  ;;  %v5359_v0 = vcombine.low %v1202_v50, %v1206_v54 }
 0x1d5   : > { %v1198_v60 = vld [vmem:[%s5821_s12 + $0xbe0] sm:$0xff]  ;;  %4045 = vmatpush1.bf16.msra.mxu0 %v5231_v51 }
 0x1d6   : > { %v1322_v61 = vld [vmem:[%s5821_s12 + $0xfc0] sm:$0xff]  ;;  %v5352_v1 = vcombine.high %v1194_v46, %v1198_v60  ;;  %4085 = vmatprep.subr.bf16.mxu1 %v5360_v59  ;;  %v5351_v8 = vcombine.low %v1194_v46, %v1198_v60 }
 0x1d7   : > { %v1326_v62 = vld [vmem:[%s5821_s12 + $0xfe0] sm:$0xff]  ;;  %4086 = vmatpush1.bf16.msra.mxu1 %v5359_v0 }
 0x1d8   : > { %v5480_v2 = vcombine.high %v1322_v61, %v1326_v62  ;;  %v1186_v3 = vld [vmem:[%s5821_s12 + $0xb80] sm:$0xff]  ;;  %4046 = vmatprep.subr.bf16.mxu0 %v5352_v1  ;;  %v5479_v9 = vcombine.low %v1322_v61, %v1326_v62 }
 0x1d9   : > { %v1190_v4 = vld [vmem:[%s5821_s12 + $0xba0] sm:$0xff]  ;;  %4047 = vmatpush2.bf16.msra.mxu0 %v5351_v8 }
 0x1da   : > { %v1314_v5 = vld [vmem:[%s5821_s12 + $0xf80] sm:$0xff]  ;;  %v5344_v10 = vcombine.high %v1186_v3, %v1190_v4  ;;  %4087 = vmatprep.subr.bf16.mxu1 %v5480_v2  ;;  %v5343_v14 = vcombine.low %v1186_v3, %v1190_v4  ;;  %v875_v3 = vld [vmem:[%s5821_s12 + $0x1c8] sm:$0xff] }
 0x1db   : > { %v1318_v6 = vld [vmem:[%s5821_s12 + $0xfa0] sm:$0xff]  ;;  %4088 = vmatpush2.bf16.msra.mxu1 %v5479_v9  ;;  %v879_v4 = vld [vmem:[%s5821_s12 + $0x1e8] sm:$0xff]  ;;  %v6086_v9 = vrot.slane %v5993_v35, %v5933_v18 }
 0x1dc   : > { %v5472_v11 = vcombine.high %v1314_v5, %v1318_v6  ;;  %v1178_v12 = vld [vmem:[%s5821_s12 + $0xb40] sm:$0xff]  ;;  %4048 = vmatprep.subr.bf16.mxu0 %v5344_v10  ;;  %v5471_v40 = vcombine.low %v1314_v5, %v1318_v6  ;;  %v1003_v5 = vld [vmem:[%s5821_s12 + $0x5c8] sm:$0xff]  ;;  %v5033_v35 = vcombine.low %v875_v3, %v879_v4 }
 0x1dd   : > { %v1182_v48 = vld [vmem:[%s5821_s12 + $0xb60] sm:$0xff]  ;;  %4049 = vmatpush2.bf16.msra.mxu0 %v5343_v14  ;;  %v1007_v6 = vld [vmem:[%s5821_s12 + $0x5e8] sm:$0xff] }
 0x1de   : > { %v1306_v13 = vld [vmem:[%s5821_s12 + $0xf40] sm:$0xff]  ;;  %v5336_v16 = vcombine.high %v1178_v12, %v1182_v48  ;;  %4089 = vmatprep.subr.bf16.mxu1 %v5472_v11  ;;  %v5335_v21 = vcombine.low %v1178_v12, %v1182_v48  ;;  %v5034_v11 = vcombine.high %v875_v3, %v879_v4  ;;  %v5162_v12 = vcombine.high %v1003_v5, %v1007_v6  ;;  %v867_v48 = vld [vmem:[%s5821_s12 + $0x188] sm:$0xff] }
 0x1df   : > { %v1310_v53 = vld [vmem:[%s5821_s12 + $0xf60] sm:$0xff]  ;;  %4090 = vmatpush2.bf16.msra.mxu1 %v5471_v40  ;;  %v999_v14 = vld [vmem:[%s5821_s12 + $0x5a8] sm:$0xff]  ;;  %v6094_v40 = vcombine.high %v6086_v9, %v6086_v9 }
 0x1e0   : > { %v5464_v43 = vcombine.high %v1306_v13, %v1310_v53  ;;  %v1170_v52 = vld [vmem:[%s5821_s12 + $0xb00] sm:$0xff]  ;;  %4050 = vmatprep.subr.bf16.mxu0 %v5336_v16  ;;  %v5463_v39 = vcombine.low %v1306_v13, %v1310_v53  ;;  %v871_v13 = vld [vmem:[%s5821_s12 + $0x1a8] sm:$0xff]  ;;  %v5161_v16 = vcombine.low %v1003_v5, %v1007_v6 }
 0x1e1   : > { %v1174_v17 = vld [vmem:[%s5821_s12 + $0xb20] sm:$0xff]  ;;  %4051 = vmatpush2.bf16.msra.mxu0 %v5335_v21  ;;  %v995_v53 = vld [vmem:[%s5821_s12 + $0x588] sm:$0xff] }
 0x1e2   : > { %v1298_v19 = vld [vmem:[%s5821_s12 + $0xf00] sm:$0xff]  ;;  %v5328_v22 = vcombine.high %v1170_v52, %v1174_v17  ;;  %4091 = vmatprep.subr.bf16.mxu1 %v5464_v43  ;;  %v5327_v28 = vcombine.low %v1170_v52, %v1174_v17  ;;  %v5026_v43 = vcombine.high %v867_v48, %v871_v13  ;;  %v5154_v52 = vcombine.high %v995_v53, %v999_v14  ;;  %v859_v17 = vld [vmem:[%s5821_s12 + $0x148] sm:$0xff] }
 0x1e3   : > { %v1302_v20 = vld [vmem:[%s5821_s12 + $0xf20] sm:$0xff]  ;;  %4092 = vmatpush2.bf16.msra.mxu1 %v5463_v39  ;;  %v991_v21 = vld [vmem:[%s5821_s12 + $0x568] sm:$0xff]  ;;  %v5025_v39 = vcombine.low %v867_v48, %v871_v13 }
 0x1e4   : > { %v5456_v24 = vcombine.high %v1298_v19, %v1302_v20  ;;  %v1162_v25 = vld [vmem:[%s5821_s12 + $0xac0] sm:$0xff]  ;;  %4052 = vmatprep.subr.bf16.mxu0 %v5328_v22  ;;  %v5455_v29 = vcombine.low %v1298_v19, %v1302_v20  ;;  %v863_v19 = vld [vmem:[%s5821_s12 + $0x168] sm:$0xff]  ;;  %v5153_v22 = vcombine.low %v995_v53, %v999_v14 }
 0x1e5   : > { %v1166_v26 = vld [vmem:[%s5821_s12 + $0xae0] sm:$0xff]  ;;  %4053 = vmatpush2.bf16.msra.mxu0 %v5327_v28  ;;  %v987_v20 = vld [vmem:[%s5821_s12 + $0x548] sm:$0xff] }
 0x1e6   : > { %v1290_v45 = vld [vmem:[%s5821_s12 + $0xec0] sm:$0xff]  ;;  %v5320_v30 = vcombine.high %v1162_v25, %v1166_v26  ;;  %4093 = vmatprep.subr.bf16.mxu1 %v5456_v24  ;;  %v5319_v36 = vcombine.low %v1162_v25, %v1166_v26  ;;  %v5018_v24 = vcombine.high %v859_v17, %v863_v19  ;;  %v5146_v25 = vcombine.high %v987_v20, %v991_v21  ;;  %v851_v26 = vld [vmem:[%s5821_s12 + $0x108] sm:$0xff] }
 0x1e7   : > { %v1294_v15 = vld [vmem:[%s5821_s12 + $0xee0] sm:$0xff]  ;;  %4094 = vmatpush2.bf16.msra.mxu1 %v5455_v29  ;;  %v983_v28 = vld [vmem:[%s5821_s12 + $0x528] sm:$0xff]  ;;  %v5017_v29 = vcombine.low %v859_v17, %v863_v19 }
 0x1e8   : > { %v5448_v56 = vcombine.high %v1290_v45, %v1294_v15  ;;  %v1154_v31 = vld [vmem:[%s5821_s12 + $0xa80] sm:$0xff]  ;;  %4054 = vmatprep.subr.bf16.mxu0 %v5320_v30  ;;  %v5447_v37 = vcombine.low %v1290_v45, %v1294_v15  ;;  %v855_v45 = vld [vmem:[%s5821_s12 + $0x128] sm:$0xff]  ;;  %v5145_v30 = vcombine.low %v987_v20, %v991_v21 }
 0x1e9   : > { %v1158_v32 = vld [vmem:[%s5821_s12 + $0xaa0] sm:$0xff]  ;;  %4055 = vmatpush2.bf16.msra.mxu0 %v5319_v36  ;;  %v979_v15 = vld [vmem:[%s5821_s12 + $0x508] sm:$0xff] }
 0x1ea   : > { %v1282_v33 = vld [vmem:[%s5821_s12 + $0xe80] sm:$0xff]  ;;  %v5312_v41 = vcombine.high %v1154_v31, %v1158_v32  ;;  %4095 = vmatprep.subr.bf16.mxu1 %v5448_v56  ;;  %v5311_v55 = vcombine.low %v1154_v31, %v1158_v32  ;;  %v5010_v56 = vcombine.high %v851_v26, %v855_v45  ;;  %v5138_v31 = vcombine.high %v979_v15, %v983_v28  ;;  %v843_v32 = vld [vmem:[%s5821_s12 + $0xc8] sm:$0xff] }
 0x1eb   : > { %v1286_v23 = vld [vmem:[%s5821_s12 + $0xea0] sm:$0xff]  ;;  %4096 = vmatpush2.bf16.msra.mxu1 %v5447_v37  ;;  %v975_v36 = vld [vmem:[%s5821_s12 + $0x4e8] sm:$0xff]  ;;  %v5009_v37 = vcombine.low %v851_v26, %v855_v45 }
 0x1ec   : > { %v5440_v44 = vcombine.high %v1282_v33, %v1286_v23  ;;  %v1146_v47 = vld [vmem:[%s5821_s12 + $0xa40] sm:$0xff]  ;;  %4056 = vmatprep.subr.bf16.mxu0 %v5312_v41  ;;  %v5439_v58 = vcombine.low %v1282_v33, %v1286_v23  ;;  %v847_v33 = vld [vmem:[%s5821_s12 + $0xe8] sm:$0xff]  ;;  %v5137_v41 = vcombine.low %v979_v15, %v983_v28 }
 0x1ed   : > { %v1150_v49 = vld [vmem:[%s5821_s12 + $0xa60] sm:$0xff]  ;;  %4057 = vmatpush2.bf16.msra.mxu0 %v5311_v55  ;;  %v971_v23 = vld [vmem:[%s5821_s12 + $0x4c8] sm:$0xff] }
 0x1ee   : > { %v1274_v50 = vld [vmem:[%s5821_s12 + $0xe40] sm:$0xff]  ;;  %v5304_v42 = vcombine.high %v1146_v47, %v1150_v49  ;;  %4097 = vmatprep.subr.bf16.mxu1 %v5440_v44  ;;  %v5303_v51 = vcombine.low %v1146_v47, %v1150_v49  ;;  %v5002_v44 = vcombine.high %v843_v32, %v847_v33  ;;  %v5130_v47 = vcombine.high %v971_v23, %v975_v36  ;;  %v835_v49 = vld [vmem:[%s5821_s12 + $0x88] sm:$0xff] }
 0x1ef   : > { %v1278_v54 = vld [vmem:[%s5821_s12 + $0xe60] sm:$0xff]  ;;  %4098 = vmatpush2.bf16.msra.mxu1 %v5439_v58  ;;  %v967_v55 = vld [vmem:[%s5821_s12 + $0x4a8] sm:$0xff]  ;;  %v5001_v58 = vcombine.low %v843_v32, %v847_v33 }
 0x1f0   : > { %v5432_v59 = vcombine.high %v1274_v50, %v1278_v54  ;;  %v1138_v46 = vld [vmem:[%s5821_s12 + $0xa00] sm:$0xff]  ;;  %4058 = vmatprep.subr.bf16.mxu0 %v5304_v42  ;;  %v5431_v0 = vcombine.low %v1274_v50, %v1278_v54  ;;  %v839_v50 = vld [vmem:[%s5821_s12 + $0xa8] sm:$0xff]  ;;  %v5129_v42 = vcombine.low %v971_v23, %v975_v36 }
 0x1f1   : > { %v1142_v60 = vld [vmem:[%s5821_s12 + $0xa20] sm:$0xff]  ;;  %4059 = vmatpush2.bf16.msra.mxu0 %v5303_v51  ;;  %v963_v54 = vld [vmem:[%s5821_s12 + $0x488] sm:$0xff] }
 0x1f2   : > { %v1266_v61 = vld [vmem:[%s5821_s12 + $0xe00] sm:$0xff]  ;;  %v5296_v1 = vcombine.high %v1138_v46, %v1142_v60  ;;  %4099 = vmatprep.subr.bf16.mxu1 %v5432_v59  ;;  %v5295_v8 = vcombine.low %v1138_v46, %v1142_v60  ;;  %v4994_v59 = vcombine.high %v835_v49, %v839_v50  ;;  %v5122_v46 = vcombine.high %v963_v54, %v967_v55  ;;  %v827_v60 = vld [vmem:[%s5821_s12 + $0x48] sm:$0xff] }
 0x1f3   : > { %v1270_v62 = vld [vmem:[%s5821_s12 + $0xe20] sm:$0xff]  ;;  %4100 = vmatpush2.bf16.msra.mxu1 %v5431_v0  ;;  %v959_v51 = vld [vmem:[%s5821_s12 + $0x468] sm:$0xff]  ;;  %v4993_v0 = vcombine.low %v835_v49, %v839_v50 }
 0x1f4   : > { %v5424_v2 = vcombine.high %v1266_v61, %v1270_v62  ;;  %4060 = vmatprep.subr.bf16.mxu0 %v5296_v1  ;;  %v5423_v10 = vcombine.low %v1266_v61, %v1270_v62  ;;  %v831_v61 = vld [vmem:[%s5821_s12 + $0x68] sm:$0xff]  ;;  %v5121_v1 = vcombine.low %v963_v54, %v967_v55 }
 0x1f5   : > { %4061 = vmatpush2.bf16.msra.mxu0 %v5295_v8  ;;  %v955_v62 = vld [vmem:[%s5821_s12 + $0x448] sm:$0xff] }
 0x1f6   : > { %4101 = vmatprep.subr.bf16.mxu1 %v5424_v2  ;;  %4112 = vmatprep.subr.bf16.mxu0 %v5034_v11  ;;  %v4986_v2 = vcombine.high %v827_v60, %v831_v61  ;;  %v5114_v3 = vcombine.high %v955_v62, %v959_v51  ;;  %v819_v4 = vld [vmem:[%s5821_s12 + $0x8] sm:$0xff]  ;;  %v5113_v11 = vcombine.low %v955_v62, %v959_v51 }
 0x1f7   : > { %4102 = vmatpush2.bf16.msra.mxu1 %v5423_v10  ;;  %v823_v5 = vld [vmem:[%s5821_s12 + $0x28] sm:$0xff]  ;;  %v4985_v10 = vcombine.low %v827_v60, %v831_v61 }
 0x1f8   : > { %4153 = vmatprep.subr.bf16.mxu1 %v5162_v12  ;;  %4063 = vmatmul.mubr.bf16.vlgmr.msra.gmra.mxu0 %v6086_v9  ;;  %v947_v6 = vld [vmem:[%s5821_s12 + $0x408] sm:$0xff]  ;;  %v4978_v12 = vcombine.high %v819_v4, %v823_v5 }
 0x1f9   : > { %4113 = vmatpush1.bf16.msra.mxu0 %v5033_v35  ;;  %4144 = vmatprep.mubr.bf16.mxu0 %v5952_v34  ;;  %v951_v8 = vld [vmem:[%s5821_s12 + $0x428] sm:$0xff] }
 0x1fa   : > { %4104 = vmatmul.mubr.bf16.vlgmr.msra.gmra.mxu1 %v6094_v40  ;;  %4114 = vmatprep.subr.bf16.mxu0 %v5026_v43  ;;  %v5106_v48 = vcombine.high %v947_v6, %v951_v8  ;;  %v939_v13 = vld [vmem:[%s5821_s12 + $0x3c8] sm:$0xff]  ;;  %v5105_v43 = vcombine.low %v947_v6, %v951_v8 }
 0x1fb   : > { %4154 = vmatpush1.bf16.msra.mxu1 %v5161_v16  ;;  %4185 = vmatprep.mubr.bf16.mxu1 %v5959_v38  ;;  %v943_v53 = vld [vmem:[%s5821_s12 + $0x3e8] sm:$0xff]  ;;  %v4977_v16 = vcombine.low %v819_v4, %v823_v5 }
 0x1fc   : > { %4155 = vmatprep.subr.bf16.mxu1 %v5154_v52  ;;  %v1067_v14 = vld [vmem:[%s5821_s12 + $0x7c8] sm:$0xff]  ;;  %v5098_v52 = vcombine.high %v939_v13, %v943_v53 }
 0x1fd   : > { %4115 = vmatpush1.bf16.msra.mxu0 %v5025_v39  ;;  %v1071_v35 = vld [vmem:[%s5821_s12 + $0x7e8] sm:$0xff] }
 0x1fe   : > { %4116 = vmatprep.subr.bf16.mxu0 %v5018_v24  ;;  %v5226_v17 = vcombine.high %v1067_v14, %v1071_v35  ;;  %v931_v19 = vld [vmem:[%s5821_s12 + $0x388] sm:$0xff]  ;;  %v5225_v24 = vcombine.low %v1067_v14, %v1071_v35 }
 0x1ff   : > { %4156 = vmatpush1.bf16.msra.mxu1 %v5153_v22  ;;  %v935_v20 = vld [vmem:[%s5821_s12 + $0x3a8] sm:$0xff]  ;;  %v5097_v22 = vcombine.low %v939_v13, %v943_v53 }
 0x200   : > { %4157 = vmatprep.subr.bf16.mxu1 %v5146_v25  ;;  %v1059_v21 = vld [vmem:[%s5821_s12 + $0x788] sm:$0xff]  ;;  %v5090_v25 = vcombine.high %v931_v19, %v935_v20 }
 0x201   : > { %4117 = vmatpush1.bf16.msra.mxu0 %v5017_v29  ;;  %v1063_v39 = vld [vmem:[%s5821_s12 + $0x7a8] sm:$0xff] }
 0x202   : > { %4118 = vmatprep.subr.bf16.mxu0 %v5010_v56  ;;  %v5218_v26 = vcombine.high %v1059_v21, %v1063_v39  ;;  %v923_v45 = vld [vmem:[%s5821_s12 + $0x348] sm:$0xff]  ;;  %v5217_v56 = vcombine.low %v1059_v21, %v1063_v39 }
 0x203   : > { %4158 = vmatpush1.bf16.msra.mxu1 %v5145_v30  ;;  %v927_v15 = vld [vmem:[%s5821_s12 + $0x368] sm:$0xff]  ;;  %v5089_v30 = vcombine.low %v931_v19, %v935_v20 }
 0x204   : > { %4159 = vmatprep.subr.bf16.mxu1 %v5138_v31  ;;  %v1051_v28 = vld [vmem:[%s5821_s12 + $0x748] sm:$0xff]  ;;  %v5082_v31 = vcombine.high %v923_v45, %v927_v15 }
 0x205   : > { %4119 = vmatpush1.bf16.msra.mxu0 %v5009_v37  ;;  %v1055_v29 = vld [vmem:[%s5821_s12 + $0x768] sm:$0xff] }
 0x206   : > { %4120 = vmatprep.subr.bf16.mxu0 %v5002_v44  ;;  %v5210_v32 = vcombine.high %v1051_v28, %v1055_v29  ;;  %v915_v33 = vld [vmem:[%s5821_s12 + $0x308] sm:$0xff]  ;;  %v5209_v44 = vcombine.low %v1051_v28, %v1055_v29 }
 0x207   : > { %4160 = vmatpush1.bf16.msra.mxu1 %v5137_v41  ;;  %v919_v23 = vld [vmem:[%s5821_s12 + $0x328] sm:$0xff]  ;;  %v5081_v41 = vcombine.low %v923_v45, %v927_v15 }
 0x208   : > { %4161 = vmatprep.subr.bf16.mxu1 %v5130_v47  ;;  %v1043_v36 = vld [vmem:[%s5821_s12 + $0x708] sm:$0xff]  ;;  %v5074_v47 = vcombine.high %v915_v33, %v919_v23 }
 0x209   : > { %4121 = vmatpush1.bf16.msra.mxu0 %v5001_v58  ;;  %v1047_v37 = vld [vmem:[%s5821_s12 + $0x728] sm:$0xff] }
 0x20a   : > { %4122 = vmatprep.subr.bf16.mxu0 %v4994_v59  ;;  %v5202_v49 = vcombine.high %v1043_v36, %v1047_v37  ;;  %v907_v50 = vld [vmem:[%s5821_s12 + $0x2c8] sm:$0xff]  ;;  %v5201_v59 = vcombine.low %v1043_v36, %v1047_v37 }
 0x20b   : > { %4162 = vmatpush1.bf16.msra.mxu1 %v5129_v42  ;;  %v911_v54 = vld [vmem:[%s5821_s12 + $0x2e8] sm:$0xff]  ;;  %v5073_v42 = vcombine.low %v915_v33, %v919_v23 }
 0x20c   : > { %4163 = vmatprep.subr.bf16.mxu1 %v5122_v46  ;;  %v1035_v55 = vld [vmem:[%s5821_s12 + $0x6c8] sm:$0xff]  ;;  %v5066_v46 = vcombine.high %v907_v50, %v911_v54 }
 0x20d   : > { %4123 = vmatpush1.bf16.msra.mxu0 %v4993_v0  ;;  %v1039_v58 = vld [vmem:[%s5821_s12 + $0x6e8] sm:$0xff] }
 0x20e   : > { %4124 = vmatprep.subr.bf16.mxu0 %v4986_v2  ;;  %v5194_v60 = vcombine.high %v1035_v55, %v1039_v58  ;;  %v899_v61 = vld [vmem:[%s5821_s12 + $0x288] sm:$0xff]  ;;  %v5193_v2 = vcombine.low %v1035_v55, %v1039_v58 }
 0x20f   : > { %4164 = vmatpush1.bf16.msra.mxu1 %v5121_v1  ;;  %v903_v62 = vld [vmem:[%s5821_s12 + $0x2a8] sm:$0xff]  ;;  %v5065_v1 = vcombine.low %v907_v50, %v911_v54 }
 0x210   : > { %4165 = vmatprep.subr.bf16.mxu1 %v5114_v3  ;;  %v1027_v51 = vld [vmem:[%s5821_s12 + $0x688] sm:$0xff]  ;;  %v5058_v3 = vcombine.high %v899_v61, %v903_v62 }
 0x211   : > { %4125 = vmatpush1.bf16.msra.mxu0 %v4985_v10  ;;  %v1031_v0 = vld [vmem:[%s5821_s12 + $0x6a8] sm:$0xff] }
 0x212   : > { %4126 = vmatprep.subr.bf16.mxu0 %v4978_v12  ;;  %v5186_v4 = vcombine.high %v1027_v51, %v1031_v0  ;;  %v891_v5 = vld [vmem:[%s5821_s12 + $0x248] sm:$0xff]  ;;  %v5185_v12 = vcombine.low %v1027_v51, %v1031_v0 }
 0x213   : > { %4166 = vmatpush1.bf16.msra.mxu1 %v5113_v11  ;;  %v895_v6 = vld [vmem:[%s5821_s12 + $0x268] sm:$0xff]  ;;  %v5057_v11 = vcombine.low %v899_v61, %v903_v62 }
 0x214   : > { %4167 = vmatprep.subr.bf16.mxu1 %v5106_v48  ;;  %v1019_v8 = vld [vmem:[%s5821_s12 + $0x648] sm:$0xff]  ;;  %v5050_v48 = vcombine.high %v891_v5, %v895_v6 }
 0x215   : > { %4127 = vmatpush1.bf16.msra.mxu0 %v4977_v16  ;;  %v1023_v10 = vld [vmem:[%s5821_s12 + $0x668] sm:$0xff] }
 0x216   : > { %4128 = vmatprep.subr.bf16.mxu0 %v5098_v52  ;;  %v5178_v13 = vcombine.high %v1019_v8, %v1023_v10  ;;  %v883_v53 = vld [vmem:[%s5821_s12 + $0x208] sm:$0xff]  ;;  %v5177_v52 = vcombine.low %v1019_v8, %v1023_v10 }
 0x217   : > { %4168 = vmatpush1.bf16.msra.mxu1 %v5105_v43  ;;  %v887_v14 = vld [vmem:[%s5821_s12 + $0x228] sm:$0xff]  ;;  %v5049_v43 = vcombine.low %v891_v5, %v895_v6 }
 0x218   : > { %4169 = vmatprep.subr.bf16.mxu1 %v5226_v17  ;;  %v1011_v35 = vld [vmem:[%s5821_s12 + $0x608] sm:$0xff]  ;;  %v5042_v17 = vcombine.high %v883_v53, %v887_v14 }
 0x219   : > { %4129 = vmatpush2.bf16.msra.mxu0 %v5097_v22  ;;  %v1015_v16 = vld [vmem:[%s5821_s12 + $0x628] sm:$0xff] }
 0x21a   : > { %4130 = vmatprep.subr.bf16.mxu0 %v5090_v25  ;;  %v5170_v19 = vcombine.high %v1011_v35, %v1015_v16  ;;  %v1131_v20 = vld [vmem:[%s5821_s12 + $0x9c8] sm:$0xff]  ;;  %v5169_v25 = vcombine.low %v1011_v35, %v1015_v16 }
 0x21b   : > { %4170 = vmatpush2.bf16.msra.mxu1 %v5225_v24  ;;  %v1135_v21 = vld [vmem:[%s5821_s12 + $0x9e8] sm:$0xff]  ;;  %v5041_v24 = vcombine.low %v883_v53, %v887_v14 }
 0x21c   : > { %4171 = vmatprep.subr.bf16.mxu1 %v5218_v26  ;;  %v1259_v39 = vld [vmem:[%s5821_s12 + $0xdc8] sm:$0xff]  ;;  %v5290_v26 = vcombine.high %v1131_v20, %v1135_v21 }
 0x21d   : > { %4131 = vmatpush2.bf16.msra.mxu0 %v5089_v30  ;;  %v1263_v22 = vld [vmem:[%s5821_s12 + $0xde8] sm:$0xff] }
 0x21e   : > { %4132 = vmatprep.subr.bf16.mxu0 %v5082_v31  ;;  %v5418_v45 = vcombine.high %v1259_v39, %v1263_v22  ;;  %v1123_v15 = vld [vmem:[%s5821_s12 + $0x988] sm:$0xff]  ;;  %v5417_v31 = vcombine.low %v1259_v39, %v1263_v22 }
 0x21f   : > { %4172 = vmatpush2.bf16.msra.mxu1 %v5217_v56  ;;  %v1127_v28 = vld [vmem:[%s5821_s12 + $0x9a8] sm:$0xff]  ;;  %v5289_v56 = vcombine.low %v1131_v20, %v1135_v21 }
 0x220   : > { %4173 = vmatprep.subr.bf16.mxu1 %v5210_v32  ;;  %v1251_v29 = vld [vmem:[%s5821_s12 + $0xd88] sm:$0xff]  ;;  %v5282_v32 = vcombine.high %v1123_v15, %v1127_v28 }
 0x221   : > { %4133 = vmatpush2.bf16.msra.mxu0 %v5081_v41  ;;  %v1255_v30 = vld [vmem:[%s5821_s12 + $0xda8] sm:$0xff] }
 0x222   : > { %4134 = vmatprep.subr.bf16.mxu0 %v5074_v47  ;;  %v5410_v33 = vcombine.high %v1251_v29, %v1255_v30  ;;  %v1115_v23 = vld [vmem:[%s5821_s12 + $0x948] sm:$0xff]  ;;  %v5409_v47 = vcombine.low %v1251_v29, %v1255_v30 }
 0x223   : > { %4174 = vmatpush2.bf16.msra.mxu1 %v5209_v44  ;;  %v1119_v36 = vld [vmem:[%s5821_s12 + $0x968] sm:$0xff]  ;;  %v5281_v44 = vcombine.low %v1123_v15, %v1127_v28 }
 0x224   : > { %4175 = vmatprep.subr.bf16.mxu1 %v5202_v49  ;;  %v1243_v37 = vld [vmem:[%s5821_s12 + $0xd48] sm:$0xff]  ;;  %v5274_v49 = vcombine.high %v1115_v23, %v1119_v36 }
 0x225   : > { %4135 = vmatpush2.bf16.msra.mxu0 %v5073_v42  ;;  %v1247_v41 = vld [vmem:[%s5821_s12 + $0xd68] sm:$0xff] }
 0x226   : > { %4136 = vmatprep.subr.bf16.mxu0 %v5066_v46  ;;  %v5402_v50 = vcombine.high %v1243_v37, %v1247_v41  ;;  %v1107_v54 = vld [vmem:[%s5821_s12 + $0x908] sm:$0xff]  ;;  %v5401_v46 = vcombine.low %v1243_v37, %v1247_v41 }
 0x227   : > { %4176 = vmatpush2.bf16.msra.mxu1 %v5201_v59  ;;  %v1111_v55 = vld [vmem:[%s5821_s12 + $0x928] sm:$0xff]  ;;  %v5273_v59 = vcombine.low %v1115_v23, %v1119_v36 }
 0x228   : > { %4177 = vmatprep.subr.bf16.mxu1 %v5194_v60  ;;  %v1235_v58 = vld [vmem:[%s5821_s12 + $0xd08] sm:$0xff]  ;;  %v5266_v60 = vcombine.high %v1107_v54, %v1111_v55 }
 0x229   : > { %4137 = vmatpush2.bf16.msra.mxu0 %v5065_v1  ;;  %v1239_v42 = vld [vmem:[%s5821_s12 + $0xd28] sm:$0xff] }
 0x22a   : > { %4138 = vmatprep.subr.bf16.mxu0 %v5058_v3  ;;  %v5394_v61 = vcombine.high %v1235_v58, %v1239_v42  ;;  %v1099_v62 = vld [vmem:[%s5821_s12 + $0x8c8] sm:$0xff]  ;;  %v5393_v3 = vcombine.low %v1235_v58, %v1239_v42 }
 0x22b   : > { %4178 = vmatpush2.bf16.msra.mxu1 %v5193_v2  ;;  %v1103_v51 = vld [vmem:[%s5821_s12 + $0x8e8] sm:$0xff]  ;;  %v5265_v2 = vcombine.low %v1107_v54, %v1111_v55 }
 0x22c   : > { %4179 = vmatprep.subr.bf16.mxu1 %v5186_v4  ;;  %v1227_v0 = vld [vmem:[%s5821_s12 + $0xcc8] sm:$0xff]  ;;  %v5258_v4 = vcombine.high %v1099_v62, %v1103_v51 }
 0x22d   : > { %4139 = vmatpush2.bf16.msra.mxu0 %v5057_v11  ;;  %v1231_v1 = vld [vmem:[%s5821_s12 + $0xce8] sm:$0xff] }
 0x22e   : > { %4140 = vmatprep.subr.bf16.mxu0 %v5050_v48  ;;  %v5386_v5 = vcombine.high %v1227_v0, %v1231_v1  ;;  %v1091_v6 = vld [vmem:[%s5821_s12 + $0x888] sm:$0xff]  ;;  %v5385_v48 = vcombine.low %v1227_v0, %v1231_v1 }
 0x22f   : > { %4180 = vmatpush2.bf16.msra.mxu1 %v5185_v12  ;;  %v1095_v8 = vld [vmem:[%s5821_s12 + $0x8a8] sm:$0xff]  ;;  %v5257_v12 = vcombine.low %v1099_v62, %v1103_v51 }
 0x230   : > { %4181 = vmatprep.subr.bf16.mxu1 %v5178_v13  ;;  %v1219_v10 = vld [vmem:[%s5821_s12 + $0xc88] sm:$0xff]  ;;  %v5250_v13 = vcombine.high %v1091_v6, %v1095_v8 }
 0x231   : > { %4141 = vmatpush2.bf16.msra.mxu0 %v5049_v43  ;;  %v1223_v11 = vld [vmem:[%s5821_s12 + $0xca8] sm:$0xff] }
 0x232   : > { %4142 = vmatprep.subr.bf16.mxu0 %v5042_v17  ;;  %v5378_v53 = vcombine.high %v1219_v10, %v1223_v11  ;;  %v1083_v14 = vld [vmem:[%s5821_s12 + $0x848] sm:$0xff]  ;;  %v5377_v17 = vcombine.low %v1219_v10, %v1223_v11 }
 0x233   : > { %4182 = vmatpush2.bf16.msra.mxu1 %v5177_v52  ;;  %v1087_v35 = vld [vmem:[%s5821_s12 + $0x868] sm:$0xff]  ;;  %v5249_v52 = vcombine.low %v1091_v6, %v1095_v8 }
 0x234   : > { %4183 = vmatprep.subr.bf16.mxu1 %v5170_v19  ;;  %v1211_v16 = vld [vmem:[%s5821_s12 + $0xc48] sm:$0xff]  ;;  %v5242_v19 = vcombine.high %v1083_v14, %v1087_v35 }
 0x235   : > { %4143 = vmatpush2.bf16.msra.mxu0 %v5041_v24  ;;  %v1215_v43 = vld [vmem:[%s5821_s12 + $0xc68] sm:$0xff] }
 0x236   : > { %4194 = vmatprep.subr.bf16.mxu0 %v5290_v26  ;;  %v5370_v20 = vcombine.high %v1211_v16, %v1215_v43  ;;  %v1075_v21 = vld [vmem:[%s5821_s12 + $0x808] sm:$0xff]  ;;  %v5369_v26 = vcombine.low %v1211_v16, %v1215_v43 }
 0x237   : > { %4184 = vmatpush2.bf16.msra.mxu1 %v5169_v25  ;;  %v1079_v39 = vld [vmem:[%s5821_s12 + $0x828] sm:$0xff]  ;;  %v5241_v25 = vcombine.low %v1083_v14, %v1087_v35 }
 0x238   : > { %4235 = vmatprep.subr.bf16.mxu1 %v5418_v45  ;;  %4145 = vmatmul.mubr.bf16.vlgmr.msra.gmra.mxu0 %v6003_v57  ;;  %v1203_v22 = vld [vmem:[%s5821_s12 + $0xc08] sm:$0xff]  ;;  %v5234_v45 = vcombine.high %v1075_v21, %v1079_v39 }
 0x239   : > { %4195 = vmatpush1.bf16.msra.mxu0 %v5289_v56  ;;  %4226 = vmatprep.mubr.bf16.mxu0 %v6010_v63  ;;  %v1207_v24 = vld [vmem:[%s5821_s12 + $0xc28] sm:$0xff] }
 0x23a   : > { %4186 = vmatmul.mubr.bf16.vlgmr.msra.gmra.mxu1 %v6014_v27  ;;  %4196 = vmatprep.subr.bf16.mxu0 %v5282_v32  ;;  %v5362_v15 = vcombine.high %v1203_v22, %v1207_v24  ;;  %v1195_v28 = vld [vmem:[%s5821_s12 + $0xbc8] sm:$0xff]  ;;  %v5361_v32 = vcombine.low %v1203_v22, %v1207_v24 }
 0x23b   : > { %4236 = vmatpush1.bf16.msra.mxu1 %v5417_v31  ;;  %4267 = vmatprep.mubr.bf16.mxu1 %v6023_v7  ;;  %v1199_v29 = vld [vmem:[%s5821_s12 + $0xbe8] sm:$0xff]  ;;  %v5233_v31 = vcombine.low %v1075_v21, %v1079_v39 }
 0x23c   : > { %4237 = vmatprep.subr.bf16.mxu1 %v5410_v33  ;;  %v1323_v30 = vld [vmem:[%s5821_s12 + $0xfc8] sm:$0xff]  ;;  %v5354_v33 = vcombine.high %v1195_v28, %v1199_v29 }
 0x23d   : > { %4197 = vmatpush1.bf16.msra.mxu0 %v5281_v44  ;;  %v1327_v56 = vld [vmem:[%s5821_s12 + $0xfe8] sm:$0xff] }
 0x23e   : > { %4198 = vmatprep.subr.bf16.mxu0 %v5274_v49  ;;  %v5482_v23 = vcombine.high %v1323_v30, %v1327_v56  ;;  %v1187_v36 = vld [vmem:[%s5821_s12 + $0xb88] sm:$0xff]  ;;  %v5481_v49 = vcombine.low %v1323_v30, %v1327_v56 }
 0x23f   : > { %4238 = vmatpush1.bf16.msra.mxu1 %v5409_v47  ;;  %v1191_v37 = vld [vmem:[%s5821_s12 + $0xba8] sm:$0xff]  ;;  %v5353_v47 = vcombine.low %v1195_v28, %v1199_v29 }
 0x240   : > { %4239 = vmatprep.subr.bf16.mxu1 %v5402_v50  ;;  %v1315_v41 = vld [vmem:[%s5821_s12 + $0xf88] sm:$0xff]  ;;  %v5346_v50 = vcombine.high %v1187_v36, %v1191_v37 }
 0x241   : > { %4199 = vmatpush1.bf16.msra.mxu0 %v5273_v59  ;;  %v1319_v44 = vld [vmem:[%s5821_s12 + $0xfa8] sm:$0xff] }
 0x242   : > { %4200 = vmatprep.subr.bf16.mxu0 %v5266_v60  ;;  %v5474_v54 = vcombine.high %v1315_v41, %v1319_v44  ;;  %v1179_v55 = vld [vmem:[%s5821_s12 + $0xb48] sm:$0xff]  ;;  %v5473_v60 = vcombine.low %v1315_v41, %v1319_v44  ;;  %v880_v41 = vld [vmem:[%s5821_s12 + $0x1f0] sm:$0xff] }
 0x243   : > { %4240 = vmatpush1.bf16.msra.mxu1 %v5401_v46  ;;  %v1183_v58 = vld [vmem:[%s5821_s12 + $0xb68] sm:$0xff]  ;;  %v5345_v46 = vcombine.low %v1187_v36, %v1191_v37  ;;  %v876_v37 = vld [vmem:[%s5821_s12 + $0x1d0] sm:$0xff] }
 0x244   : > { %4241 = vmatprep.subr.bf16.mxu1 %v5394_v61  ;;  %v1307_v42 = vld [vmem:[%s5821_s12 + $0xf48] sm:$0xff]  ;;  %v5338_v61 = vcombine.high %v1179_v55, %v1183_v58  ;;  %v1004_v44 = vld [vmem:[%s5821_s12 + $0x5d0] sm:$0xff] }
 0x245   : > { %4201 = vmatpush1.bf16.msra.mxu0 %v5265_v2  ;;  %v1311_v59 = vld [vmem:[%s5821_s12 + $0xf68] sm:$0xff] }
 0x246   : > { %4202 = vmatprep.subr.bf16.mxu0 %v5258_v4  ;;  %v5466_v62 = vcombine.high %v1307_v42, %v1311_v59  ;;  %v1171_v51 = vld [vmem:[%s5821_s12 + $0xb08] sm:$0xff]  ;;  %v5465_v4 = vcombine.low %v1307_v42, %v1311_v59  ;;  %v872_v42 = vld [vmem:[%s5821_s12 + $0x1b0] sm:$0xff] }
 0x247   : > { %4242 = vmatpush1.bf16.msra.mxu1 %v5393_v3  ;;  %v1175_v0 = vld [vmem:[%s5821_s12 + $0xb28] sm:$0xff]  ;;  %v5337_v3 = vcombine.low %v1179_v55, %v1183_v58  ;;  %v868_v58 = vld [vmem:[%s5821_s12 + $0x190] sm:$0xff] }
 0x248   : > { %4243 = vmatprep.subr.bf16.mxu1 %v5386_v5  ;;  %v1299_v1 = vld [vmem:[%s5821_s12 + $0xf08] sm:$0xff]  ;;  %v5330_v5 = vcombine.high %v1171_v51, %v1175_v0  ;;  %v996_v59 = vld [vmem:[%s5821_s12 + $0x590] sm:$0xff] }
 0x249   : > { %4203 = vmatpush1.bf16.msra.mxu0 %v5257_v12  ;;  %v1303_v2 = vld [vmem:[%s5821_s12 + $0xf28] sm:$0xff] }
 0x24a   : > { %4204 = vmatprep.subr.bf16.mxu0 %v5250_v13  ;;  %v5458_v6 = vcombine.high %v1299_v1, %v1303_v2  ;;  %v1163_v8 = vld [vmem:[%s5821_s12 + $0xac8] sm:$0xff]  ;;  %v5457_v13 = vcombine.low %v1299_v1, %v1303_v2  ;;  %v864_v1 = vld [vmem:[%s5821_s12 + $0x170] sm:$0xff] }
 0x24b   : > { %4244 = vmatpush1.bf16.msra.mxu1 %v5385_v48  ;;  %v1167_v10 = vld [vmem:[%s5821_s12 + $0xae8] sm:$0xff]  ;;  %v5329_v48 = vcombine.low %v1171_v51, %v1175_v0  ;;  %v860_v0 = vld [vmem:[%s5821_s12 + $0x150] sm:$0xff] }
 0x24c   : > { %4245 = vmatprep.subr.bf16.mxu1 %v5378_v53  ;;  %v1291_v11 = vld [vmem:[%s5821_s12 + $0xec8] sm:$0xff]  ;;  %v5322_v53 = vcombine.high %v1163_v8, %v1167_v10 }
 0x24d   : > { %4205 = vmatpush1.bf16.msra.mxu0 %v5249_v52  ;;  %v1295_v12 = vld [vmem:[%s5821_s12 + $0xee8] sm:$0xff] }
 0x24e   : > { %4206 = vmatprep.subr.bf16.mxu0 %v5242_v19  ;;  %v5450_v14 = vcombine.high %v1291_v11, %v1295_v12  ;;  %v1155_v35 = vld [vmem:[%s5821_s12 + $0xa88] sm:$0xff]  ;;  %v5449_v19 = vcombine.low %v1291_v11, %v1295_v12  ;;  %v5020_v12 = vcombine.high %v860_v0, %v864_v1 }
 0x24f   : > { %4246 = vmatpush1.bf16.msra.mxu1 %v5377_v17  ;;  %v1159_v16 = vld [vmem:[%s5821_s12 + $0xaa8] sm:$0xff]  ;;  %v5321_v17 = vcombine.low %v1163_v8, %v1167_v10 }
 0x250   : > { %4247 = vmatprep.subr.bf16.mxu1 %v5370_v20  ;;  %v1283_v43 = vld [vmem:[%s5821_s12 + $0xe88] sm:$0xff]  ;;  %v5314_v20 = vcombine.high %v1155_v35, %v1159_v16 }
 0x251   : > { %4207 = vmatpush1.bf16.msra.mxu0 %v5241_v25  ;;  %v1287_v52 = vld [vmem:[%s5821_s12 + $0xea8] sm:$0xff] }
 0x252   : > { %4208 = vmatprep.subr.bf16.mxu0 %v5234_v45  ;;  %v5442_v21 = vcombine.high %v1283_v43, %v1287_v52  ;;  %v1147_v39 = vld [vmem:[%s5821_s12 + $0xa48] sm:$0xff]  ;;  %v5441_v45 = vcombine.low %v1283_v43, %v1287_v52  ;;  %v980_v43 = vld [vmem:[%s5821_s12 + $0x510] sm:$0xff] }
 0x253   : > { %4248 = vmatpush1.bf16.msra.mxu1 %v5369_v26  ;;  %v1151_v22 = vld [vmem:[%s5821_s12 + $0xa68] sm:$0xff]  ;;  %v5313_v26 = vcombine.low %v1155_v35, %v1159_v16  ;;  %v984_v52 = vld [vmem:[%s5821_s12 + $0x530] sm:$0xff] }
 0x254   : > { %4249 = vmatprep.subr.bf16.mxu1 %v5362_v15  ;;  %v1275_v24 = vld [vmem:[%s5821_s12 + $0xe48] sm:$0xff]  ;;  %v5306_v15 = vcombine.high %v1147_v39, %v1151_v22 }
 0x255   : > { %4209 = vmatpush1.bf16.msra.mxu0 %v5233_v31  ;;  %v1279_v25 = vld [vmem:[%s5821_s12 + $0xe68] sm:$0xff] }
 0x256   : > { %4210 = vmatprep.subr.bf16.mxu0 %v5354_v33  ;;  %v5434_v28 = vcombine.high %v1275_v24, %v1279_v25  ;;  %v1139_v29 = vld [vmem:[%s5821_s12 + $0xa08] sm:$0xff]  ;;  %v5433_v33 = vcombine.low %v1275_v24, %v1279_v25  ;;  %v5140_v24 = vcombine.high %v980_v43, %v984_v52  ;;  %v844_v25 = vld [vmem:[%s5821_s12 + $0xd0] sm:$0xff] }
 0x257   : > { %4250 = vmatpush1.bf16.msra.mxu1 %v5361_v32  ;;  %v1143_v30 = vld [vmem:[%s5821_s12 + $0xa28] sm:$0xff]  ;;  %v5305_v32 = vcombine.low %v1147_v39, %v1151_v22 }
 0x258   : > { %4251 = vmatprep.subr.bf16.mxu1 %v5482_v23  ;;  %v1267_v56 = vld [vmem:[%s5821_s12 + $0xe08] sm:$0xff]  ;;  %v5298_v23 = vcombine.high %v1139_v29, %v1143_v30 }
 0x259   : > { %4211 = vmatpush2.bf16.msra.mxu0 %v5353_v47  ;;  %v1271_v31 = vld [vmem:[%s5821_s12 + $0xe28] sm:$0xff]  ;;  %v1008_v47 = vld [vmem:[%s5821_s12 + $0x5f0] sm:$0xff] }
 0x25a   : > { %4212 = vmatprep.subr.bf16.mxu0 %v5346_v50  ;;  %v5426_v36 = vcombine.high %v1267_v56, %v1271_v31  ;;  %v5425_v50 = vcombine.low %v1267_v56, %v1271_v31  ;;  %v5164_v55 = vcombine.high %v1004_v44, %v1008_v47  ;;  %v836_v31 = vld [vmem:[%s5821_s12 + $0x90] sm:$0xff] }
 0x25b   : > { %4252 = vmatpush2.bf16.msra.mxu1 %v5481_v49  ;;  %v5297_v49 = vcombine.low %v1139_v29, %v1143_v30  ;;  %v5139_v29 = vcombine.low %v980_v43, %v984_v52 }
 0x25c   : > { %4253 = vmatprep.subr.bf16.mxu1 %v5474_v54  ;;  %v5036_v54 = vcombine.high %v876_v37, %v880_v41 }
 0x25d   : > { %4213 = vmatpush2.bf16.msra.mxu0 %v5345_v46  ;;  %v1000_v46 = vld [vmem:[%s5821_s12 + $0x5b0] sm:$0xff] }
 0x25e   : > { %4214 = vmatprep.subr.bf16.mxu0 %v5338_v61  ;;  %v5163_v61 = vcombine.low %v1004_v44, %v1008_v47  ;;  %v5156_v51 = vcombine.high %v996_v59, %v1000_v46  ;;  %v5155_v11 = vcombine.low %v996_v59, %v1000_v46  ;;  %v828_v47 = vld [vmem:[%s5821_s12 + $0x50] sm:$0xff] }
 0x25f   : > { %4254 = vmatpush2.bf16.msra.mxu1 %v5473_v60  ;;  %v5035_v60 = vcombine.low %v876_v37, %v880_v41  ;;  %v820_v46 = vld [vmem:[%s5821_s12 + $0x10] sm:$0xff] }
 0x260   : > { %4255 = vmatprep.subr.bf16.mxu1 %v5466_v62  ;;  %v5028_v62 = vcombine.high %v868_v58, %v872_v42 }
 0x261   : > { %4215 = vmatpush2.bf16.msra.mxu0 %v5337_v3  ;;  %v988_v3 = vld [vmem:[%s5821_s12 + $0x550] sm:$0xff] }
 0x262   : > { %4216 = vmatprep.subr.bf16.mxu0 %v5330_v5 }
 0x263   : > { %4256 = vmatpush2.bf16.msra.mxu1 %v5465_v4  ;;  %v992_v4 = vld [vmem:[%s5821_s12 + $0x570] sm:$0xff] }
 0x264   : > { %4257 = vmatprep.subr.bf16.mxu1 %v5458_v6  ;;  %v5027_v6 = vcombine.low %v868_v58, %v872_v42 }
 0x265   : > { %4217 = vmatpush2.bf16.msra.mxu0 %v5329_v48 }
 0x266   : > { %4218 = vmatprep.subr.bf16.mxu0 %v5322_v53  ;;  %v852_v53 = vld [vmem:[%s5821_s12 + $0x110] sm:$0xff] }
 0x267   : > { %4258 = vmatpush2.bf16.msra.mxu1 %v5457_v13  ;;  %v5148_v13 = vcombine.high %v988_v3, %v992_v4 }
 0x268   : > { %4259 = vmatprep.subr.bf16.mxu1 %v5450_v14  ;;  %v856_v14 = vld [vmem:[%s5821_s12 + $0x130] sm:$0xff] }
 0x269   : > { %4219 = vmatpush2.bf16.msra.mxu0 %v5321_v17  ;;  %v5012_v39 = vcombine.high %v852_v53, %v856_v14 }
 0x26a   : > { %4220 = vmatprep.subr.bf16.mxu0 %v5314_v20 }
 0x26b   : > { %4260 = vmatpush2.bf16.msra.mxu1 %v5449_v19  ;;  %v5019_v19 = vcombine.low %v860_v0, %v864_v1 }
 0x26c   : > { %4261 = vmatprep.subr.bf16.mxu1 %v5442_v21  ;;  %v5147_v21 = vcombine.low %v988_v3, %v992_v4  ;;  %v940_v3 = vld [vmem:[%s5821_s12 + $0x3d0] sm:$0xff] }
 0x26d   : > { %4221 = vmatpush2.bf16.msra.mxu0 %v5313_v26  ;;  %v848_v26 = vld [vmem:[%s5821_s12 + $0xf0] sm:$0xff] }
 0x26e   : > { %4222 = vmatprep.subr.bf16.mxu0 %v5306_v15  ;;  %v976_v15 = vld [vmem:[%s5821_s12 + $0x4f0] sm:$0xff]  ;;  %v5004_v30 = vcombine.high %v844_v25, %v848_v26 }
 0x26f   : > { %4262 = vmatpush2.bf16.msra.mxu1 %v5441_v45  ;;  %v972_v45 = vld [vmem:[%s5821_s12 + $0x4d0] sm:$0xff] }
 0x270   : > { %4263 = vmatprep.subr.bf16.mxu1 %v5434_v28  ;;  %v5011_v28 = vcombine.low %v852_v53, %v856_v14  ;;  %v5132_v56 = vcombine.high %v972_v45, %v976_v15  ;;  %v5131_v37 = vcombine.low %v972_v45, %v976_v15  ;;  %v944_v4 = vld [vmem:[%s5821_s12 + $0x3f0] sm:$0xff] }
 0x271   : > { %4223 = vmatpush2.bf16.msra.mxu0 %v5305_v32  ;;  %v840_v32 = vld [vmem:[%s5821_s12 + $0xb0] sm:$0xff]  ;;  %v5099_v43 = vcombine.low %v940_v3, %v944_v4 }
 0x272   : > { %4224 = vmatprep.subr.bf16.mxu0 %v5298_v23  ;;  %v968_v23 = vld [vmem:[%s5821_s12 + $0x4b0] sm:$0xff]  ;;  %v4996_v41 = vcombine.high %v836_v31, %v840_v32 }
 0x273   : > { %4264 = vmatpush2.bf16.msra.mxu1 %v5433_v33  ;;  %v964_v33 = vld [vmem:[%s5821_s12 + $0x490] sm:$0xff] }
 0x274   : > { %4265 = vmatprep.subr.bf16.mxu1 %v5426_v36  ;;  %v5003_v36 = vcombine.low %v844_v25, %v848_v26  ;;  %v5124_v44 = vcombine.high %v964_v33, %v968_v23  ;;  %v5123_v58 = vcombine.low %v964_v33, %v968_v23  ;;  %v936_v53 = vld [vmem:[%s5821_s12 + $0x3b0] sm:$0xff] }
 0x275   : > { %4225 = vmatpush2.bf16.msra.mxu0 %v5297_v49  ;;  %v832_v49 = vld [vmem:[%s5821_s12 + $0x70] sm:$0xff] }
 0x276   : > { %4276 = vmatprep.subr.bf16.mxu0 %v5036_v54  ;;  %v960_v54 = vld [vmem:[%s5821_s12 + $0x470] sm:$0xff]  ;;  %v4988_v42 = vcombine.high %v828_v47, %v832_v49 }
 0x277   : > { %4266 = vmatpush2.bf16.msra.mxu1 %v5425_v50  ;;  %v956_v50 = vld [vmem:[%s5821_s12 + $0x450] sm:$0xff] }
 0x278   : > { %4317 = vmatprep.subr.bf16.mxu1 %v5164_v55  ;;  %v3982_v2 = vpop.f32.mrf.mxu0  ;;  %4227 = vmatmul.mubr.bf16.vlgmr.msra.gmra.mxu0 %v6086_v9  ;;  %v4995_v55 = vcombine.low %v836_v31, %v840_v32  ;;  %v5116_v59 = vcombine.high %v956_v50, %v960_v54  ;;  %v5115_v0 = vcombine.low %v956_v50, %v960_v54  ;;  %v1060_v14 = vld [vmem:[%s5821_s12 + $0x790] sm:$0xff] }
 0x279   : > { %4277 = vmatpush1.bf16.msra.mxu0 %v5035_v60  ;;  %4308 = vmatprep.mubr.bf16.mxu0 %v5952_v34  ;;  %v824_v60 = vld [vmem:[%s5821_s12 + $0x30] sm:$0xff] }
 0x27a   : > { %v4023_v5 = vpop.f32.mrf.mxu1  ;;  %4268 = vmatmul.mubr.bf16.vlgmr.msra.gmra.mxu1 %v6094_v40  ;;  %v3984_v10 = vpop.f32.mrf.mxu0  ;;  %4278 = vmatprep.subr.bf16.mxu0 %v5028_v62  ;;  %v952_v62 = vld [vmem:[%s5821_s12 + $0x430] sm:$0xff]  ;;  %v4980_v1 = vcombine.high %v820_v46, %v824_v60 }
 0x27b   : > { %v6238_v8 = vadd.f32 %v4023_v5, %v3982_v2  ;;  %4318 = vmatpush1.bf16.msra.mxu1 %v5163_v61  ;;  %4349 = vmatprep.mubr.bf16.mxu1 %v5959_v38  ;;  %v948_v61 = vld [vmem:[%s5821_s12 + $0x410] sm:$0xff] }
 0x27c   : > { %v4025_v48 = vpop.f32.mrf.mxu1  ;;  %4319 = vmatprep.subr.bf16.mxu1 %v5156_v51  ;;  %v3986_v16 = vpop.f32.mrf.mxu0  ;;  %v4987_v51 = vcombine.low %v828_v47, %v832_v49  ;;  %v5108_v2 = vcombine.high %v948_v61, %v952_v62  ;;  %v1068_v5 = vld [vmem:[%s5821_s12 + $0x7d0] sm:$0xff] }
 0x27d   : > { %v6243_v35 = vadd.f32 %v4025_v48, %v3984_v10  ;;  %4279 = vmatpush1.bf16.msra.mxu0 %v5027_v6  ;;  %v1072_v6 = vld [vmem:[%s5821_s12 + $0x7f0] sm:$0xff]  ;;  %v4979_v10 = vcombine.low %v820_v46, %v824_v60 }
 0x27e   : > { %v4027_v17 = vpop.f32.mrf.mxu1  ;;  %v3987_v20 = vpop.f32.mrf.mxu0  ;;  %4280 = vmatprep.subr.bf16.mxu0 %v5020_v12  ;;  %v5100_v12 = vcombine.high %v940_v3, %v944_v4  ;;  %v5228_v48 = vcombine.high %v1068_v5, %v1072_v6  ;;  %v1064_v16 = vld [vmem:[%s5821_s12 + $0x7b0] sm:$0xff]  ;;  %v5227_v52 = vcombine.low %v1068_v5, %v1072_v6 }
 0x27f   : > { %4320 = vmatpush1.bf16.msra.mxu1 %v5155_v11  ;;  %v5107_v11 = vcombine.low %v948_v61, %v952_v62  ;;  %v924_v20 = vld [vmem:[%s5821_s12 + $0x350] sm:$0xff]  ;;  %v5219_v25 = vcombine.low %v1060_v14, %v1064_v16 }
 0x280   : > { %v4028_v22 = vpop.f32.mrf.mxu1  ;;  %4321 = vmatprep.subr.bf16.mxu1 %v5148_v13  ;;  %v932_v13 = vld [vmem:[%s5821_s12 + $0x390] sm:$0xff] }
 0x281   : > { %4281 = vmatpush1.bf16.msra.mxu0 %v5019_v19  ;;  %v5092_v17 = vcombine.high %v932_v13, %v936_v53  ;;  %v5220_v19 = vcombine.high %v1060_v14, %v1064_v16  ;;  %v1056_v22 = vld [vmem:[%s5821_s12 + $0x770] sm:$0xff] }
 0x282   : > { %4282 = vmatprep.subr.bf16.mxu0 %v5012_v39  ;;  %v1052_v39 = vld [vmem:[%s5821_s12 + $0x750] sm:$0xff] }
 0x283   : > { %4322 = vmatpush1.bf16.msra.mxu1 %v5147_v21  ;;  %v928_v21 = vld [vmem:[%s5821_s12 + $0x370] sm:$0xff]  ;;  %v5212_v45 = vcombine.high %v1052_v39, %v1056_v22  ;;  %v5211_v31 = vcombine.low %v1052_v39, %v1056_v22 }
 0x284   : > { %4323 = vmatprep.subr.bf16.mxu1 %v5140_v24  ;;  %v5091_v24 = vcombine.low %v932_v13, %v936_v53  ;;  %v5084_v26 = vcombine.high %v924_v20, %v928_v21  ;;  %v916_v15 = vld [vmem:[%s5821_s12 + $0x310] sm:$0xff] }
 0x285   : > { %4283 = vmatpush1.bf16.msra.mxu0 %v5011_v28  ;;  %v920_v28 = vld [vmem:[%s5821_s12 + $0x330] sm:$0xff] }
 0x286   : > { %4284 = vmatprep.subr.bf16.mxu0 %v5004_v30  ;;  %v1048_v30 = vld [vmem:[%s5821_s12 + $0x730] sm:$0xff]  ;;  %v5076_v32 = vcombine.high %v916_v15, %v920_v28 }
 0x287   : > { %4324 = vmatpush1.bf16.msra.mxu1 %v5139_v29  ;;  %v1044_v29 = vld [vmem:[%s5821_s12 + $0x710] sm:$0xff] }
 0x288   : > { %4325 = vmatprep.subr.bf16.mxu1 %v5132_v56  ;;  %v5083_v56 = vcombine.low %v924_v20, %v928_v21  ;;  %v5204_v33 = vcombine.high %v1044_v29, %v1048_v30  ;;  %v908_v23 = vld [vmem:[%s5821_s12 + $0x2d0] sm:$0xff]  ;;  %v5203_v47 = vcombine.low %v1044_v29, %v1048_v30 }
 0x289   : > { %4285 = vmatpush1.bf16.msra.mxu0 %v5003_v36  ;;  %v912_v36 = vld [vmem:[%s5821_s12 + $0x2f0] sm:$0xff] }
 0x28a   : > { %4286 = vmatprep.subr.bf16.mxu0 %v4996_v41  ;;  %v1040_v41 = vld [vmem:[%s5821_s12 + $0x6f0] sm:$0xff]  ;;  %v5068_v49 = vcombine.high %v908_v23, %v912_v36 }
 0x28b   : > { %4326 = vmatpush1.bf16.msra.mxu1 %v5131_v37  ;;  %v1036_v37 = vld [vmem:[%s5821_s12 + $0x6d0] sm:$0xff] }
 0x28c   : > { %4327 = vmatprep.subr.bf16.mxu1 %v5124_v44  ;;  %v5075_v44 = vcombine.low %v916_v15, %v920_v28  ;;  %v5196_v50 = vcombine.high %v1036_v37, %v1040_v41  ;;  %v900_v54 = vld [vmem:[%s5821_s12 + $0x290] sm:$0xff]  ;;  %v5195_v46 = vcombine.low %v1036_v37, %v1040_v41 }
 0x28d   : > { %4287 = vmatpush1.bf16.msra.mxu0 %v4995_v55  ;;  %v904_v55 = vld [vmem:[%s5821_s12 + $0x2b0] sm:$0xff] }
 0x28e   : > { %4288 = vmatprep.subr.bf16.mxu0 %v4988_v42  ;;  %v1032_v42 = vld [vmem:[%s5821_s12 + $0x6b0] sm:$0xff]  ;;  %v5060_v60 = vcombine.high %v900_v54, %v904_v55 }
 0x28f   : > { %4328 = vmatpush1.bf16.msra.mxu1 %v5123_v58  ;;  %v1028_v58 = vld [vmem:[%s5821_s12 + $0x690] sm:$0xff] }
 0x290   : > { %4329 = vmatprep.subr.bf16.mxu1 %v5116_v59  ;;  %v5067_v59 = vcombine.low %v908_v23, %v912_v36  ;;  %v5188_v61 = vcombine.high %v1028_v58, %v1032_v42  ;;  %v892_v62 = vld [vmem:[%s5821_s12 + $0x250] sm:$0xff]  ;;  %v5187_v3 = vcombine.low %v1028_v58, %v1032_v42 }
 0x291   : > { %4289 = vmatpush1.bf16.msra.mxu0 %v4987_v51  ;;  %v896_v51 = vld [vmem:[%s5821_s12 + $0x270] sm:$0xff] }
 0x292   : > { %4290 = vmatprep.subr.bf16.mxu0 %v4980_v1  ;;  %v1024_v1 = vld [vmem:[%s5821_s12 + $0x670] sm:$0xff]  ;;  %v5052_v4 = vcombine.high %v892_v62, %v896_v51 }
 0x293   : > { %4330 = vmatpush1.bf16.msra.mxu1 %v5115_v0  ;;  %v1020_v0 = vld [vmem:[%s5821_s12 + $0x650] sm:$0xff] }
 0x294   : > { %4331 = vmatprep.subr.bf16.mxu1 %v5108_v2  ;;  %v5059_v2 = vcombine.low %v900_v54, %v904_v55  ;;  %v5180_v5 = vcombine.high %v1020_v0, %v1024_v1  ;;  %v884_v6 = vld [vmem:[%s5821_s12 + $0x210] sm:$0xff]  ;;  %v5179_v13 = vcombine.low %v1020_v0, %v1024_v1 }
 0x295   : > { %4291 = vmatpush1.bf16.msra.mxu0 %v4979_v10  ;;  %v888_v10 = vld [vmem:[%s5821_s12 + $0x230] sm:$0xff] }
 0x296   : > { %4292 = vmatprep.subr.bf16.mxu0 %v5100_v12  ;;  %v1016_v12 = vld [vmem:[%s5821_s12 + $0x630] sm:$0xff]  ;;  %v5044_v53 = vcombine.high %v884_v6, %v888_v10 }
 0x297   : > { %4332 = vmatpush1.bf16.msra.mxu1 %v5107_v11  ;;  %v1012_v11 = vld [vmem:[%s5821_s12 + $0x610] sm:$0xff] }
 0x298   : > { %4333 = vmatprep.subr.bf16.mxu1 %v5228_v48  ;;  %v5051_v48 = vcombine.low %v892_v62, %v896_v51  ;;  %v5172_v14 = vcombine.high %v1012_v11, %v1016_v12  ;;  %v1132_v16 = vld [vmem:[%s5821_s12 + $0x9d0] sm:$0xff]  ;;  %v5171_v20 = vcombine.low %v1012_v11, %v1016_v12 }
 0x299   : > { %4293 = vmatpush2.bf16.msra.mxu0 %v5099_v43  ;;  %v1136_v43 = vld [vmem:[%s5821_s12 + $0x9f0] sm:$0xff] }
 0x29a   : > { %4294 = vmatprep.subr.bf16.mxu0 %v5092_v17  ;;  %v1264_v17 = vld [vmem:[%s5821_s12 + $0xdf0] sm:$0xff]  ;;  %v5292_v21 = vcombine.high %v1132_v16, %v1136_v43 }
 0x29b   : > { %4334 = vmatpush2.bf16.msra.mxu1 %v5227_v52  ;;  %v1260_v52 = vld [vmem:[%s5821_s12 + $0xdd0] sm:$0xff] }
 0x29c   : > { %4335 = vmatprep.subr.bf16.mxu1 %v5220_v19  ;;  %v5043_v19 = vcombine.low %v884_v6, %v888_v10  ;;  %v5420_v39 = vcombine.high %v1260_v52, %v1264_v17  ;;  %v1124_v22 = vld [vmem:[%s5821_s12 + $0x990] sm:$0xff]  ;;  %v5419_v15 = vcombine.low %v1260_v52, %v1264_v17 }
 0x29d   : > { %4295 = vmatpush2.bf16.msra.mxu0 %v5091_v24  ;;  %v1128_v24 = vld [vmem:[%s5821_s12 + $0x9b0] sm:$0xff] }
 0x29e   : > { %4296 = vmatprep.subr.bf16.mxu0 %v5084_v26  ;;  %v1256_v26 = vld [vmem:[%s5821_s12 + $0xdb0] sm:$0xff]  ;;  %v5284_v28 = vcombine.high %v1124_v22, %v1128_v24  ;;  %v5283_v37 = vcombine.low %v1124_v22, %v1128_v24 }
 0x29f   : > { %4336 = vmatpush2.bf16.msra.mxu1 %v5219_v25  ;;  %v1252_v25 = vld [vmem:[%s5821_s12 + $0xd90] sm:$0xff] }
 0x2a0   : > { %4337 = vmatprep.subr.bf16.mxu1 %v5212_v45  ;;  %v5291_v45 = vcombine.low %v1132_v16, %v1136_v43  ;;  %v5412_v29 = vcombine.high %v1252_v25, %v1256_v26  ;;  %v1116_v30 = vld [vmem:[%s5821_s12 + $0x950] sm:$0xff] }
 0x2a1   : > { %4297 = vmatpush2.bf16.msra.mxu0 %v5083_v56  ;;  %v1120_v56 = vld [vmem:[%s5821_s12 + $0x970] sm:$0xff] }
 0x2a2   : > { %4298 = vmatprep.subr.bf16.mxu0 %v5076_v32  ;;  %v1244_v32 = vld [vmem:[%s5821_s12 + $0xd50] sm:$0xff]  ;;  %v5275_v62 = vcombine.low %v1116_v30, %v1120_v56 }
 0x2a3   : > { %4338 = vmatpush2.bf16.msra.mxu1 %v5211_v31  ;;  %v1108_v55 = vld [vmem:[%s5821_s12 + $0x910] sm:$0xff] }
 0x2a4   : > { %4339 = vmatprep.subr.bf16.mxu1 %v5204_v33  ;;  %v1248_v33 = vld [vmem:[%s5821_s12 + $0xd70] sm:$0xff] }
 0x2a5   : > { %4299 = vmatpush2.bf16.msra.mxu0 %v5075_v44  ;;  %v5411_v44 = vcombine.low %v1252_v25, %v1256_v26  ;;  %v5404_v54 = vcombine.high %v1244_v32, %v1248_v33  ;;  %v1112_v58 = vld [vmem:[%s5821_s12 + $0x930] sm:$0xff]  ;;  %v5403_v1 = vcombine.low %v1244_v32, %v1248_v33 }
 0x2a6   : > { %4300 = vmatprep.subr.bf16.mxu0 %v5068_v49  ;;  %v1100_v6 = vld [vmem:[%s5821_s12 + $0x8d0] sm:$0xff] }
 0x2a7   : > { %4340 = vmatpush2.bf16.msra.mxu1 %v5203_v47  ;;  %v5276_v47 = vcombine.high %v1116_v30, %v1120_v56  ;;  %v1104_v10 = vld [vmem:[%s5821_s12 + $0x8f0] sm:$0xff] }
 0x2a8   : > { %4341 = vmatprep.subr.bf16.mxu1 %v5196_v50  ;;  %v5260_v52 = vcombine.high %v1100_v6, %v1104_v10  ;;  %v1220_v22 = vld [vmem:[%s5821_s12 + $0xc90] sm:$0xff]  ;;  %v5259_v25 = vcombine.low %v1100_v6, %v1104_v10 }
 0x2a9   : > { %4301 = vmatpush2.bf16.msra.mxu0 %v5067_v59  ;;  %v1236_v59 = vld [vmem:[%s5821_s12 + $0xd10] sm:$0xff] }
 0x2aa   : > { %4302 = vmatprep.subr.bf16.mxu0 %v5060_v60  ;;  %v1224_v24 = vld [vmem:[%s5821_s12 + $0xcb0] sm:$0xff] }
 0x2ab   : > { %4342 = vmatpush2.bf16.msra.mxu1 %v5195_v46  ;;  %v1240_v46 = vld [vmem:[%s5821_s12 + $0xd30] sm:$0xff] }
 0x2ac   : > { %4343 = vmatprep.subr.bf16.mxu1 %v5188_v61  ;;  %v5395_v43 = vcombine.low %v1236_v59, %v1240_v46  ;;  %v1084_v30 = vld [vmem:[%s5821_s12 + $0x850] sm:$0xff] }
 0x2ad   : > { %4303 = vmatpush2.bf16.msra.mxu0 %v5059_v2  ;;  %v5268_v2 = vcombine.high %v1108_v55, %v1112_v58  ;;  %v1088_v56 = vld [vmem:[%s5821_s12 + $0x870] sm:$0xff] }
 0x2ae   : > { %4304 = vmatprep.subr.bf16.mxu0 %v5052_v4  ;;  %v1212_v33 = vld [vmem:[%s5821_s12 + $0xc50] sm:$0xff] }
 0x2af   : > { %4344 = vmatpush2.bf16.msra.mxu1 %v5187_v3 }
 0x2b0   : > { %4345 = vmatprep.subr.bf16.mxu1 %v5180_v5  ;;  %v5396_v5 = vcombine.high %v1236_v59, %v1240_v46  ;;  %v1208_v59 = vld [vmem:[%s5821_s12 + $0xc30] sm:$0xff]  ;;  %v5243_v46 = vcombine.low %v1084_v30, %v1088_v56 }
 0x2b1   : > { %4305 = vmatpush2.bf16.msra.mxu0 %v5051_v48  ;;  %v1228_v48 = vld [vmem:[%s5821_s12 + $0xcd0] sm:$0xff] }
 0x2b2   : > { %4306 = vmatprep.subr.bf16.mxu0 %v5044_v53  ;;  %v5267_v53 = vcombine.low %v1108_v55, %v1112_v58 }
 0x2b3   : > { %4346 = vmatpush2.bf16.msra.mxu1 %v5179_v13  ;;  %v1232_v13 = vld [vmem:[%s5821_s12 + $0xcf0] sm:$0xff] }
 0x2b4   : > { %4347 = vmatprep.subr.bf16.mxu1 %v5172_v14  ;;  %v5388_v17 = vcombine.high %v1228_v48, %v1232_v13 }
 0x2b5   : > { %4307 = vmatpush2.bf16.msra.mxu0 %v5043_v19  ;;  %v1092_v19 = vld [vmem:[%s5821_s12 + $0x890] sm:$0xff] }
 0x2b6   : > { %4358 = vmatprep.subr.bf16.mxu0 %v5292_v21 }
 0x2b7   : > { %4348 = vmatpush2.bf16.msra.mxu1 %v5171_v20  ;;  %v1096_v20 = vld [vmem:[%s5821_s12 + $0x8b0] sm:$0xff] }
 0x2b8   : > { %4399 = vmatprep.subr.bf16.mxu1 %v5420_v39  ;;  %v4064_v31 = vpop.f32.mrf.mxu0  ;;  %4309 = vmatmul.mubr.bf16.vlgmr.msra.gmra.mxu0 %v6003_v57 }
 0x2b9   : > { %v4065_v23 = vadd.f32 %v4064_v31, %v6238_v8  ;;  %4359 = vmatpush1.bf16.msra.mxu0 %v5291_v45  ;;  %4390 = vmatprep.mubr.bf16.mxu0 %v6010_v63 }
 0x2ba   : > { %v4105_v36 = vpop.f32.mrf.mxu1  ;;  %4350 = vmatmul.mubr.bf16.vlgmr.msra.gmra.mxu1 %v6014_v27  ;;  %v4066_v41 = vpop.f32.mrf.mxu0  ;;  %4360 = vmatprep.subr.bf16.mxu0 %v5284_v28  ;;  %v5252_v28 = vcombine.high %v1092_v19, %v1096_v20 }
 0x2bb   : > { %4400 = vmatpush1.bf16.msra.mxu1 %v5419_v15  ;;  %v6311_v49 = vadd.f32 %v4105_v36, %v4065_v23  ;;  %v4067_v50 = vadd.f32 %v4066_v41, %v6243_v35  ;;  %4431 = vmatprep.mubr.bf16.mxu1 %v6023_v7  ;;  %v5387_v15 = vcombine.low %v1228_v48, %v1232_v13  ;;  %v1216_v23 = vld [vmem:[%s5821_s12 + $0xc70] sm:$0xff] }
 0x2bc   : > { %v4107_v8 = vpop.f32.mrf.mxu1  ;;  %4401 = vmatprep.subr.bf16.mxu1 %v5412_v29  ;;  %v4068_v42 = vpop.f32.mrf.mxu0  ;;  %v5380_v29 = vcombine.high %v1220_v22, %v1224_v24  ;;  %v5251_v36 = vcombine.low %v1092_v19, %v1096_v20 }
 0x2bd   : > { %v4605_v60 = vsel %vm4604_vm2, %v6311_v49, 0.0  ;;  %v6322_v61 = vadd.f32 %v4107_v8, %v4067_v50  ;;  %4361 = vmatpush1.bf16.msra.mxu0 %v5283_v37  ;;  %v5372_v50 = vcombine.high %v1212_v33, %v1216_v23  ;;  %v1076_v8 = vld [vmem:[%s5821_s12 + $0x810] sm:$0xff] }
 0x2be   : > { %v4109_v35 = vpop.f32.mrf.mxu1  ;;  %v4606_v51 = vrot.slane %v4605_v60, 4  ;;  %v4069_v0 = vpop.f32.mrf.mxu0  ;;  %4362 = vmatprep.subr.bf16.mxu0 %v5276_v47  ;;  %v5244_v47 = vcombine.high %v1084_v30, %v1088_v56  ;;  %v1204_v42 = vld [vmem:[%s5821_s12 + $0xc10] sm:$0xff] }
 0x2bf   : > { %4402 = vmatpush1.bf16.msra.mxu1 %v5411_v44  ;;  %v4612_v3 = vsel %vm4604_vm2, %v6322_v61, 0.0  ;;  %v5379_v44 = vcombine.low %v1220_v22, %v1224_v24  ;;  %v1196_v0 = vld [vmem:[%s5821_s12 + $0xbd0] sm:$0xff] }
 0x2c0   : > { %v4110_v4 = vpop.f32.mrf.mxu1  ;;  %4403 = vmatprep.subr.bf16.mxu1 %v5404_v54  ;;  %v4607_v11 = vadd.f32 %v4606_v51, %v4605_v60  ;;  %v4613_v12 = vrot.slane %v4612_v3, 4  ;;  %v1080_v54 = vld [vmem:[%s5821_s12 + $0x830] sm:$0xff]  ;;  %v5371_v60 = vcombine.low %v1212_v33, %v1216_v23 }
 0x2c1   : > { %4363 = vmatpush1.bf16.msra.mxu0 %v5275_v62  ;;  %v5236_v51 = vcombine.high %v1076_v8, %v1080_v54  ;;  %v1324_v4 = vld [vmem:[%s5821_s12 + $0xfd0] sm:$0xff]  ;;  %v5235_v6 = vcombine.low %v1076_v8, %v1080_v54 }
 0x2c2   : > { %v4608_v14 = vrot.slane %v4607_v11, 2  ;;  %v4614_v16 = vadd.f32 %v4613_v12, %v4612_v3  ;;  %4364 = vmatprep.subr.bf16.mxu0 %v5268_v2 }
 0x2c3   : > { %4404 = vmatpush1.bf16.msra.mxu1 %v5403_v1  ;;  %v1200_v1 = vld [vmem:[%s5821_s12 + $0xbf0] sm:$0xff] }
 0x2c4   : > { %4405 = vmatprep.subr.bf16.mxu1 %v5396_v5  ;;  %v4609_v21 = vadd.f32 %v4608_v14, %v4607_v11  ;;  %v4615_v39 = vrot.slane %v4614_v16, 2  ;;  %v1328_v5 = vld [vmem:[%s5821_s12 + $0xff0] sm:$0xff]  ;;  %v5363_v11 = vcombine.low %v1204_v42, %v1208_v59  ;;  %v5356_v12 = vcombine.high %v1196_v0, %v1200_v1 }
 0x2c5   : > { %4365 = vmatpush1.bf16.msra.mxu0 %v5267_v53  ;;  %v5484_v53 = vcombine.high %v1324_v4, %v1328_v5  ;;  %v1188_v14 = vld [vmem:[%s5821_s12 + $0xb90] sm:$0xff]  ;;  %v5355_v20 = vcombine.low %v1196_v0, %v1200_v1 }
 0x2c6   : > { %v4610_v26 = vrot.slane %v4609_v21, 1  ;;  %v4616_v45 = vadd.f32 %v4615_v39, %v4614_v16  ;;  %4366 = vmatprep.subr.bf16.mxu0 %v5260_v52  ;;  %v1192_v16 = vld [vmem:[%s5821_s12 + $0xbb0] sm:$0xff] }
 0x2c7   : > { %4406 = vmatpush1.bf16.msra.mxu1 %v5395_v43  ;;  %v1316_v43 = vld [vmem:[%s5821_s12 + $0xf90] sm:$0xff]  ;;  %v5348_v39 = vcombine.high %v1188_v14, %v1192_v16  ;;  %v5347_v56 = vcombine.low %v1188_v14, %v1192_v16 }
 0x2c8   : > { %4407 = vmatprep.subr.bf16.mxu1 %v5388_v17  ;;  %v4611_v31 = vadd.f32 %v4610_v26, %v4609_v21  ;;  %v4617_v32 = vrot.slane %v4616_v45, 1  ;;  %v1320_v52 = vld [vmem:[%s5821_s12 + $0xfb0] sm:$0xff]  ;;  %v5483_v21 = vcombine.low %v1324_v4, %v1328_v5 }
 0x2c9   : > { %4367 = vmatpush1.bf16.msra.mxu0 %v5259_v25  ;;  %v5476_v25 = vcombine.high %v1316_v43, %v1320_v52  ;;  %v1180_v26 = vld [vmem:[%s5821_s12 + $0xb50] sm:$0xff] }
 0x2ca   : > { %v4662_v37 = vmul.f32 0.5, %v4611_v31  ;;  %v4618_v41 = vadd.f32 %v4617_v32, %v4616_v45  ;;  %4368 = vmatprep.subr.bf16.mxu0 %v5252_v28  ;;  %v1184_v45 = vld [vmem:[%s5821_s12 + $0xb70] sm:$0xff]  ;;  %v5475_v31 = vcombine.low %v1316_v43, %v1320_v52 }
 0x2cb   : > { %4408 = vmatpush1.bf16.msra.mxu1 %v5387_v15  ;;  %v1308_v15 = vld [vmem:[%s5821_s12 + $0xf50] sm:$0xff]  ;;  %v5340_v32 = vcombine.high %v1180_v26, %v1184_v45  ;;  %v5339_v54 = vcombine.low %v1180_v26, %v1184_v45 }
 0x2cc   : > { %4409 = vmatprep.subr.bf16.mxu1 %v5380_v29  ;;  %v6341_v55 = vsub.f32 %v6311_v49, %v4662_v37  ;;  %v4663_v58 = vmul.f32 0.5, %v4618_v41  ;;  %v5364_v49 = vcombine.high %v1204_v42, %v1208_v59  ;;  %v1312_v28 = vld [vmem:[%s5821_s12 + $0xf70] sm:$0xff] }
 0x2cd   : > { %4369 = vmatpush1.bf16.msra.mxu0 %v5251_v36  ;;  %v5468_v36 = vcombine.high %v1308_v15, %v1312_v28  ;;  %v1172_v37 = vld [vmem:[%s5821_s12 + $0xb10] sm:$0xff] }
 0x2ce   : > { %v4678_v35 = vmul.f32 %v6341_v55, %v6341_v55  ;;  %v6348_v62 = vsub.f32 %v6322_v61, %v4663_v58  ;;  %4370 = vmatprep.subr.bf16.mxu0 %v5244_v47  ;;  %v1176_v41 = vld [vmem:[%s5821_s12 + $0xb30] sm:$0xff]  ;;  %v5467_v58 = vcombine.low %v1308_v15, %v1312_v28 }
 0x2cf   : > { %4410 = vmatpush1.bf16.msra.mxu1 %v5379_v44  ;;  %v1300_v44 = vld [vmem:[%s5821_s12 + $0xf10] sm:$0xff]  ;;  %v5332_v42 = vcombine.high %v1172_v37, %v1176_v41 }
 0x2d0   : > { %4411 = vmatprep.subr.bf16.mxu1 %v5372_v50  ;;  %v4686_v2 = vsel %vm4604_vm2, %v4678_v35, 0.0  ;;  %v4679_v3 = vmul.f32 %v6348_v62, %v6348_v62  ;;  %v1304_v47 = vld [vmem:[%s5821_s12 + $0xf30] sm:$0xff] }
 0x2d1   : > { %v4687_v61 = vrot.slane %v4686_v2, 4  ;;  %4371 = vmatpush1.bf16.msra.mxu0 %v5243_v46  ;;  %v1164_v35 = vld [vmem:[%s5821_s12 + $0xad0] sm:$0xff] }
 0x2d2   : > { %v4693_v10 = vsel %vm4604_vm2, %v4679_v3, 0.0  ;;  %4372 = vmatprep.subr.bf16.mxu0 %v5236_v51  ;;  %v1168_v51 = vld [vmem:[%s5821_s12 + $0xaf0] sm:$0xff]  ;;  %v5459_v3 = vcombine.low %v1300_v44, %v1304_v47 }
 0x2d3   : > { %4412 = vmatpush1.bf16.msra.mxu1 %v5371_v60  ;;  %v4688_v48 = vadd.f32 %v4687_v61, %v4686_v2  ;;  %v4694_v13 = vrot.slane %v4693_v10, 4  ;;  %v5460_v60 = vcombine.high %v1300_v44, %v1304_v47  ;;  %v1296_v0 = vld [vmem:[%s5821_s12 + $0xef0] sm:$0xff]  ;;  %v5331_v2 = vcombine.low %v1172_v37, %v1176_v41 }
 0x2d4   : > { %4413 = vmatprep.subr.bf16.mxu1 %v5364_v49  ;;  %v1292_v49 = vld [vmem:[%s5821_s12 + $0xed0] sm:$0xff]  ;;  %v5324_v4 = vcombine.high %v1164_v35, %v1168_v51 }
 0x2d5   : > { %v4689_v17 = vrot.slane %v4688_v48, 2  ;;  %v4695_v19 = vadd.f32 %v4694_v13, %v4693_v10  ;;  %4373 = vmatpush1.bf16.msra.mxu0 %v5235_v6  ;;  %v5452_v5 = vcombine.high %v1292_v49, %v1296_v0  ;;  %v1156_v61 = vld [vmem:[%s5821_s12 + $0xa90] sm:$0xff] }
 0x2d6   : > { %4374 = vmatprep.subr.bf16.mxu0 %v5356_v12  ;;  %v1160_v6 = vld [vmem:[%s5821_s12 + $0xab0] sm:$0xff]  ;;  %v5323_v12 = vcombine.low %v1164_v35, %v1168_v51  ;;  %v861_v51 = vld [vmem:[%s5821_s12 + $0x158] sm:$0xff] }
 0x2d7   : > { %4414 = vmatpush1.bf16.msra.mxu1 %v5363_v11  ;;  %v4690_v22 = vadd.f32 %v4689_v17, %v4688_v48  ;;  %v4696_v24 = vrot.slane %v4695_v19, 2  ;;  %v1284_v10 = vld [vmem:[%s5821_s12 + $0xe90] sm:$0xff]  ;;  %v5451_v48 = vcombine.low %v1292_v49, %v1296_v0  ;;  %v5316_v13 = vcombine.high %v1156_v61, %v1160_v6  ;;  %v865_v49 = vld [vmem:[%s5821_s12 + $0x178] sm:$0xff] }
 0x2d8   : > { %4415 = vmatprep.subr.bf16.mxu1 %v5484_v53  ;;  %v1288_v11 = vld [vmem:[%s5821_s12 + $0xeb0] sm:$0xff]  ;;  %v5315_v17 = vcombine.low %v1156_v61, %v1160_v6 }
 0x2d9   : > { %v4691_v29 = vrot.slane %v4690_v22, 1  ;;  %v4697_v30 = vadd.f32 %v4696_v24, %v4695_v19  ;;  %4375 = vmatpush2.bf16.msra.mxu0 %v5355_v20  ;;  %v5444_v53 = vcombine.high %v1284_v10, %v1288_v11  ;;  %v1148_v14 = vld [vmem:[%s5821_s12 + $0xa50] sm:$0xff]  ;;  %v5443_v19 = vcombine.low %v1284_v10, %v1288_v11 }
 0x2da   : > { %4376 = vmatprep.subr.bf16.mxu0 %v5348_v39  ;;  %v1152_v16 = vld [vmem:[%s5821_s12 + $0xa70] sm:$0xff]  ;;  %v5022_v10 = vcombine.high %v861_v51, %v865_v49 }
 0x2db   : > { %4416 = vmatpush2.bf16.msra.mxu1 %v5483_v21  ;;  %v4692_v33 = vadd.f32 %v4691_v29, %v4690_v22  ;;  %v4698_v23 = vrot.slane %v4697_v30, 1  ;;  %v1276_v43 = vld [vmem:[%s5821_s12 + $0xe50] sm:$0xff]  ;;  %v5308_v20 = vcombine.high %v1148_v14, %v1152_v16  ;;  %v5307_v26 = vcombine.low %v1148_v14, %v1152_v16  ;;  %v981_v16 = vld [vmem:[%s5821_s12 + $0x518] sm:$0xff] }
 0x2dc   : > { %4417 = vmatprep.subr.bf16.mxu1 %v5476_v25  ;;  %v1280_v52 = vld [vmem:[%s5821_s12 + $0xe70] sm:$0xff] }
 0x2dd   : > { %v4742_v50 = vmul.f32 0.5, %v4692_v33  ;;  %v4699_v8 = vadd.f32 %v4698_v23, %v4697_v30  ;;  %4377 = vmatpush2.bf16.msra.mxu0 %v5347_v56  ;;  %v5436_v21 = vcombine.high %v1276_v43, %v1280_v52  ;;  %v1140_v39 = vld [vmem:[%s5821_s12 + $0xa10] sm:$0xff]  ;;  %v5435_v15 = vcombine.low %v1276_v43, %v1280_v52  ;;  %v877_v56 = vld [vmem:[%s5821_s12 + $0x1d8] sm:$0xff] }
 0x2de   : > { %4378 = vmatprep.subr.bf16.mxu0 %v5340_v32  ;;  %v1144_v22 = vld [vmem:[%s5821_s12 + $0xa30] sm:$0xff]  ;;  %v1005_v33 = vld [vmem:[%s5821_s12 + $0x5d8] sm:$0xff] }
 0x2df   : > { %4418 = vmatpush2.bf16.msra.mxu1 %v5475_v31  ;;  %v4750_v59 = vadd.f32 1e-05, %v4742_v50  ;;  %v4743_v46 = vmul.f32 0.5, %v4699_v8  ;;  %v1268_v24 = vld [vmem:[%s5821_s12 + $0xe10] sm:$0xff]  ;;  %v5300_v28 = vcombine.high %v1140_v39, %v1144_v22  ;;  %v881_v31 = vld [vmem:[%s5821_s12 + $0x1f8] sm:$0xff]  ;;  %v5299_v37 = vcombine.low %v1140_v39, %v1144_v22 }
 0x2e0   : > { %4419 = vmatprep.subr.bf16.mxu1 %v5468_v36  ;;  %v1272_v25 = vld [vmem:[%s5821_s12 + $0xe30] sm:$0xff]  ;;  %v1009_v23 = vld [vmem:[%s5821_s12 + $0x5f8] sm:$0xff]  ;;  %v5038_v44 = vcombine.high %v877_v56, %v881_v31 }
 0x2e1   : > { %5567 = vrsqrt.f32 %v4750_v59  ;;  %v4751_v1 = vadd.f32 1e-05, %v4743_v46  ;;  %4379 = vmatpush2.bf16.msra.mxu0 %v5339_v54  ;;  %v5428_v30 = vcombine.high %v1268_v24, %v1272_v25  ;;  %v5427_v41 = vcombine.low %v1268_v24, %v1272_v25  ;;  %v869_v8 = vld [vmem:[%s5821_s12 + $0x198] sm:$0xff] }
 0x2e2   : > { %4380 = vmatprep.subr.bf16.mxu0 %v5332_v42  ;;  %v5166_v50 = vcombine.high %v1005_v33, %v1009_v23  ;;  %v873_v54 = vld [vmem:[%s5821_s12 + $0x1b8] sm:$0xff]  ;;  %v5165_v46 = vcombine.low %v1005_v33, %v1009_v23 }
 0x2e3   : > { %4420 = vmatpush2.bf16.msra.mxu1 %v5467_v58  ;;  %5569 = vrsqrt.f32 %v4751_v1  ;;  %v997_v58 = vld [vmem:[%s5821_s12 + $0x598] sm:$0xff] }
 0x2e4   : > { %4421 = vmatprep.subr.bf16.mxu1 %v5460_v60  ;;  %v1001_v42 = vld [vmem:[%s5821_s12 + $0x5b8] sm:$0xff]  ;;  %v5030_v60 = vcombine.high %v869_v8, %v873_v54 }
 0x2e5   : > { %4381 = vmatpush2.bf16.msra.mxu0 %v5331_v2  ;;  %v5158_v35 = vcombine.high %v997_v58, %v1001_v42  ;;  %v989_v1 = vld [vmem:[%s5821_s12 + $0x558] sm:$0xff]  ;;  %v5157_v6 = vcombine.low %v997_v58, %v1001_v42 }
 0x2e6   : > { %4382 = vmatprep.subr.bf16.mxu0 %v5324_v4  ;;  %v993_v2 = vld [vmem:[%s5821_s12 + $0x578] sm:$0xff]  ;;  %v5029_v4 = vcombine.low %v869_v8, %v873_v54 }
 0x2e7   : > { %4422 = vmatpush2.bf16.msra.mxu1 %v5459_v3  ;;  %v985_v43 = vld [vmem:[%s5821_s12 + $0x538] sm:$0xff] }
 0x2e8   : > { %4423 = vmatprep.subr.bf16.mxu1 %v5452_v5  ;;  %v5142_v39 = vcombine.high %v981_v16, %v985_v43  ;;  %v845_v22 = vld [vmem:[%s5821_s12 + $0xd8] sm:$0xff] }
 0x2e9   : > { %4383 = vmatpush2.bf16.msra.mxu0 %v5323_v12  ;;  %v5150_v12 = vcombine.high %v989_v1, %v993_v2  ;;  %v849_v24 = vld [vmem:[%s5821_s12 + $0xf8] sm:$0xff] }
 0x2ea   : > { %4384 = vmatprep.subr.bf16.mxu0 %v5316_v13  ;;  %v857_v13 = vld [vmem:[%s5821_s12 + $0x138] sm:$0xff] }
 0x2eb   : > { %4424 = vmatpush2.bf16.msra.mxu1 %v5451_v48  ;;  %v853_v48 = vld [vmem:[%s5821_s12 + $0x118] sm:$0xff] }
 0x2ec   : > { %4425 = vmatprep.subr.bf16.mxu1 %v5444_v53  ;;  %v973_v25 = vld [vmem:[%s5821_s12 + $0x4d8] sm:$0xff] }
 0x2ed   : > { %4385 = vmatpush2.bf16.msra.mxu0 %v5315_v17  ;;  %v5021_v17 = vcombine.low %v861_v51, %v865_v49  ;;  %v821_v58 = vld [vmem:[%s5821_s12 + $0x18] sm:$0xff] }
 0x2ee   : > { %v5568_v45 = vpop.eup %5567  ;;  %4386 = vmatprep.subr.bf16.mxu0 %v5308_v20  ;;  %v5149_v20 = vcombine.low %v989_v1, %v993_v2  ;;  %v825_v42 = vld [vmem:[%s5821_s12 + $0x38] sm:$0xff] }
 0x2ef   : > { %4426 = vmatpush2.bf16.msra.mxu1 %v5443_v19  ;;  %v4766_v29 = vmul.f32 %v5568_v45, %v6341_v55  ;;  %v5141_v45 = vcombine.low %v981_v16, %v985_v43  ;;  %v4982_v51 = vcombine.high %v821_v58, %v825_v42  ;;  %v945_v1 = vld [vmem:[%s5821_s12 + $0x3f8] sm:$0xff] }
 0x2f0   : > { %4427 = vmatprep.subr.bf16.mxu1 %v5436_v21  ;;  %v5570_v32 = vpop.eup %5569  ;;  %v5014_v21 = vcombine.high %v853_v48, %v857_v13  ;;  %v1069_v2 = vld [vmem:[%s5821_s12 + $0x7d8] sm:$0xff] }
 0x2f1   : > { %v4767_v36 = vmul.f32 %v5570_v32, %v6348_v62  ;;  %4387 = vmatpush2.bf16.msra.mxu0 %v5307_v26  ;;  %v4774_v55 = vmax.f32 %v4766_v29, 0.0  ;;  %v5037_v62 = vcombine.low %v877_v56, %v881_v31  ;;  %v977_v26 = vld [vmem:[%s5821_s12 + $0x4f8] sm:$0xff]  ;;  %v5005_v32 = vcombine.low %v845_v22, %v849_v24 }
 0x2f2   : > { %4388 = vmatprep.subr.bf16.mxu0 %v5300_v28  ;;  %v5134_v28 = vcombine.high %v973_v25, %v977_v26  ;;  %v837_v29 = vld [vmem:[%s5821_s12 + $0x98] sm:$0xff]  ;;  %v5133_v33 = vcombine.low %v973_v25, %v977_v26 }
 0x2f3   : > { %4428 = vmatpush2.bf16.msra.mxu1 %v5435_v15  ;;  %v4775_v47 = vmax.f32 %v4767_v36, 0.0  ;;  %v5006_v15 = vcombine.high %v845_v22, %v849_v24  ;;  %v965_v56 = vld [vmem:[%s5821_s12 + $0x498] sm:$0xff] }
 0x2f4   : > { %4429 = vmatprep.subr.bf16.mxu1 %v5428_v30  ;;  %v841_v30 = vld [vmem:[%s5821_s12 + $0xb8] sm:$0xff] }
 0x2f5   : > { %v6396_v59 = vpack.c.bf16 %v4775_v47, %v4774_v55  ;;  %4389 = vmatpush2.bf16.msra.mxu0 %v5299_v37  ;;  %v969_v31 = vld [vmem:[%s5821_s12 + $0x4b8] sm:$0xff]  ;;  %v4998_v23 = vcombine.high %v837_v29, %v841_v30  ;;  %v4997_v47 = vcombine.low %v837_v29, %v841_v30 }
 0x2f6   : > { %4440 = vmatprep.subr.bf16.mxu0 %v5038_v44  ;;  %v5126_v36 = vcombine.high %v965_v56, %v969_v31  ;;  %v829_v37 = vld [vmem:[%s5821_s12 + $0x58] sm:$0xff] }
 0x2f7   : > { %4430 = vmatpush2.bf16.msra.mxu1 %v5427_v41  ;;  %v833_v41 = vld [vmem:[%s5821_s12 + $0x78] sm:$0xff] }
 0x2f8   : > { %4481 = vmatprep.subr.bf16.mxu1 %v5166_v50  ;;  %v4146_v0 = vpop.f32.mrf.mxu0  ;;  %4391 = vmatmul.mubr.bf16.vlgmr.msra.gmra.mxu0 %v6086_v9  ;;  %v957_v44 = vld [vmem:[%s5821_s12 + $0x458] sm:$0xff]  ;;  %v5125_v50 = vcombine.low %v965_v56, %v969_v31  ;;  %v4990_v8 = vcombine.high %v829_v37, %v833_v41 }
 0x2f9   : > { %4441 = vmatpush1.bf16.msra.mxu0 %v5037_v62  ;;  %4472 = vmatprep.mubr.bf16.mxu0 %v5952_v34  ;;  %v961_v55 = vld [vmem:[%s5821_s12 + $0x478] sm:$0xff] }
 0x2fa   : > { %v4187_v3 = vpop.f32.mrf.mxu1  ;;  %4432 = vmatmul.mubr.bf16.vlgmr.msra.gmra.mxu1 %v6094_v40  ;;  %v4148_v61 = vpop.f32.mrf.mxu0  ;;  %4442 = vmatprep.subr.bf16.mxu0 %v5030_v60  ;;  %v5118_v54 = vcombine.high %v957_v44, %v961_v55  ;;  %v949_v62 = vld [vmem:[%s5821_s12 + $0x418] sm:$0xff]  ;;  %v4989_v60 = vcombine.low %v829_v37, %v833_v41 }
 0x2fb   : > { %v6404_v5 = vadd.f32 %v4187_v3, %v4146_v0  ;;  %4482 = vmatpush1.bf16.msra.mxu1 %v5165_v46  ;;  %4513 = vmatprep.mubr.bf16.mxu1 %v5959_v38  ;;  %v5013_v38 = vcombine.low %v853_v48, %v857_v13  ;;  %v953_v46 = vld [vmem:[%s5821_s12 + $0x438] sm:$0xff] }
 0x2fc   : > { %v4189_v11 = vpop.f32.mrf.mxu1  ;;  %4483 = vmatprep.subr.bf16.mxu1 %v5158_v35  ;;  %v4150_v14 = vpop.f32.mrf.mxu0  ;;  %v5117_v35 = vcombine.low %v957_v44, %v961_v55  ;;  %v5110_v49 = vcombine.high %v949_v62, %v953_v46  ;;  %v941_v0 = vld [vmem:[%s5821_s12 + $0x3d8] sm:$0xff] }
 0x2fd   : > { %v6409_v53 = vadd.f32 %v4189_v11, %v4148_v61  ;;  %4443 = vmatpush1.bf16.msra.mxu0 %v5029_v4  ;;  %v1073_v3 = vld [vmem:[%s5821_s12 + $0x7f8] sm:$0xff]  ;;  %v4981_v4 = vcombine.low %v821_v58, %v825_v42  ;;  %v5109_v61 = vcombine.low %v949_v62, %v953_v46  ;;  %v5101_v14 = vcombine.low %v941_v0, %v945_v1 }
 0x2fe   : > { %v4191_v52 = vpop.f32.mrf.mxu1  ;;  %v4151_v19 = vpop.f32.mrf.mxu0  ;;  %4444 = vmatprep.subr.bf16.mxu0 %v5022_v10  ;;  %v5230_v10 = vcombine.high %v1069_v2, %v1073_v3  ;;  %v933_v11 = vld [vmem:[%s5821_s12 + $0x398] sm:$0xff]  ;;  %v5229_v16 = vcombine.low %v1069_v2, %v1073_v3 }
 0x2ff   : > { %4484 = vmatpush1.bf16.msra.mxu1 %v5157_v6  ;;  %v5102_v6 = vcombine.high %v941_v0, %v945_v1  ;;  %v1061_v48 = vld [vmem:[%s5821_s12 + $0x798] sm:$0xff] }
 0x300   : > { %v4192_v34 = vpop.f32.mrf.mxu1  ;;  %4485 = vmatprep.subr.bf16.mxu1 %v5150_v12  ;;  %v937_v12 = vld [vmem:[%s5821_s12 + $0x3b8] sm:$0xff] }
 0x301   : > { %4445 = vmatpush1.bf16.msra.mxu0 %v5021_v17  ;;  %v1065_v13 = vld [vmem:[%s5821_s12 + $0x7b8] sm:$0xff]  ;;  %v5094_v43 = vcombine.high %v933_v11, %v937_v12  ;;  %v5093_v34 = vcombine.low %v933_v11, %v937_v12 }
 0x302   : > { %4446 = vmatprep.subr.bf16.mxu0 %v5014_v21  ;;  %v5222_v52 = vcombine.high %v1061_v48, %v1065_v13  ;;  %v925_v17 = vld [vmem:[%s5821_s12 + $0x358] sm:$0xff] }
 0x303   : > { %4486 = vmatpush1.bf16.msra.mxu1 %v5149_v20  ;;  %v929_v19 = vld [vmem:[%s5821_s12 + $0x378] sm:$0xff] }
 0x304   : > { %4487 = vmatprep.subr.bf16.mxu1 %v5142_v39  ;;  %v1053_v20 = vld [vmem:[%s5821_s12 + $0x758] sm:$0xff]  ;;  %v5221_v39 = vcombine.low %v1061_v48, %v1065_v13  ;;  %v5086_v22 = vcombine.high %v925_v17, %v929_v19 }
 0x305   : > { %4447 = vmatpush1.bf16.msra.mxu0 %v5013_v38  ;;  %v1057_v21 = vld [vmem:[%s5821_s12 + $0x778] sm:$0xff] }
 0x306   : > { %4448 = vmatprep.subr.bf16.mxu0 %v5006_v15  ;;  %v5214_v24 = vcombine.high %v1053_v20, %v1057_v21  ;;  %v917_v25 = vld [vmem:[%s5821_s12 + $0x318] sm:$0xff]  ;;  %v5085_v15 = vcombine.low %v925_v17, %v929_v19 }
 0x307   : > { %4488 = vmatpush1.bf16.msra.mxu1 %v5141_v45  ;;  %v921_v26 = vld [vmem:[%s5821_s12 + $0x338] sm:$0xff] }
 0x308   : > { %4489 = vmatprep.subr.bf16.mxu1 %v5134_v28  ;;  %v1045_v38 = vld [vmem:[%s5821_s12 + $0x718] sm:$0xff]  ;;  %v5213_v28 = vcombine.low %v1053_v20, %v1057_v21  ;;  %v5078_v29 = vcombine.high %v917_v25, %v921_v26 }
 0x309   : > { %4449 = vmatpush1.bf16.msra.mxu0 %v5005_v32  ;;  %v1049_v45 = vld [vmem:[%s5821_s12 + $0x738] sm:$0xff] }
 0x30a   : > { %4450 = vmatprep.subr.bf16.mxu0 %v4998_v23  ;;  %v5206_v30 = vcombine.high %v1045_v38, %v1049_v45  ;;  %v909_v56 = vld [vmem:[%s5821_s12 + $0x2d8] sm:$0xff]  ;;  %v5077_v23 = vcombine.low %v917_v25, %v921_v26 }
 0x30b   : > { %4490 = vmatpush1.bf16.msra.mxu1 %v5133_v33  ;;  %v913_v31 = vld [vmem:[%s5821_s12 + $0x2f8] sm:$0xff] }
 0x30c   : > { %4491 = vmatprep.subr.bf16.mxu1 %v5126_v36  ;;  %v1037_v32 = vld [vmem:[%s5821_s12 + $0x6d8] sm:$0xff]  ;;  %v5205_v36 = vcombine.low %v1045_v38, %v1049_v45  ;;  %v5070_v37 = vcombine.high %v909_v56, %v913_v31 }
 0x30d   : > { %4451 = vmatpush1.bf16.msra.mxu0 %v4997_v47  ;;  %v1041_v33 = vld [vmem:[%s5821_s12 + $0x6f8] sm:$0xff] }
 0x30e   : > { %4452 = vmatprep.subr.bf16.mxu0 %v4990_v8  ;;  %v5198_v41 = vcombine.high %v1037_v32, %v1041_v33  ;;  %v901_v44 = vld [vmem:[%s5821_s12 + $0x298] sm:$0xff]  ;;  %v5069_v8 = vcombine.low %v909_v56, %v913_v31 }
 0x30f   : > { %4492 = vmatpush1.bf16.msra.mxu1 %v5125_v50  ;;  %v905_v55 = vld [vmem:[%s5821_s12 + $0x2b8] sm:$0xff] }
 0x310   : > { %4493 = vmatprep.subr.bf16.mxu1 %v5118_v54  ;;  %v1029_v47 = vld [vmem:[%s5821_s12 + $0x698] sm:$0xff]  ;;  %v5197_v54 = vcombine.low %v1037_v32, %v1041_v33  ;;  %v5062_v58 = vcombine.high %v901_v44, %v905_v55 }
 0x311   : > { %4453 = vmatpush1.bf16.msra.mxu0 %v4989_v60  ;;  %v1033_v50 = vld [vmem:[%s5821_s12 + $0x6b8] sm:$0xff] }
 0x312   : > { %4454 = vmatprep.subr.bf16.mxu0 %v4982_v51  ;;  %v5190_v42 = vcombine.high %v1029_v47, %v1033_v50  ;;  %v893_v62 = vld [vmem:[%s5821_s12 + $0x258] sm:$0xff]  ;;  %v5061_v51 = vcombine.low %v901_v44, %v905_v55 }
 0x313   : > { %4494 = vmatpush1.bf16.msra.mxu1 %v5117_v35  ;;  %v897_v46 = vld [vmem:[%s5821_s12 + $0x278] sm:$0xff] }
 0x314   : > { %4495 = vmatprep.subr.bf16.mxu1 %v5110_v49  ;;  %v1021_v60 = vld [vmem:[%s5821_s12 + $0x658] sm:$0xff]  ;;  %v5189_v49 = vcombine.low %v1029_v47, %v1033_v50  ;;  %v5054_v0 = vcombine.high %v893_v62, %v897_v46 }
 0x315   : > { %4455 = vmatpush1.bf16.msra.mxu0 %v4981_v4  ;;  %v1025_v35 = vld [vmem:[%s5821_s12 + $0x678] sm:$0xff] }
 0x316   : > { %4456 = vmatprep.subr.bf16.mxu0 %v5102_v6  ;;  %v5182_v1 = vcombine.high %v1021_v60, %v1025_v35  ;;  %v885_v2 = vld [vmem:[%s5821_s12 + $0x218] sm:$0xff]  ;;  %v5053_v6 = vcombine.low %v893_v62, %v897_v46 }
 0x317   : > { %4496 = vmatpush1.bf16.msra.mxu1 %v5109_v61  ;;  %v889_v3 = vld [vmem:[%s5821_s12 + $0x238] sm:$0xff] }
 0x318   : > { %4497 = vmatprep.subr.bf16.mxu1 %v5230_v10  ;;  %v1013_v4 = vld [vmem:[%s5821_s12 + $0x618] sm:$0xff]  ;;  %v5181_v10 = vcombine.low %v1021_v60, %v1025_v35  ;;  %v5046_v11 = vcombine.high %v885_v2, %v889_v3 }
 0x319   : > { %4457 = vmatpush2.bf16.msra.mxu0 %v5101_v14  ;;  %v1017_v61 = vld [vmem:[%s5821_s12 + $0x638] sm:$0xff] }
 0x31a   : > { %4458 = vmatprep.subr.bf16.mxu0 %v5094_v43  ;;  %v5174_v12 = vcombine.high %v1013_v4, %v1017_v61  ;;  %v1133_v48 = vld [vmem:[%s5821_s12 + $0x9d8] sm:$0xff]  ;;  %v5045_v43 = vcombine.low %v885_v2, %v889_v3 }
 0x31b   : > { %4498 = vmatpush2.bf16.msra.mxu1 %v5229_v16  ;;  %v1137_v13 = vld [vmem:[%s5821_s12 + $0x9f8] sm:$0xff] }
 0x31c   : > { %4499 = vmatprep.subr.bf16.mxu1 %v5222_v52  ;;  %v1261_v14 = vld [vmem:[%s5821_s12 + $0xdd8] sm:$0xff]  ;;  %v5173_v52 = vcombine.low %v1013_v4, %v1017_v61  ;;  %v5294_v17 = vcombine.high %v1133_v48, %v1137_v13 }
 0x31d   : > { %4459 = vmatpush2.bf16.msra.mxu0 %v5093_v34  ;;  %v1265_v16 = vld [vmem:[%s5821_s12 + $0xdf8] sm:$0xff] }
 0x31e   : > { %4460 = vmatprep.subr.bf16.mxu0 %v5086_v22  ;;  %v5422_v19 = vcombine.high %v1261_v14, %v1265_v16  ;;  %v1125_v20 = vld [vmem:[%s5821_s12 + $0x998] sm:$0xff]  ;;  %v5293_v22 = vcombine.low %v1133_v48, %v1137_v13 }
 0x31f   : > { %4500 = vmatpush2.bf16.msra.mxu1 %v5221_v39  ;;  %v1129_v21 = vld [vmem:[%s5821_s12 + $0x9b8] sm:$0xff] }
 0x320   : > { %4501 = vmatprep.subr.bf16.mxu1 %v5214_v24  ;;  %v1253_v34 = vld [vmem:[%s5821_s12 + $0xd98] sm:$0xff]  ;;  %v5421_v24 = vcombine.low %v1261_v14, %v1265_v16  ;;  %v5286_v25 = vcombine.high %v1125_v20, %v1129_v21  ;;  %v5285_v31 = vcombine.low %v1125_v20, %v1129_v21 }
 0x321   : > { %4461 = vmatpush2.bf16.msra.mxu0 %v5085_v15  ;;  %v1257_v39 = vld [vmem:[%s5821_s12 + $0xdb8] sm:$0xff] }
 0x322   : > { %4462 = vmatprep.subr.bf16.mxu0 %v5078_v29  ;;  %v5414_v26 = vcombine.high %v1253_v34, %v1257_v39  ;;  %v1117_v38 = vld [vmem:[%s5821_s12 + $0x958] sm:$0xff]  ;;  %v5413_v33 = vcombine.low %v1253_v34, %v1257_v39 }
 0x323   : > { %4502 = vmatpush2.bf16.msra.mxu1 %v5213_v28  ;;  %v1121_v45 = vld [vmem:[%s5821_s12 + $0x978] sm:$0xff] }
 0x324   : > { %4503 = vmatprep.subr.bf16.mxu1 %v5206_v30  ;;  %v1245_v28 = vld [vmem:[%s5821_s12 + $0xd58] sm:$0xff] }
 0x325   : > { %4463 = vmatpush2.bf16.msra.mxu0 %v5077_v23  ;;  %v1249_v29 = vld [vmem:[%s5821_s12 + $0xd78] sm:$0xff]  ;;  %v5278_v23 = vcombine.high %v1117_v38, %v1121_v45 }
 0x326   : > { %4464 = vmatprep.subr.bf16.mxu0 %v5070_v37  ;;  %v1113_v44 = vld [vmem:[%s5821_s12 + $0x938] sm:$0xff] }
 0x327   : > { %4504 = vmatpush2.bf16.msra.mxu1 %v5205_v36  ;;  %v1237_v55 = vld [vmem:[%s5821_s12 + $0xd18] sm:$0xff] }
 0x328   : > { %4505 = vmatprep.subr.bf16.mxu1 %v5198_v41  ;;  %v1109_v41 = vld [vmem:[%s5821_s12 + $0x918] sm:$0xff] }
 0x329   : > { %4465 = vmatpush2.bf16.msra.mxu0 %v5069_v8  ;;  %v1241_v47 = vld [vmem:[%s5821_s12 + $0xd38] sm:$0xff]  ;;  %v5270_v62 = vcombine.high %v1109_v41, %v1113_v44  ;;  %v5269_v3 = vcombine.low %v1109_v41, %v1113_v44 }
 0x32a   : > { %4466 = vmatprep.subr.bf16.mxu0 %v5062_v58  ;;  %v5398_v60 = vcombine.high %v1237_v55, %v1241_v47  ;;  %v1101_v35 = vld [vmem:[%s5821_s12 + $0x8d8] sm:$0xff] }
 0x32b   : > { %4506 = vmatpush2.bf16.msra.mxu1 %v5197_v54  ;;  %v5277_v54 = vcombine.low %v1117_v38, %v1121_v45  ;;  %v1233_v2 = vld [vmem:[%s5821_s12 + $0xcf8] sm:$0xff] }
 0x32c   : > { %4507 = vmatprep.subr.bf16.mxu1 %v5190_v42  ;;  %v5405_v42 = vcombine.low %v1245_v28, %v1249_v29  ;;  %v1097_v48 = vld [vmem:[%s5821_s12 + $0x8b8] sm:$0xff] }
 0x32d   : > { %4467 = vmatpush2.bf16.msra.mxu0 %v5061_v51  ;;  %v1105_v51 = vld [vmem:[%s5821_s12 + $0x8f8] sm:$0xff] }
 0x32e   : > { %4468 = vmatprep.subr.bf16.mxu0 %v5054_v0  ;;  %v1221_v16 = vld [vmem:[%s5821_s12 + $0xc98] sm:$0xff] }
 0x32f   : > { %4508 = vmatpush2.bf16.msra.mxu1 %v5189_v49  ;;  %v1085_v39 = vld [vmem:[%s5821_s12 + $0x858] sm:$0xff] }
 0x330   : > { %4509 = vmatprep.subr.bf16.mxu1 %v5182_v1  ;;  %v1229_v1 = vld [vmem:[%s5821_s12 + $0xcd8] sm:$0xff] }
 0x331   : > { %4469 = vmatpush2.bf16.msra.mxu0 %v5053_v6  ;;  %v5397_v6 = vcombine.low %v1237_v55, %v1241_v47  ;;  %v5389_v20 = vcombine.low %v1229_v1, %v1233_v2  ;;  %v1217_v38 = vld [vmem:[%s5821_s12 + $0xc78] sm:$0xff] }
 0x332   : > { %4470 = vmatprep.subr.bf16.mxu0 %v5046_v11  ;;  %v5390_v11 = vcombine.high %v1229_v1, %v1233_v2  ;;  %v1197_v47 = vld [vmem:[%s5821_s12 + $0xbd8] sm:$0xff] }
 0x333   : > { %4510 = vmatpush2.bf16.msra.mxu1 %v5181_v10  ;;  %v5262_v10 = vcombine.high %v1101_v35, %v1105_v51  ;;  %v1317_v1 = vld [vmem:[%s5821_s12 + $0xf98] sm:$0xff] }
 0x334   : > { %4511 = vmatprep.subr.bf16.mxu1 %v5174_v12  ;;  %v1093_v12 = vld [vmem:[%s5821_s12 + $0x898] sm:$0xff] }
 0x335   : > { %4471 = vmatpush2.bf16.msra.mxu0 %v5045_v43  ;;  %v1225_v43 = vld [vmem:[%s5821_s12 + $0xcb8] sm:$0xff]  ;;  %v5254_v21 = vcombine.high %v1093_v12, %v1097_v48  ;;  %v5253_v45 = vcombine.low %v1093_v12, %v1097_v48 }
 0x336   : > { %4522 = vmatprep.subr.bf16.mxu0 %v5294_v17  ;;  %v5382_v34 = vcombine.high %v1221_v16, %v1225_v43  ;;  %v1321_v2 = vld [vmem:[%s5821_s12 + $0xfb8] sm:$0xff] }
 0x337   : > { %4512 = vmatpush2.bf16.msra.mxu1 %v5173_v52  ;;  %v5261_v52 = vcombine.low %v1101_v35, %v1105_v51  ;;  %v5478_v48 = vcombine.high %v1317_v1, %v1321_v2 }
 0x338   : > { %4563 = vmatprep.subr.bf16.mxu1 %v5422_v19  ;;  %v4228_v15 = vpop.f32.mrf.mxu0  ;;  %4473 = vmatmul.mubr.bf16.vlgmr.msra.gmra.mxu0 %v6003_v57 }
 0x339   : > { %v4229_v30 = vadd.f32 %v4228_v15, %v6404_v5  ;;  %4523 = vmatpush1.bf16.msra.mxu0 %v5293_v22  ;;  %v5406_v5 = vcombine.high %v1245_v28, %v1249_v29  ;;  %4554 = vmatprep.mubr.bf16.mxu0 %v6010_v63  ;;  %v1089_v22 = vld [vmem:[%s5821_s12 + $0x878] sm:$0xff]  ;;  %v5381_v29 = vcombine.low %v1221_v16, %v1225_v43 }
 0x33a   : > { %v4269_v56 = vpop.f32.mrf.mxu1  ;;  %4514 = vmatmul.mubr.bf16.vlgmr.msra.gmra.mxu1 %v6014_v27  ;;  %v4230_v32 = vpop.f32.mrf.mxu0  ;;  %4524 = vmatprep.subr.bf16.mxu0 %v5286_v25  ;;  %v1309_v16 = vld [vmem:[%s5821_s12 + $0xf58] sm:$0xff] }
 0x33b   : > { %4564 = vmatpush1.bf16.msra.mxu1 %v5421_v24  ;;  %v6477_v36 = vadd.f32 %v4269_v56, %v4229_v30  ;;  %v4231_v57 = vadd.f32 %v4230_v32, %v6409_v53  ;;  %4595 = vmatprep.mubr.bf16.mxu1 %v6023_v7  ;;  %v5246_v30 = vcombine.high %v1085_v39, %v1089_v22  ;;  %v1081_v32 = vld [vmem:[%s5821_s12 + $0x838] sm:$0xff] }
 0x33c   : > { %v4271_v37 = vpop.f32.mrf.mxu1  ;;  %4565 = vmatprep.subr.bf16.mxu1 %v5414_v26  ;;  %v4232_v27 = vpop.f32.mrf.mxu0  ;;  %v1213_v26 = vld [vmem:[%s5821_s12 + $0xc58] sm:$0xff] }
 0x33d   : > { %v4619_v50 = vsel %vm4604_vm2, %v6477_v36, 0.0  ;;  %v6488_v8 = vadd.f32 %v4271_v37, %v4231_v57  ;;  %4525 = vmatpush1.bf16.msra.mxu0 %v5285_v31  ;;  %v5374_v56 = vcombine.high %v1213_v26, %v1217_v38  ;;  %v1077_v31 = vld [vmem:[%s5821_s12 + $0x818] sm:$0xff]  ;;  %v5373_v41 = vcombine.low %v1213_v26, %v1217_v38 }
 0x33e   : > { %v4273_v53 = vpop.f32.mrf.mxu1  ;;  %v4620_v58 = vrot.slane %v4619_v50, 4  ;;  %v4233_v63 = vpop.f32.mrf.mxu0  ;;  %4526 = vmatprep.subr.bf16.mxu0 %v5278_v23  ;;  %v1205_v57 = vld [vmem:[%s5821_s12 + $0xc18] sm:$0xff]  ;;  %v5238_v55 = vcombine.high %v1077_v31, %v1081_v32 }
 0x33f   : > { %4566 = vmatpush1.bf16.msra.mxu1 %v5413_v33  ;;  %v4626_v7 = vsel %vm4604_vm2, %v6488_v8, 0.0  ;;  %v1209_v37 = vld [vmem:[%s5821_s12 + $0xc38] sm:$0xff] }
 0x340   : > { %v4274_v46 = vpop.f32.mrf.mxu1  ;;  %4567 = vmatprep.subr.bf16.mxu1 %v5406_v5  ;;  %v4621_v49 = vadd.f32 %v4620_v58, %v4619_v50  ;;  %v4627_v0 = vrot.slane %v4626_v7, 4  ;;  %v5245_v5 = vcombine.low %v1085_v39, %v1089_v22  ;;  %v1201_v50 = vld [vmem:[%s5821_s12 + $0xbf8] sm:$0xff] }
 0x341   : > { %4527 = vmatpush1.bf16.msra.mxu0 %v5277_v54  ;;  %v1325_v58 = vld [vmem:[%s5821_s12 + $0xfd8] sm:$0xff]  ;;  %v5358_v46 = vcombine.high %v1197_v47, %v1201_v50 }
 0x342   : > { %v4622_v4 = vrot.slane %v4621_v49, 2  ;;  %v4628_v61 = vadd.f32 %v4627_v0, %v4626_v7  ;;  %4528 = vmatprep.subr.bf16.mxu0 %v5270_v62  ;;  %v1329_v63 = vld [vmem:[%s5821_s12 + $0xff8] sm:$0xff]  ;;  %v5365_v7 = vcombine.low %v1205_v57, %v1209_v37 }
 0x343   : > { %4568 = vmatpush1.bf16.msra.mxu1 %v5405_v42  ;;  %v5237_v42 = vcombine.low %v1077_v31, %v1081_v32  ;;  %v5486_v51 = vcombine.high %v1325_v58, %v1329_v63  ;;  %v1193_v0 = vld [vmem:[%s5821_s12 + $0xbb8] sm:$0xff] }
 0x344   : > { %4569 = vmatprep.subr.bf16.mxu1 %v5398_v60  ;;  %v4623_v13 = vadd.f32 %v4622_v4, %v4621_v49  ;;  %v4629_v14 = vrot.slane %v4628_v61, 2  ;;  %v1189_v49 = vld [vmem:[%s5821_s12 + $0xb98] sm:$0xff] }
 0x345   : > { %4529 = vmatpush1.bf16.msra.mxu0 %v5269_v3  ;;  %v1313_v43 = vld [vmem:[%s5821_s12 + $0xf78] sm:$0xff] }
 0x346   : > { %v4624_v17 = vrot.slane %v4623_v13, 1  ;;  %v4630_v19 = vadd.f32 %v4629_v14, %v4628_v61  ;;  %4530 = vmatprep.subr.bf16.mxu0 %v5262_v10  ;;  %v5357_v61 = vcombine.low %v1197_v47, %v1201_v50  ;;  %v5350_v10 = vcombine.high %v1189_v49, %v1193_v0  ;;  %v1185_v14 = vld [vmem:[%s5821_s12 + $0xb78] sm:$0xff] }
 0x347   : > { %4570 = vmatpush1.bf16.msra.mxu1 %v5397_v6  ;;  %v5485_v6 = vcombine.low %v1325_v58, %v1329_v63  ;;  %v5470_v22 = vcombine.high %v1309_v16, %v1313_v43  ;;  %v1301_v26 = vld [vmem:[%s5821_s12 + $0xf18] sm:$0xff] }
 0x348   : > { %4571 = vmatprep.subr.bf16.mxu1 %v5390_v11  ;;  %v4625_v24 = vadd.f32 %v4624_v17, %v4623_v13  ;;  %v4631_v25 = vrot.slane %v4630_v19, 1  ;;  %v1181_v13 = vld [vmem:[%s5821_s12 + $0xb58] sm:$0xff] }
 0x349   : > { %4531 = vmatpush1.bf16.msra.mxu0 %v5261_v52  ;;  %v1305_v38 = vld [vmem:[%s5821_s12 + $0xf38] sm:$0xff] }
 0x34a   : > { %v4664_v15 = vmul.f32 0.5, %v4625_v24  ;;  %v4632_v28 = vadd.f32 %v4631_v25, %v4630_v19  ;;  %4532 = vmatprep.subr.bf16.mxu0 %v5254_v21  ;;  %v5349_v19 = vcombine.low %v1189_v49, %v1193_v0  ;;  %v5342_v21 = vcombine.high %v1181_v13, %v1185_v14  ;;  %v1173_v24 = vld [vmem:[%s5821_s12 + $0xb18] sm:$0xff] }
 0x34b   : > { %4572 = vmatpush1.bf16.msra.mxu1 %v5389_v20  ;;  %v5477_v20 = vcombine.low %v1317_v1, %v1321_v2  ;;  %v1177_v25 = vld [vmem:[%s5821_s12 + $0xb38] sm:$0xff]  ;;  %v5462_v32 = vcombine.high %v1301_v26, %v1305_v38 }
 0x34c   : > { %4573 = vmatprep.subr.bf16.mxu1 %v5382_v34  ;;  %v6507_v33 = vsub.f32 %v6477_v36, %v4664_v15  ;;  %v4665_v23 = vmul.f32 0.5, %v4632_v28  ;;  %v5366_v36 = vcombine.high %v1205_v57, %v1209_v37  ;;  %v5341_v28 = vcombine.low %v1181_v13, %v1185_v14  ;;  %v1169_v57 = vld [vmem:[%s5821_s12 + $0xaf8] sm:$0xff] }
 0x34d   : > { %4533 = vmatpush1.bf16.msra.mxu0 %v5253_v45  ;;  %v1293_v37 = vld [vmem:[%s5821_s12 + $0xed8] sm:$0xff] }
 0x34e   : > { %v4680_v44 = vmul.f32 %v6507_v33, %v6507_v33  ;;  %v6514_v27 = vsub.f32 %v6488_v8, %v4665_v23  ;;  %4534 = vmatprep.subr.bf16.mxu0 %v5246_v30  ;;  %v5334_v30 = vcombine.high %v1173_v24, %v1177_v25  ;;  %v1165_v23 = vld [vmem:[%s5821_s12 + $0xad8] sm:$0xff] }
 0x34f   : > { %4574 = vmatpush1.bf16.msra.mxu1 %v5381_v29  ;;  %v5469_v29 = vcombine.low %v1309_v16, %v1313_v43  ;;  %v1157_v50 = vld [vmem:[%s5821_s12 + $0xa98] sm:$0xff]  ;;  %v5325_v63 = vcombine.low %v1165_v23, %v1169_v57 }
 0x350   : > { %4575 = vmatprep.subr.bf16.mxu1 %v5374_v56  ;;  %v4700_v53 = vsel %vm4604_vm2, %v4680_v44, 0.0  ;;  %v4681_v54 = vmul.f32 %v6514_v27, %v6514_v27  ;;  %v5333_v44 = vcombine.low %v1173_v24, %v1177_v25  ;;  %v1289_v58 = vld [vmem:[%s5821_s12 + $0xeb8] sm:$0xff] }
 0x351   : > { %v4701_v8 = vrot.slane %v4700_v53, 4  ;;  %4535 = vmatpush1.bf16.msra.mxu0 %v5245_v5  ;;  %v1297_v5 = vld [vmem:[%s5821_s12 + $0xef8] sm:$0xff] }
 0x352   : > { %v4707_v62 = vsel %vm4604_vm2, %v4681_v54, 0.0  ;;  %4536 = vmatprep.subr.bf16.mxu0 %v5238_v55  ;;  %v5461_v55 = vcombine.low %v1301_v26, %v1305_v38  ;;  %v5454_v47 = vcombine.high %v1293_v37, %v1297_v5  ;;  %v1285_v54 = vld [vmem:[%s5821_s12 + $0xe98] sm:$0xff] }
 0x353   : > { %4576 = vmatpush1.bf16.msra.mxu1 %v5373_v41  ;;  %v4702_v60 = vadd.f32 %v4701_v8, %v4700_v53  ;;  %v4708_v35 = vrot.slane %v4707_v62, 4  ;;  %v1161_v53 = vld [vmem:[%s5821_s12 + $0xab8] sm:$0xff]  ;;  %v5453_v8 = vcombine.low %v1293_v37, %v1297_v5  ;;  %v5445_v49 = vcombine.low %v1285_v54, %v1289_v58 }
 0x354   : > { %4577 = vmatprep.subr.bf16.mxu1 %v5366_v36  ;;  %v5326_v36 = vcombine.high %v1165_v23, %v1169_v57  ;;  %v1141_v2 = vld [vmem:[%s5821_s12 + $0xa18] sm:$0xff] }
 0x355   : > { %v4703_v3 = vrot.slane %v4702_v60, 2  ;;  %v4709_v4 = vadd.f32 %v4708_v35, %v4707_v62  ;;  %4537 = vmatpush1.bf16.msra.mxu0 %v5237_v42  ;;  %v5318_v42 = vcombine.high %v1157_v50, %v1161_v53  ;;  %v5446_v62 = vcombine.high %v1285_v54, %v1289_v58  ;;  %v1281_v35 = vld [vmem:[%s5821_s12 + $0xe78] sm:$0xff] }
 0x356   : > { %4538 = vmatprep.subr.bf16.mxu0 %v5358_v46  ;;  %v1153_v46 = vld [vmem:[%s5821_s12 + $0xa78] sm:$0xff] }
 0x357   : > { %4578 = vmatpush1.bf16.msra.mxu1 %v5365_v7  ;;  %v4704_v11 = vadd.f32 %v4703_v3, %v4702_v60  ;;  %v4710_v12 = vrot.slane %v4709_v4, 2  ;;  %v1149_v7 = vld [vmem:[%s5821_s12 + $0xa58] sm:$0xff] }
 0x358   : > { %4579 = vmatprep.subr.bf16.mxu1 %v5486_v51  ;;  %v1277_v60 = vld [vmem:[%s5821_s12 + $0xe58] sm:$0xff]  ;;  %v5317_v51 = vcombine.low %v1157_v50, %v1161_v53  ;;  %v5310_v0 = vcombine.high %v1149_v7, %v1153_v46 }
 0x359   : > { %v4705_v52 = vrot.slane %v4704_v11, 1  ;;  %v4711_v17 = vadd.f32 %v4710_v12, %v4709_v4  ;;  %4539 = vmatpush2.bf16.msra.mxu0 %v5357_v61  ;;  %v5438_v1 = vcombine.high %v1277_v60, %v1281_v35  ;;  %v1145_v3 = vld [vmem:[%s5821_s12 + $0xa38] sm:$0xff] }
 0x35a   : > { %4540 = vmatprep.subr.bf16.mxu0 %v5350_v10  ;;  %v1269_v4 = vld [vmem:[%s5821_s12 + $0xe18] sm:$0xff]  ;;  %v5302_v12 = vcombine.high %v1141_v2, %v1145_v3  ;;  %v5301_v43 = vcombine.low %v1141_v2, %v1145_v3 }
 0x35b   : > { %4580 = vmatpush2.bf16.msra.mxu1 %v5485_v6  ;;  %v4706_v34 = vadd.f32 %v4705_v52, %v4704_v11  ;;  %v4712_v39 = vrot.slane %v4711_v17, 1  ;;  %v1273_v61 = vld [vmem:[%s5821_s12 + $0xe38] sm:$0xff]  ;;  %v5309_v6 = vcombine.low %v1149_v7, %v1153_v46  ;;  %v5437_v11 = vcombine.low %v1277_v60, %v1281_v35 }
 0x35c   : > { %4581 = vmatprep.subr.bf16.mxu1 %v5478_v48  ;;  %v5430_v13 = vcombine.high %v1269_v4, %v1273_v61  ;;  %v5429_v52 = vcombine.low %v1269_v4, %v1273_v61 }
 0x35d   : > { %v4744_v45 = vmul.f32 0.5, %v4706_v34  ;;  %v4713_v15 = vadd.f32 %v4712_v39, %v4711_v17  ;;  %4541 = vmatpush2.bf16.msra.mxu0 %v5349_v19 }
 0x35e   : > { %4542 = vmatprep.subr.bf16.mxu0 %v5342_v21  ;;  %v4808_v21 = vrot.slane %v6396_v59, %v5933_v18 }
 0x35f   : > { %4582 = vmatpush2.bf16.msra.mxu1 %v5477_v20  ;;  %v4752_v56 = vadd.f32 1e-05, %v4744_v45  ;;  %v4745_v31 = vmul.f32 0.5, %v4713_v15 }
 0x360   : > { %4583 = vmatprep.subr.bf16.mxu1 %v5470_v22 }
 0x361   : > { %5571 = vrsqrt.f32 %v4752_v56  ;;  %v4753_v41 = vadd.f32 1e-05, %v4745_v31  ;;  %4543 = vmatpush2.bf16.msra.mxu0 %v5341_v28 }
 0x362   : > { %4544 = vmatprep.subr.bf16.mxu0 %v5334_v30 }
 0x363   : > { %4584 = vmatpush2.bf16.msra.mxu1 %v5469_v29  ;;  %5573 = vrsqrt.f32 %v4753_v41 }
 0x364   : > { %4585 = vmatprep.subr.bf16.mxu1 %v5462_v32 }
 0x365   : > { %4545 = vmatpush2.bf16.msra.mxu0 %v5333_v44 }
 0x366   : > { %4546 = vmatprep.subr.bf16.mxu0 %v5326_v36 }
 0x367   : > { %4586 = vmatpush2.bf16.msra.mxu1 %v5461_v55 }
 0x368   : > { %4587 = vmatprep.subr.bf16.mxu1 %v5454_v47 }
 0x369   : > { %4547 = vmatpush2.bf16.msra.mxu0 %v5325_v63 }
 0x36a   : > { %4548 = vmatprep.subr.bf16.mxu0 %v5318_v42 }
 0x36b   : > { %4588 = vmatpush2.bf16.msra.mxu1 %v5453_v8 }
 0x36c   : > { %4589 = vmatprep.subr.bf16.mxu1 %v5446_v62 }
 0x36d   : > { %4549 = vmatpush2.bf16.msra.mxu0 %v5317_v51 }
 0x36e   : > { %v5572_v10 = vpop.eup %5571  ;;  %4550 = vmatprep.subr.bf16.mxu0 %v5310_v0 }
 0x36f   : > { %4590 = vmatpush2.bf16.msra.mxu1 %v5445_v49  ;;  %v4768_v48 = vmul.f32 %v5572_v10, %v6507_v33 }
 0x370   : > { %4591 = vmatprep.subr.bf16.mxu1 %v5438_v1  ;;  %v5574_v14 = vpop.eup %5573 }
 0x371   : > { %v4769_v16 = vmul.f32 %v5574_v14, %v6514_v27  ;;  %4551 = vmatpush2.bf16.msra.mxu0 %v5309_v6  ;;  %v4776_v17 = vmax.f32 %v4768_v48, 0.0 }
 0x372   : > { %4552 = vmatprep.subr.bf16.mxu0 %v5302_v12 }
 0x373   : > { %4592 = vmatpush2.bf16.msra.mxu1 %v5437_v11  ;;  %v4777_v19 = vmax.f32 %v4769_v16, 0.0 }
 0x374   : > { %4593 = vmatprep.subr.bf16.mxu1 %v5430_v13 }
 0x375   : > { %v5488_v20 = vpack.c.bf16 %v4777_v19, %v4776_v17  ;;  %4553 = vmatpush2.bf16.msra.mxu0 %v5301_v43 }
 0x377   : > { %4594 = vmatpush2.bf16.msra.mxu1 %v5429_v52  ;;  %v4815_v33 = vrot.slane %v5488_v20, %v5933_v18 }
 0x378   : > { %v4310_v34 = vpop.f32.mrf.mxu0  ;;  %4555 = vmatmul.mubr.bf16.vlgmr.msra.gmra.mxu0 %v6086_v9 }
 0x379   : > { %v6558_v27 = vcombine.low %v4808_v21, %v4815_v33 }
 0x37a   : > { %v4351_v39 = vpop.f32.mrf.mxu1  ;;  %4596 = vmatmul.mubr.bf16.vlgmr.msra.gmra.mxu1 %v6094_v40  ;;  %v4312_v24 = vpop.f32.mrf.mxu0 }
 0x37b   : > { %v4352_v22 = vadd.f32 %v4351_v39, %v4310_v34 }
 0x37c   : > { %v4353_v25 = vpop.f32.mrf.mxu1  ;;  %v4314_v38 = vpop.f32.mrf.mxu0 }
 0x37d   : > { %v4354_v26 = vadd.f32 %v4353_v25, %v4312_v24 }
 0x37e   : > { %v4355_v45 = vpop.f32.mrf.mxu1  ;;  %v4315_v15 = vpop.f32.mrf.mxu0 }
 0x380   : > { %v4356_v28 = vpop.f32.mrf.mxu1 }
 0x3b8   : > { %v4392_v29 = vpop.f32.mrf.mxu0 }
 0x3b9   : > { %v4393_v59 = vadd.f32 %v4392_v29, %v4352_v22 }
 0x3ba   : > { %v4433_v30 = vpop.f32.mrf.mxu1  ;;  %v4394_v56 = vpop.f32.mrf.mxu0 }
 0x3bb   : > { %v4434_v31 = vadd.f32 %v4433_v30, %v4393_v59  ;;  %v4395_v32 = vadd.f32 %v4394_v56, %v4354_v26 }
 0x3bc   : > { %v4435_v9 = vpop.f32.mrf.mxu1  ;;  %v4396_v23 = vpop.f32.mrf.mxu0 }
 0x3bd   : > { %v4633_v57 = vsel %vm4604_vm2, %v4434_v31, 0.0  ;;  %v4436_v37 = vadd.f32 %v4435_v9, %v4395_v32 }
 0x3be   : > { %v4437_v40 = vpop.f32.mrf.mxu1  ;;  %v4634_v5 = vrot.slane %v4633_v57, 4  ;;  %v4397_v41 = vpop.f32.mrf.mxu0 }
 0x3bf   : > { %v4640_v44 = vsel %vm4604_vm2, %v4436_v37, 0.0 }
 0x3c0   : > { %v4438_v55 = vpop.f32.mrf.mxu1  ;;  %v4635_v36 = vadd.f32 %v4634_v5, %v4633_v57  ;;  %v4641_v47 = vrot.slane %v4640_v44, 4 }
 0x3c2   : > { %v4636_v50 = vrot.slane %v4635_v36, 2  ;;  %v4642_v53 = vadd.f32 %v4641_v47, %v4640_v44 }
 0x3c4   : > { %v4637_v54 = vadd.f32 %v4636_v50, %v4635_v36  ;;  %v4643_v58 = vrot.slane %v4642_v53, 2 }
 0x3c6   : > { %v4638_v63 = vrot.slane %v4637_v54, 1  ;;  %v4644_v8 = vadd.f32 %v4643_v58, %v4642_v53 }
 0x3c8   : > { %v4639_v42 = vadd.f32 %v4638_v63, %v4637_v54  ;;  %v4645_v62 = vrot.slane %v4644_v8, 1 }
 0x3ca   : > { %v4666_v7 = vmul.f32 0.5, %v4639_v42  ;;  %v4646_v46 = vadd.f32 %v4645_v62, %v4644_v8 }
 0x3cc   : > { %v4674_v60 = vsub.f32 %v4434_v31, %v4666_v7  ;;  %v4667_v35 = vmul.f32 0.5, %v4646_v46 }
 0x3ce   : > { %v4682_v51 = vmul.f32 %v4674_v60, %v4674_v60  ;;  %v4675_v49 = vsub.f32 %v4436_v37, %v4667_v35 }
 0x3d0   : > { %v4714_v0 = vsel %vm4604_vm2, %v4682_v51, 0.0  ;;  %v4683_v1 = vmul.f32 %v4675_v49, %v4675_v49 }
 0x3d1   : > { %v4715_v2 = vrot.slane %v4714_v0, 4 }
 0x3d2   : > { %v4721_v3 = vsel %vm4604_vm2, %v4683_v1, 0.0 }
 0x3d3   : > { %v4716_v4 = vadd.f32 %v4715_v2, %v4714_v0  ;;  %v4722_v61 = vrot.slane %v4721_v3, 4 }
 0x3d5   : > { %v4717_v6 = vrot.slane %v4716_v4, 2  ;;  %v4723_v10 = vadd.f32 %v4722_v61, %v4721_v3 }
 0x3d7   : > { %v4718_v11 = vadd.f32 %v4717_v6, %v4716_v4  ;;  %v4724_v12 = vrot.slane %v4723_v10, 2 }
 0x3d9   : > { %v4719_v48 = vrot.slane %v4718_v11, 1  ;;  %v4725_v13 = vadd.f32 %v4724_v12, %v4723_v10 }
 0x3db   : > { %v4720_v14 = vadd.f32 %v4719_v48, %v4718_v11  ;;  %v4726_v16 = vrot.slane %v4725_v13, 1 }
 0x3dd   : > { %v4746_v43 = vmul.f32 0.5, %v4720_v14  ;;  %v4727_v52 = vadd.f32 %v4726_v16, %v4725_v13 }
 0x3df   : > { %v4754_v17 = vadd.f32 1e-05, %v4746_v43  ;;  %v4747_v19 = vmul.f32 0.5, %v4727_v52 }
 0x3e1   : > { %5575 = vrsqrt.f32 %v4754_v17  ;;  %v4755_v20 = vadd.f32 1e-05, %v4747_v19 }
 0x3e3   : > { %5577 = vrsqrt.f32 %v4755_v20 }
 0x3ee   : > { %v5576_v21 = vpop.eup %5575 }
 0x3ef   : > { %v4770_v33 = vmul.f32 %v5576_v21, %v4674_v60 }
 0x3f0   : > { %v5578_v34 = vpop.eup %5577 }
 0x3f1   : > { %v4771_v39 = vmul.f32 %v5578_v34, %v4675_v49  ;;  %v4778_v22 = vmax.f32 %v4770_v33, 0.0 }
 0x3f3   : > { %v4779_v24 = vmax.f32 %v4771_v39, 0.0 }
 0x3f5   : > { %v6565_v25 = vpack.c.bf16 %v4779_v24, %v4778_v22 }
 0x3f8   : > { %v4474_v26 = vpop.f32.mrf.mxu0 }
 0x3fa   : > { %v4515_v38 = vpop.f32.mrf.mxu1  ;;  %v4476_v45 = vpop.f32.mrf.mxu0 }
 0x3fb   : > { %v4516_v56 = vadd.f32 %v4515_v38, %v4474_v26 }
 0x3fc   : > { %v4517_v15 = vpop.f32.mrf.mxu1  ;;  %v4478_v28 = vpop.f32.mrf.mxu0 }
 0x3fd   : > { %v4518_v32 = vadd.f32 %v4517_v15, %v4476_v45 }
 0x3fe   : > { %v4519_v29 = vpop.f32.mrf.mxu1  ;;  %v4479_v59 = vpop.f32.mrf.mxu0 }
 0x3ff   : > { %v4822_v59 = vrot.slane %v6565_v25, %v5933_v18 }
 0x400   : > { %v4520_v30 = vpop.f32.mrf.mxu1 }
 0x438   : > { %v4556_v31 = vpop.f32.mrf.mxu0 }
 0x439   : > { %v4557_v9 = vadd.f32 %v4556_v31, %v4516_v56  ;;  %v4838_v31 = vrot.slane %v6558_v27, %v5933_v18 }
 0x43a   : > { %v4597_v23 = vpop.f32.mrf.mxu1  ;;  %v4558_v57 = vpop.f32.mrf.mxu0 }
 0x43b   : > { %v4598_v37 = vadd.f32 %v4597_v23, %v4557_v9  ;;  %v4559_v40 = vadd.f32 %v4558_v57, %v4518_v32 }
 0x43c   : > { %v4599_v5 = vpop.f32.mrf.mxu1  ;;  %v4560_v41 = vpop.f32.mrf.mxu0 }
 0x43d   : > { %v4647_v44 = vsel %vm4604_vm2, %v4598_v37, 0.0  ;;  %v4600_v55 = vadd.f32 %v4599_v5, %v4559_v40 }
 0x43e   : > { %v4601_v36 = vpop.f32.mrf.mxu1  ;;  %v4648_v47 = vrot.slane %v4647_v44, 4  ;;  %v4561_v50 = vpop.f32.mrf.mxu0 }
 0x43f   : > { %v4654_v53 = vsel %vm4604_vm2, %v4600_v55, 0.0 }
 0x440   : > { %v4602_v54 = vpop.f32.mrf.mxu1  ;;  %v4649_v58 = vadd.f32 %v4648_v47, %v4647_v44  ;;  %v4655_v63 = vrot.slane %v4654_v53, 4 }
 0x442   : > { %v4650_v8 = vrot.slane %v4649_v58, 2  ;;  %v4656_v42 = vadd.f32 %v4655_v63, %v4654_v53 }
 0x444   : > { %v4651_v62 = vadd.f32 %v4650_v8, %v4649_v58  ;;  %v4657_v7 = vrot.slane %v4656_v42, 2 }
 0x446   : > { %v4652_v46 = vrot.slane %v4651_v62, 1  ;;  %v4658_v60 = vadd.f32 %v4657_v7, %v4656_v42 }
 0x448   : > { %v4653_v35 = vadd.f32 %v4652_v46, %v4651_v62  ;;  %v4659_v51 = vrot.slane %v4658_v60, 1 }
 0x44a   : > { %v4668_v49 = vmul.f32 0.5, %v4653_v35  ;;  %v4660_v0 = vadd.f32 %v4659_v51, %v4658_v60 }
 0x44c   : > { %v4676_v1 = vsub.f32 %v4598_v37, %v4668_v49  ;;  %v4669_v2 = vmul.f32 0.5, %v4660_v0 }
 0x44e   : > { %v4684_v3 = vmul.f32 %v4676_v1, %v4676_v1  ;;  %v4677_v4 = vsub.f32 %v4600_v55, %v4669_v2 }
 0x450   : > { %v4728_v61 = vsel %vm4604_vm2, %v4684_v3, 0.0  ;;  %v4685_v6 = vmul.f32 %v4677_v4, %v4677_v4 }
 0x451   : > { %v4729_v10 = vrot.slane %v4728_v61, 4 }
 0x452   : > { %v4735_v11 = vsel %vm4604_vm2, %v4685_v6, 0.0 }
 0x453   : > { %v4730_v12 = vadd.f32 %v4729_v10, %v4728_v61  ;;  %v4736_v48 = vrot.slane %v4735_v11, 4 }
 0x455   : > { %v4731_v13 = vrot.slane %v4730_v12, 2  ;;  %v4737_v14 = vadd.f32 %v4736_v48, %v4735_v11 }
 0x457   : > { %v4732_v16 = vadd.f32 %v4731_v13, %v4730_v12  ;;  %v4738_v43 = vrot.slane %v4737_v14, 2 }
 0x459   : > { %v4733_v52 = vrot.slane %v4732_v16, 1  ;;  %v4739_v17 = vadd.f32 %v4738_v43, %v4737_v14 }
 0x45b   : > { %v4734_v19 = vadd.f32 %v4733_v52, %v4732_v16  ;;  %v4740_v20 = vrot.slane %v4739_v17, 1 }
 0x45d   : > { %v4748_v21 = vmul.f32 0.5, %v4734_v19  ;;  %v4741_v33 = vadd.f32 %v4740_v20, %v4739_v17 }
 0x45f   : > { %v4756_v34 = vadd.f32 1e-05, %v4748_v21  ;;  %v4749_v39 = vmul.f32 0.5, %v4741_v33 }
 0x461   : > { %5579 = vrsqrt.f32 %v4756_v34  ;;  %v4757_v22 = vadd.f32 1e-05, %v4749_v39 }
 0x463   : > { %5581 = vrsqrt.f32 %v4757_v22 }
 0x46e   : > { %v5580_v24 = vpop.eup %5579 }
 0x46f   : > { %v4772_v26 = vmul.f32 %v5580_v24, %v4676_v1 }
 0x470   : > { %v5582_v38 = vpop.eup %5581 }
 0x471   : > { %v4773_v45 = vmul.f32 %v5582_v38, %v4677_v4  ;;  %v4780_v15 = vmax.f32 %v4772_v26, 0.0 }
 0x473   : > { %v4781_v28 = vmax.f32 %v4773_v45, 0.0 }
 0x475   : > { %v5490_v29 = vpack.c.bf16 %v4781_v28, %v4780_v15 }
 0x477   : > { %v4829_v30 = vrot.slane %v5490_v29, %v5933_v18 }
 0x479   : > { %v4831_v56 = vcombine.low %v4822_v59, %v4829_v30 }
 0x47b   : > { %v4845_v32 = vrot.slane %v4831_v56, %v5933_v18 }
 0x47d   : > { %v4846_v9 = vcombine.low %v4838_v31, %v4845_v32 }
 0x47f   : > { %4848 = vst [vmem:[%s204_s11] sm:$0xff] %v4846_v9 }
 0x480 PF: > { %p14_p1 = scmp.ge.s32.totalorder %s5727_s17, 4   ;;  %s6612_s12 = smov %s5667_s13 }
 0x481   : > { %s6613_s13 = smov %s5671_s14  ;;  %s6614_s14 = smov %s5737_s20 }
 0x482   : > { %s6615_s15 = smov %s5727_s17  ;;  %16 = sbr.rel (!%p14_p1) target bundleno = 4 (0x4), region = 81 }
 0x487   :  { %4869 = vsyncpa [#allocation4], 1 }
 0x488   :  { %4871 = vsyncpa [#allocation4 + $0x1], 1 }
 0x489   :  { %4872 = vsyncpa [#allocation6], 1 }
 0x48a   :  { %4874 = vsyncpa [#allocation6 + $0x1], 1 }

</bundles_post_ra>
